<compile_context>
chip_gen: v5e
topology: v5e:2x2
jax: 0.10.0
libtpu: 0.0.40
codegen_flags: <defaults>
</compile_context>

<pallas_src>
import functools
import math

import jax
import jax.numpy as jnp
from jax.experimental import pallas as pl
from jax.experimental.pallas import tpu as pltpu


# Model-wide sizes (mirroring RTGR.__init__)
SKL_EMB = 256        # self.skl_emb_size
HAND_FEAT = 512      # self.hand_input_size (resnet34 feature width)
HAND_EMB = 256       # self.hand_emb_size
ATT_HID = 128        # SoftAttention hidden_size
NCLS = 15            # bfc_output width

# TPU-friendly padded widths
HP = 128             # LSTM hidden padded to one full lane tile (real hidden_dim <= HP)
NPAD = 128           # head output padded to one full lane tile (lane-dense writeback)

_TILE_FRONT = 128    # fused front-end row tile (VMEM-safe on v5e/v7x scoped defaults)
_TILE_ROW = 256      # row tile for the simple gx linear


def _tiles(m, tile):
    bm = m if m <= tile else tile
    return bm, pl.cdiv(m, bm)


# ---------------------------------------------------------------------------
# Generic fused linear (LSTM input-gate precompute), bf16 operands / f32 acc
# ---------------------------------------------------------------------------

def _linear_kernel(x_ref, w_ref, b_ref, o_ref):
    o_ref[...] = jnp.dot(x_ref[...].astype(jnp.bfloat16), w_ref[...],
                         preferred_element_type=jnp.float32) + b_ref[...]


def linear(x, w, b):
    M, K = x.shape
    N = w.shape[1]
    bm, gm = _tiles(M, _TILE_ROW)
    return pl.pallas_call(
        _linear_kernel,
        out_shape=jax.ShapeDtypeStruct((M, N), jnp.float32),
        grid=(gm,),
        in_specs=[
            pl.BlockSpec((bm, K), lambda i: (i, 0)),
            pl.BlockSpec((K, N), lambda i: (0, 0)),
            pl.BlockSpec((1, N), lambda i: (0, 0)),
        ],
        out_specs=pl.BlockSpec((bm, N), lambda i: (i, 0)),
        compiler_params=pltpu.CompilerParams(dimension_semantics=("parallel",)),
    )(x, w, b)


# ---------------------------------------------------------------------------
# Fused front-end: hand features -> soft_att -> hand_embedding
#                  + skl_embedding + soft_att_info, all in one kernel
# ---------------------------------------------------------------------------

def _frontend_kernel(hand_ref, skl_ref,
                     wf_ref, bf_ref,
                     wa1_ref, ba1_ref, vb1_ref, bb1_ref,
                     whe_ref, bhe_ref,
                     ws1_ref, bs1_ref, ws2_ref, bs2_ref,
                     wa2_ref, ba2_ref, vb2_ref, bb2_ref,
                     o_ref, *, chw):
    bf16 = jnp.bfloat16
    f32 = jnp.float32

    def dense(x, w_ref, b_ref):
        y = jnp.dot(x.astype(bf16), w_ref[...], preferred_element_type=f32) + b_ref[...]
        return jnp.maximum(y, 0.0)

    def score(x, wa_ref, ba_ref, vb_ref, bb_ref):
        h = dense(x, wa_ref, ba_ref)
        # Linear(hidden -> 1) as a VPU reduction (no N=1 MXU matmul)
        return jnp.sum(h * vb_ref[...], axis=1, keepdims=True) + bb_ref[...]

    def att2(x0, x1, s0, s1):
        m = jnp.maximum(s0, s1)
        e0 = jnp.exp(s0 - m)
        e1 = jnp.exp(s1 - m)
        inv = pl.reciprocal(e0 + e1, approx=True)
        return (e0 * inv) * x0 + (e1 * inv) * x1

    # hand_features stand-in (shared weight, two MXU passes against the resident block)
    f_l = dense(hand_ref[:, :chw], wf_ref, bf_ref)
    f_r = dense(hand_ref[:, chw:2 * chw], wf_ref, bf_ref)

    # soft_att over [hand_l, hand_r]
    hand_att = att2(f_l, f_r,
                    score(f_l, wa1_ref, ba1_ref, vb1_ref, bb1_ref),
                    score(f_r, wa1_ref, ba1_ref, vb1_ref, bb1_ref))

    # hand_embedding: Linear -> ReLU
    hand_emb = dense(hand_att, whe_ref, bhe_ref)

    # skl_embedding: Linear -> ReLU -> Linear -> ReLU
    skl_emb = dense(dense(skl_ref[...], ws1_ref, bs1_ref), ws2_ref, bs2_ref)

    # soft_att_info over [hand_emb, skl_emb]
    o_ref[...] = att2(hand_emb, skl_emb,
                      score(hand_emb, wa2_ref, ba2_ref, vb2_ref, bb2_ref),
                      score(skl_emb, wa2_ref, ba2_ref, vb2_ref, bb2_ref))


def frontend(hand2, skl, params):
    BS, chw2 = hand2.shape
    chw = chw2 // 2
    skl_in = skl.shape[1]
    bm, gm = _tiles(BS, _TILE_FRONT)

    wf, bf = params["feat"]
    wa1, ba1 = params["att1_a"]
    vb1, bb1 = params["att1_b"]
    whe, bhe = params["hand_emb"]
    ws1, bs1 = params["skl1"]
    ws2, bs2 = params["skl2"]
    wa2, ba2 = params["att2_a"]
    vb2, bb2 = params["att2_b"]

    def cspec(arr):
        nd = arr.ndim
        return pl.BlockSpec(arr.shape, lambda i, _nd=nd: (0,) * _nd)

    # NOTE: rows past BS in a partial last tile are unmasked garbage inside the kernel
    # (exp/softmax on them is discarded by the masked writeback).
    return pl.pallas_call(
        functools.partial(_frontend_kernel, chw=chw),
        out_shape=jax.ShapeDtypeStruct((BS, HAND_EMB), jnp.float32),
        grid=(gm,),
        in_specs=[
            pl.BlockSpec((bm, chw2), lambda i: (i, 0)),
            pl.BlockSpec((bm, skl_in), lambda i: (i, 0)),
            cspec(wf), cspec(bf),
            cspec(wa1), cspec(ba1), cspec(vb1), cspec(bb1),
            cspec(whe), cspec(bhe),
            cspec(ws1), cspec(bs1), cspec(ws2), cspec(bs2),
            cspec(wa2), cspec(ba2), cspec(vb2), cspec(bb2),
        ],
        out_specs=pl.BlockSpec((bm, HAND_EMB), lambda i: (i, 0)),
        compiler_params=pltpu.CompilerParams(
            dimension_semantics=("parallel",),
            vmem_limit_bytes=32 * 1024 * 1024),
    )(hand2, skl, wf, bf, wa1, ba1, vb1, bb1, whe, bhe,
      ws1, bs1, ws2, bs2, wa2, ba2, vb2, bb2)


# ---------------------------------------------------------------------------
# LSTM: input gates pre-computed in one big matmul; recurrence is a single grid
# step with an in-kernel fori_loop over time; final layer fuses the output head.
# ---------------------------------------------------------------------------

def _lstm_recurrence(gx_ref, whh_ref, write_h, t_len):
    B = gx_ref.shape[1]
    whh = whh_ref[...]                      # (HP, 4*HP) bf16, loop-invariant

    def step(t, carry):
        h, c = carry
        gates = gx_ref[t] + jnp.dot(h.astype(jnp.bfloat16), whh,
                                    preferred_element_type=jnp.float32)   # (B, 4*HP)
        i_g = jax.nn.sigmoid(gates[:, 0 * HP:1 * HP])
        f_g = jax.nn.sigmoid(gates[:, 1 * HP:2 * HP])
        g_g = jnp.tanh(gates[:, 2 * HP:3 * HP])
        o_g = jax.nn.sigmoid(gates[:, 3 * HP:4 * HP])
        c = f_g * c + i_g * g_g
        h = o_g * jnp.tanh(c)
        write_h(t, h)
        return (h, c)

    init = (jnp.zeros((B, HP), jnp.float32),   # self.hidden is None -> zero state
            jnp.zeros((B, HP), jnp.float32))
    jax.lax.fori_loop(0, t_len, step, init, unroll=(t_len <= 8))


def _lstm_kernel(gx_ref, whh_ref, o_ref, *, t_len):
    def write(t, h):
        o_ref[t] = h
    _lstm_recurrence(gx_ref, whh_ref, write, t_len)


def _lstm_head_kernel(gx_ref, whh_ref, wo_ref, bo_ref, o_ref, h_all, *, t_len):
    def write(t, h):
        h_all[t] = h
    _lstm_recurrence(gx_ref, whh_ref, write, t_len)

    # Fused bfc_output + log_softmax over the VMEM-resident hidden states.
    B = gx_ref.shape[1]
    h2 = h_all[...].reshape(t_len * B, HP)
    logits = jnp.dot(h2.astype(jnp.bfloat16), wo_ref[...],
                     preferred_element_type=jnp.float32) + bo_ref[...]
    # padded class columns carry a -1e30 bias -> exp underflows to 0, never contribute
    m = jnp.max(logits, axis=1, keepdims=True)
    lse = jnp.log(jnp.sum(jnp.exp(logits - m), axis=1, keepdims=True)) + m
    o_ref[...] = (logits - lse).reshape(t_len, B, NPAD)


def lstm_layer(x_tbd, w_ih, w_hh, b):
    T, B, D = x_tbd.shape
    gx = linear(x_tbd.reshape(T * B, D), w_ih, b).reshape(T, B, 4 * HP)
    return pl.pallas_call(
        functools.partial(_lstm_kernel, t_len=T),
        out_shape=jax.ShapeDtypeStruct((T, B, HP), jnp.float32),
        grid=(1,),
        in_specs=[
            pl.BlockSpec((T, B, 4 * HP), lambda i: (0, 0, 0)),
            pl.BlockSpec((HP, 4 * HP), lambda i: (0, 0)),
        ],
        out_specs=pl.BlockSpec((T, B, HP), lambda i: (0, 0, 0)),
        compiler_params=pltpu.CompilerParams(dimension_semantics=("arbitrary",)),
    )(gx, w_hh)


def lstm_head_layer(x_tbd, w_ih, w_hh, b, wo, bo):
    T, B, D = x_tbd.shape
    gx = linear(x_tbd.reshape(T * B, D), w_ih, b).reshape(T, B, 4 * HP)
    return pl.pallas_call(
        functools.partial(_lstm_head_kernel, t_len=T),
        out_shape=jax.ShapeDtypeStruct((T, B, NPAD), jnp.float32),
        grid=(1,),
        in_specs=[
            pl.BlockSpec((T, B, 4 * HP), lambda i: (0, 0, 0)),
            pl.BlockSpec((HP, 4 * HP), lambda i: (0, 0)),
            pl.BlockSpec((HP, NPAD), lambda i: (0, 0)),
            pl.BlockSpec((1, NPAD), lambda i: (0, 0)),
        ],
        out_specs=pl.BlockSpec((T, B, NPAD), lambda i: (0, 0, 0)),
        scratch_shapes=[pltpu.VMEM((T, B, HP), jnp.float32)],
        compiler_params=pltpu.CompilerParams(dimension_semantics=("arbitrary",)),
    )(gx, w_hh, wo, bo)


# ---------------------------------------------------------------------------
# Deterministic parameter initialization (shapes follow RTGR.__init__)
# ---------------------------------------------------------------------------

def _init_dense(key, fan_in, fan_out):
    kw, kb = jax.random.split(key)
    bound = 1.0 / math.sqrt(fan_in)
    w = jax.random.uniform(kw, (fan_in, fan_out), jnp.float32, -bound, bound)
    b = jax.random.uniform(kb, (1, fan_out), jnp.float32, -bound, bound)
    return w.astype(jnp.bfloat16), b          # bf16 MXU operand, f32 bias


def _init_score_vec(key, fan_in):
    kw, kb = jax.random.split(key)
    bound = 1.0 / math.sqrt(fan_in)
    v = jax.random.uniform(kw, (1, fan_in), jnp.float32, -bound, bound)   # Linear(fan_in,1) row layout
    b = jax.random.uniform(kb, (1, 1), jnp.float32, -bound, bound)
    return v, b


def _pad_gate_cols(w, h, hp):
    # (rows, 4h) -> (rows, 4hp), zero-padding each of the i|f|g|o gate blocks.
    rows = w.shape[0]
    return jnp.pad(w.reshape(rows, 4, h), ((0, 0), (0, 0), (0, hp - h))).reshape(rows, 4 * hp)


def init_rtgr_params(key, skl_input_size, hand_flat_size, hidden_dim, n_layers):
    assert hidden_dim <= HP
    keys = iter(jax.random.split(key, 9 + n_layers))
    p = {}
    p["feat"] = _init_dense(next(keys), hand_flat_size, HAND_FEAT)      # ResNet-34 stand-in
    p["skl1"] = _init_dense(next(keys), skl_input_size, SKL_EMB)        # bfc1
    p["skl2"] = _init_dense(next(keys), SKL_EMB, SKL_EMB)               # bfc2
    p["hand_emb"] = _init_dense(next(keys), HAND_FEAT, HAND_EMB)        # bfc3
    p["att1_a"] = _init_dense(next(keys), HAND_FEAT, ATT_HID)           # soft_att
    p["att1_b"] = _init_score_vec(next(keys), ATT_HID)
    p["att2_a"] = _init_dense(next(keys), HAND_EMB, ATT_HID)            # soft_att_info
    p["att2_b"] = _init_score_vec(next(keys), ATT_HID)

    lstm = []
    for layer in range(n_layers):
        din = SKL_EMB if layer == 0 else hidden_dim
        din_pad = SKL_EMB if layer == 0 else HP
        kw1, kw2, kb1, kb2 = jax.random.split(next(keys), 4)
        bound = 1.0 / math.sqrt(hidden_dim)
        w_ih = jax.random.uniform(kw1, (din, 4 * hidden_dim), jnp.float32, -bound, bound)
        w_hh = jax.random.uniform(kw2, (hidden_dim, 4 * hidden_dim), jnp.float32, -bound, bound)
        b_ih = jax.random.uniform(kb1, (1, 4 * hidden_dim), jnp.float32, -bound, bound)
        b_hh = jax.random.uniform(kb2, (1, 4 * hidden_dim), jnp.float32, -bound, bound)
        # Pad hidden to HP: lane-aligned gate slices, MXU-shaped h @ W_hh.  Zero-padded
        # gate columns + zero padded bias keep c/h exactly zero in the padded lanes.
        w_ih_p = jnp.pad(_pad_gate_cols(w_ih, hidden_dim, HP), ((0, din_pad - din), (0, 0)))
        w_hh_p = jnp.pad(_pad_gate_cols(w_hh, hidden_dim, HP), ((0, HP - hidden_dim), (0, 0)))
        b_p = _pad_gate_cols(b_ih + b_hh, hidden_dim, HP)
        lstm.append((w_ih_p.astype(jnp.bfloat16), w_hh_p.astype(jnp.bfloat16), b_p))
    p["lstm"] = lstm

    # bfc_output zero-padded to (HP, NPAD); padded logits get a -1e30 bias so they never
    # contribute to log_softmax while the writeback stays lane-dense.
    kwo, kbo = jax.random.split(next(keys))
    bound = 1.0 / math.sqrt(hidden_dim)
    wo = jax.random.uniform(kwo, (hidden_dim, NCLS), jnp.float32, -bound, bound)
    bo = jax.random.uniform(kbo, (1, NCLS), jnp.float32, -bound, bound)
    wo_p = jnp.pad(wo, ((0, HP - hidden_dim), (0, NPAD - NCLS))).astype(jnp.bfloat16)
    bo_p = jnp.pad(bo, ((0, 0), (0, NPAD - NCLS)), constant_values=-1e30)
    p["out"] = (wo_p, bo_p)
    return p


# ---------------------------------------------------------------------------
# RTGR forward (classifier path: output_size != 2)
# ---------------------------------------------------------------------------

def rtgr_classifier_forward(params, hand, skl):
    # hand: (batch, seq, 2, C, H, W)   skl: (batch, seq, skl_input_size)
    batch, seq = hand.shape[0], hand.shape[1]
    BS = batch * seq
    chw = hand.shape[3] * hand.shape[4] * hand.shape[5]
    # Free reshapes only (no HBM transpose of the largest tensor): the left/right crops
    # become the two lane-contiguous halves of each row.
    hand2 = hand.reshape(BS, 2 * chw).astype(jnp.float32)
    skl2 = skl.reshape(BS, -1).astype(jnp.float32)

    # hand_features + soft_att + hand_embedding + skl_embedding + soft_att_info (one kernel)
    x = frontend(hand2, skl2, params)                                   # (BS, 256)

    # LSTM over the sequence (time-major inside the kernels, hidden padded to HP)
    x = x.reshape(batch, seq, -1).transpose(1, 0, 2)                    # (T, B, 256)
    n_layers = len(params["lstm"])
    for li, (w_ih, w_hh, b) in enumerate(params["lstm"]):
        if li + 1 < n_layers:
            x = lstm_layer(x, w_ih, w_hh, b)                            # (T, B, HP)
        else:
            wo, bo = params["out"]
            x = lstm_head_layer(x, w_ih, w_hh, b, wo, bo)               # (T, B, NPAD) log-probs

    # back to batch-major row order, drop the lane padding -> (B*T, 15)
    out = x[:, :, :NCLS].transpose(1, 0, 2).reshape(BS, NCLS)
    return out


# ---------------------------------------------------------------------------
# Demo
# ---------------------------------------------------------------------------

if __name__ == "__main__":
    batch, seq, N, C, H, W = 2, 4, 2, 3, 16, 16
    skl_input_size = 32
    hidden_dim = 32
    n_layers = 2

    key = jax.random.PRNGKey(0)
    kp, kh, ks = jax.random.split(key, 3)
    params = init_rtgr_params(kp, skl_input_size, C * H * W, hidden_dim, n_layers)
    hand = jax.random.normal(kh, (batch, seq, N, C, H, W), jnp.float32)
    skl = jax.random.normal(ks, (batch, seq, skl_input_size), jnp.float32)

    out = rtgr_classifier_forward(params, hand, skl)
    out = jax.block_until_ready(out)

    assert out.shape == (batch * seq, NCLS), out.shape
    # rows of log_softmax must exp-sum to 1
    assert bool(jnp.allclose(jnp.sum(jnp.exp(out), axis=1), 1.0, atol=1e-3))
    print("KERNEL_OK")
</pallas_src>

<mosaic_0001>
module attributes {stable_mosaic.version = 11 : i64} {
  func.func @_frontend_kernel(%arg0: i32, %arg1: memref<8x1536xf32, #tpu.memory_space<vmem>>, %arg2: memref<8x32xf32, #tpu.memory_space<vmem>>, %arg3: memref<768x512xbf16, #tpu.memory_space<vmem>>, %arg4: memref<1x512xf32, #tpu.memory_space<vmem>>, %arg5: memref<512x128xbf16, #tpu.memory_space<vmem>>, %arg6: memref<1x128xf32, #tpu.memory_space<vmem>>, %arg7: memref<1x128xf32, #tpu.memory_space<vmem>>, %arg8: memref<1x1xf32, #tpu.memory_space<vmem>>, %arg9: memref<512x256xbf16, #tpu.memory_space<vmem>>, %arg10: memref<1x256xf32, #tpu.memory_space<vmem>>, %arg11: memref<32x256xbf16, #tpu.memory_space<vmem>>, %arg12: memref<1x256xf32, #tpu.memory_space<vmem>>, %arg13: memref<256x256xbf16, #tpu.memory_space<vmem>>, %arg14: memref<1x256xf32, #tpu.memory_space<vmem>>, %arg15: memref<256x128xbf16, #tpu.memory_space<vmem>>, %arg16: memref<1x128xf32, #tpu.memory_space<vmem>>, %arg17: memref<1x128xf32, #tpu.memory_space<vmem>>, %arg18: memref<1x1xf32, #tpu.memory_space<vmem>>, %arg19: memref<8x256xf32, #tpu.memory_space<vmem>>) attributes {dimension_semantics = [#tpu.dimension_semantics<parallel>], iteration_bounds = array<i64: 1>, scalar_prefetch = 0 : i64, scratch_operands = 0 : i64, tpu.core_type = #tpu.core_type<tc>, window_params = [{transform_indices = @transform_0, window_bounds = array<i64: 8, 1536>}, {transform_indices = @transform_1, window_bounds = array<i64: 8, 32>}, {pipeline_mode = #tpu.pipeline_mode<synchronous>, transform_indices = @transform_2, window_bounds = array<i64: 768, 512>}, {pipeline_mode = #tpu.pipeline_mode<synchronous>, transform_indices = @transform_3, window_bounds = array<i64: 1, 512>}, {pipeline_mode = #tpu.pipeline_mode<synchronous>, transform_indices = @transform_4, window_bounds = array<i64: 512, 128>}, {pipeline_mode = #tpu.pipeline_mode<synchronous>, transform_indices = @transform_5, window_bounds = array<i64: 1, 128>}, {pipeline_mode = #tpu.pipeline_mode<synchronous>, transform_indices = @transform_6, window_bounds = array<i64: 1, 128>}, {pipeline_mode = #tpu.pipeline_mode<synchronous>, transform_indices = @transform_7, window_bounds = array<i64: 1, 1>}, {pipeline_mode = #tpu.pipeline_mode<synchronous>, transform_indices = @transform_8, window_bounds = array<i64: 512, 256>}, {pipeline_mode = #tpu.pipeline_mode<synchronous>, transform_indices = @transform_9, window_bounds = array<i64: 1, 256>}, {pipeline_mode = #tpu.pipeline_mode<synchronous>, transform_indices = @transform_10, window_bounds = array<i64: 32, 256>}, {pipeline_mode = #tpu.pipeline_mode<synchronous>, transform_indices = @transform_11, window_bounds = array<i64: 1, 256>}, {pipeline_mode = #tpu.pipeline_mode<synchronous>, transform_indices = @transform_12, window_bounds = array<i64: 256, 256>}, {pipeline_mode = #tpu.pipeline_mode<synchronous>, transform_indices = @transform_13, window_bounds = array<i64: 1, 256>}, {pipeline_mode = #tpu.pipeline_mode<synchronous>, transform_indices = @transform_14, window_bounds = array<i64: 256, 128>}, {pipeline_mode = #tpu.pipeline_mode<synchronous>, transform_indices = @transform_15, window_bounds = array<i64: 1, 128>}, {pipeline_mode = #tpu.pipeline_mode<synchronous>, transform_indices = @transform_16, window_bounds = array<i64: 1, 128>}, {pipeline_mode = #tpu.pipeline_mode<synchronous>, transform_indices = @transform_17, window_bounds = array<i64: 1, 1>}, {transform_indices = @transform_18, window_bounds = array<i64: 8, 256>}]} {
    %c0 = arith.constant 0 : index
    %c0_0 = arith.constant 0 : index
    %0 = vector.load %arg1[%c0, %c0_0] : memref<8x1536xf32, #tpu.memory_space<vmem>>, vector<8x768xf32>
    %1 = arith.truncf %0 : vector<8x768xf32> to vector<8x768xbf16>
    %c0_1 = arith.constant 0 : index
    %c0_2 = arith.constant 0 : index
    %2 = vector.load %arg3[%c0_1, %c0_2] : memref<768x512xbf16, #tpu.memory_space<vmem>>, vector<768x512xbf16>
    %cst = arith.constant dense<0.000000e+00> : vector<8x512xf32>
    %3 = tpu.matmul %1, %2, %cst {dimension_numbers = #tpu.dot_dimension_numbers<[1], [0], [0], [1], [0, 0, 1, 1], [], []>} : vector<8x768xbf16>, vector<768x512xbf16>, vector<8x512xf32> -> vector<8x512xf32>
    %c0_3 = arith.constant 0 : index
    %c0_4 = arith.constant 0 : index
    %4 = vector.load %arg4[%c0_3, %c0_4] : memref<1x512xf32, #tpu.memory_space<vmem>>, vector<1x512xf32>
    %5 = vector.broadcast %4 : vector<1x512xf32> to vector<8x512xf32>
    %6 = arith.addf %3, %5 : vector<8x512xf32>
    %cst_5 = arith.constant 0.000000e+00 : f32
    %7 = vector.broadcast %cst_5 : f32 to vector<8x512xf32>
    %8 = arith.maximumf %6, %7 : vector<8x512xf32>
    %c0_6 = arith.constant 0 : index
    %c768 = arith.constant 768 : index
    %9 = vector.load %arg1[%c0_6, %c768] : memref<8x1536xf32, #tpu.memory_space<vmem>>, vector<8x768xf32>
    %10 = arith.truncf %9 : vector<8x768xf32> to vector<8x768xbf16>
    %c0_7 = arith.constant 0 : index
    %c0_8 = arith.constant 0 : index
    %11 = vector.load %arg3[%c0_7, %c0_8] : memref<768x512xbf16, #tpu.memory_space<vmem>>, vector<768x512xbf16>
    %cst_9 = arith.constant dense<0.000000e+00> : vector<8x512xf32>
    %12 = tpu.matmul %10, %11, %cst_9 {dimension_numbers = #tpu.dot_dimension_numbers<[1], [0], [0], [1], [0, 0, 1, 1], [], []>} : vector<8x768xbf16>, vector<768x512xbf16>, vector<8x512xf32> -> vector<8x512xf32>
    %c0_10 = arith.constant 0 : index
    %c0_11 = arith.constant 0 : index
    %13 = vector.load %arg4[%c0_10, %c0_11] : memref<1x512xf32, #tpu.memory_space<vmem>>, vector<1x512xf32>
    %14 = vector.broadcast %13 : vector<1x512xf32> to vector<8x512xf32>
    %15 = arith.addf %12, %14 : vector<8x512xf32>
    %cst_12 = arith.constant 0.000000e+00 : f32
    %16 = vector.broadcast %cst_12 : f32 to vector<8x512xf32>
    %17 = arith.maximumf %15, %16 : vector<8x512xf32>
    %18 = arith.truncf %8 : vector<8x512xf32> to vector<8x512xbf16>
    %c0_13 = arith.constant 0 : index
    %c0_14 = arith.constant 0 : index
    %19 = vector.load %arg5[%c0_13, %c0_14] : memref<512x128xbf16, #tpu.memory_space<vmem>>, vector<512x128xbf16>
    %cst_15 = arith.constant dense<0.000000e+00> : vector<8x128xf32>
    %20 = tpu.matmul %18, %19, %cst_15 {dimension_numbers = #tpu.dot_dimension_numbers<[1], [0], [0], [1], [0, 0, 1, 1], [], []>} : vector<8x512xbf16>, vector<512x128xbf16>, vector<8x128xf32> -> vector<8x128xf32>
    %c0_16 = arith.constant 0 : index
    %c0_17 = arith.constant 0 : index
    %21 = vector.load %arg6[%c0_16, %c0_17] : memref<1x128xf32, #tpu.memory_space<vmem>>, vector<1x128xf32>
    %22 = vector.broadcast %21 : vector<1x128xf32> to vector<8x128xf32>
    %23 = arith.addf %20, %22 : vector<8x128xf32>
    %cst_18 = arith.constant 0.000000e+00 : f32
    %24 = vector.broadcast %cst_18 : f32 to vector<8x128xf32>
    %25 = arith.maximumf %23, %24 : vector<8x128xf32>
    %c0_19 = arith.constant 0 : index
    %c0_20 = arith.constant 0 : index
    %26 = vector.load %arg7[%c0_19, %c0_20] : memref<1x128xf32, #tpu.memory_space<vmem>>, vector<1x128xf32>
    %27 = vector.broadcast %26 : vector<1x128xf32> to vector<8x128xf32>
    %28 = arith.mulf %25, %27 : vector<8x128xf32>
    %cst_21 = arith.constant dense<0.000000e+00> : vector<8xf32>
    %29 = vector.multi_reduction <add>, %28, %cst_21 [1] : vector<8x128xf32> to vector<8xf32>
    %30 = vector.shape_cast %29 : vector<8xf32> to vector<8x1xf32>
    %c0_22 = arith.constant 0 : index
    %c0_23 = arith.constant 0 : index
    %31 = vector.load %arg8[%c0_22, %c0_23] : memref<1x1xf32, #tpu.memory_space<vmem>>, vector<1x1xf32>
    %32 = vector.broadcast %31 : vector<1x1xf32> to vector<8x1xf32>
    %33 = arith.addf %30, %32 : vector<8x1xf32>
    %34 = arith.truncf %17 : vector<8x512xf32> to vector<8x512xbf16>
    %c0_24 = arith.constant 0 : index
    %c0_25 = arith.constant 0 : index
    %35 = vector.load %arg5[%c0_24, %c0_25] : memref<512x128xbf16, #tpu.memory_space<vmem>>, vector<512x128xbf16>
    %cst_26 = arith.constant dense<0.000000e+00> : vector<8x128xf32>
    %36 = tpu.matmul %34, %35, %cst_26 {dimension_numbers = #tpu.dot_dimension_numbers<[1], [0], [0], [1], [0, 0, 1, 1], [], []>} : vector<8x512xbf16>, vector<512x128xbf16>, vector<8x128xf32> -> vector<8x128xf32>
    %c0_27 = arith.constant 0 : index
    %c0_28 = arith.constant 0 : index
    %37 = vector.load %arg6[%c0_27, %c0_28] : memref<1x128xf32, #tpu.memory_space<vmem>>, vector<1x128xf32>
    %38 = vector.broadcast %37 : vector<1x128xf32> to vector<8x128xf32>
    %39 = arith.addf %36, %38 : vector<8x128xf32>
    %cst_29 = arith.constant 0.000000e+00 : f32
    %40 = vector.broadcast %cst_29 : f32 to vector<8x128xf32>
    %41 = arith.maximumf %39, %40 : vector<8x128xf32>
    %c0_30 = arith.constant 0 : index
    %c0_31 = arith.constant 0 : index
    %42 = vector.load %arg7[%c0_30, %c0_31] : memref<1x128xf32, #tpu.memory_space<vmem>>, vector<1x128xf32>
    %43 = vector.broadcast %42 : vector<1x128xf32> to vector<8x128xf32>
    %44 = arith.mulf %41, %43 : vector<8x128xf32>
    %cst_32 = arith.constant dense<0.000000e+00> : vector<8xf32>
    %45 = vector.multi_reduction <add>, %44, %cst_32 [1] : vector<8x128xf32> to vector<8xf32>
    %46 = vector.shape_cast %45 : vector<8xf32> to vector<8x1xf32>
    %c0_33 = arith.constant 0 : index
    %c0_34 = arith.constant 0 : index
    %47 = vector.load %arg8[%c0_33, %c0_34] : memref<1x1xf32, #tpu.memory_space<vmem>>, vector<1x1xf32>
    %48 = vector.broadcast %47 : vector<1x1xf32> to vector<8x1xf32>
    %49 = arith.addf %46, %48 : vector<8x1xf32>
    %50 = arith.maximumf %33, %49 : vector<8x1xf32>
    %51 = arith.subf %33, %50 : vector<8x1xf32>
    %52 = math.exp %51 : vector<8x1xf32>
    %53 = arith.subf %49, %50 : vector<8x1xf32>
    %54 = math.exp %53 : vector<8x1xf32>
    %55 = arith.addf %52, %54 : vector<8x1xf32>
    %56 = tpu.reciprocal %55 {approx = true} : vector<8x1xf32> -> vector<8x1xf32>
    %57 = arith.mulf %52, %56 : vector<8x1xf32>
    %58 = vector.broadcast %57 : vector<8x1xf32> to vector<8x512xf32>
    %59 = arith.mulf %58, %8 : vector<8x512xf32>
    %60 = arith.mulf %54, %56 : vector<8x1xf32>
    %61 = vector.broadcast %60 : vector<8x1xf32> to vector<8x512xf32>
    %62 = arith.mulf %61, %17 : vector<8x512xf32>
    %63 = arith.addf %59, %62 : vector<8x512xf32>
    %64 = arith.truncf %63 : vector<8x512xf32> to vector<8x512xbf16>
    %c0_35 = arith.constant 0 : index
    %c0_36 = arith.constant 0 : index
    %65 = vector.load %arg9[%c0_35, %c0_36] : memref<512x256xbf16, #tpu.memory_space<vmem>>, vector<512x256xbf16>
    %cst_37 = arith.constant dense<0.000000e+00> : vector<8x256xf32>
    %66 = tpu.matmul %64, %65, %cst_37 {dimension_numbers = #tpu.dot_dimension_numbers<[1], [0], [0], [1], [0, 0, 1, 1], [], []>} : vector<8x512xbf16>, vector<512x256xbf16>, vector<8x256xf32> -> vector<8x256xf32>
    %c0_38 = arith.constant 0 : index
    %c0_39 = arith.constant 0 : index
    %67 = vector.load %arg10[%c0_38, %c0_39] : memref<1x256xf32, #tpu.memory_space<vmem>>, vector<1x256xf32>
    %68 = vector.broadcast %67 : vector<1x256xf32> to vector<8x256xf32>
    %69 = arith.addf %66, %68 : vector<8x256xf32>
    %cst_40 = arith.constant 0.000000e+00 : f32
    %70 = vector.broadcast %cst_40 : f32 to vector<8x256xf32>
    %71 = arith.maximumf %69, %70 : vector<8x256xf32>
    %c0_41 = arith.constant 0 : index
    %c0_42 = arith.constant 0 : index
    %72 = vector.load %arg2[%c0_41, %c0_42] : memref<8x32xf32, #tpu.memory_space<vmem>>, vector<8x32xf32>
    %73 = arith.truncf %72 : vector<8x32xf32> to vector<8x32xbf16>
    %c0_43 = arith.constant 0 : index
    %c0_44 = arith.constant 0 : index
    %74 = vector.load %arg11[%c0_43, %c0_44] : memref<32x256xbf16, #tpu.memory_space<vmem>>, vector<32x256xbf16>
    %cst_45 = arith.constant dense<0.000000e+00> : vector<8x256xf32>
    %75 = tpu.matmul %73, %74, %cst_45 {dimension_numbers = #tpu.dot_dimension_numbers<[1], [0], [0], [1], [0, 0, 1, 1], [], []>} : vector<8x32xbf16>, vector<32x256xbf16>, vector<8x256xf32> -> vector<8x256xf32>
    %c0_46 = arith.constant 0 : index
    %c0_47 = arith.constant 0 : index
    %76 = vector.load %arg12[%c0_46, %c0_47] : memref<1x256xf32, #tpu.memory_space<vmem>>, vector<1x256xf32>
    %77 = vector.broadcast %76 : vector<1x256xf32> to vector<8x256xf32>
    %78 = arith.addf %75, %77 : vector<8x256xf32>
    %cst_48 = arith.constant 0.000000e+00 : f32
    %79 = vector.broadcast %cst_48 : f32 to vector<8x256xf32>
    %80 = arith.maximumf %78, %79 : vector<8x256xf32>
    %81 = arith.truncf %80 : vector<8x256xf32> to vector<8x256xbf16>
    %c0_49 = arith.constant 0 : index
    %c0_50 = arith.constant 0 : index
    %82 = vector.load %arg13[%c0_49, %c0_50] : memref<256x256xbf16, #tpu.memory_space<vmem>>, vector<256x256xbf16>
    %cst_51 = arith.constant dense<0.000000e+00> : vector<8x256xf32>
    %83 = tpu.matmul %81, %82, %cst_51 {dimension_numbers = #tpu.dot_dimension_numbers<[1], [0], [0], [1], [0, 0, 1, 1], [], []>} : vector<8x256xbf16>, vector<256x256xbf16>, vector<8x256xf32> -> vector<8x256xf32>
    %c0_52 = arith.constant 0 : index
    %c0_53 = arith.constant 0 : index
    %84 = vector.load %arg14[%c0_52, %c0_53] : memref<1x256xf32, #tpu.memory_space<vmem>>, vector<1x256xf32>
    %85 = vector.broadcast %84 : vector<1x256xf32> to vector<8x256xf32>
    %86 = arith.addf %83, %85 : vector<8x256xf32>
    %cst_54 = arith.constant 0.000000e+00 : f32
    %87 = vector.broadcast %cst_54 : f32 to vector<8x256xf32>
    %88 = arith.maximumf %86, %87 : vector<8x256xf32>
    %89 = arith.truncf %71 : vector<8x256xf32> to vector<8x256xbf16>
    %c0_55 = arith.constant 0 : index
    %c0_56 = arith.constant 0 : index
    %90 = vector.load %arg15[%c0_55, %c0_56] : memref<256x128xbf16, #tpu.memory_space<vmem>>, vector<256x128xbf16>
    %cst_57 = arith.constant dense<0.000000e+00> : vector<8x128xf32>
    %91 = tpu.matmul %89, %90, %cst_57 {dimension_numbers = #tpu.dot_dimension_numbers<[1], [0], [0], [1], [0, 0, 1, 1], [], []>} : vector<8x256xbf16>, vector<256x128xbf16>, vector<8x128xf32> -> vector<8x128xf32>
    %c0_58 = arith.constant 0 : index
    %c0_59 = arith.constant 0 : index
    %92 = vector.load %arg16[%c0_58, %c0_59] : memref<1x128xf32, #tpu.memory_space<vmem>>, vector<1x128xf32>
    %93 = vector.broadcast %92 : vector<1x128xf32> to vector<8x128xf32>
    %94 = arith.addf %91, %93 : vector<8x128xf32>
    %cst_60 = arith.constant 0.000000e+00 : f32
    %95 = vector.broadcast %cst_60 : f32 to vector<8x128xf32>
    %96 = arith.maximumf %94, %95 : vector<8x128xf32>
    %c0_61 = arith.constant 0 : index
    %c0_62 = arith.constant 0 : index
    %97 = vector.load %arg17[%c0_61, %c0_62] : memref<1x128xf32, #tpu.memory_space<vmem>>, vector<1x128xf32>
    %98 = vector.broadcast %97 : vector<1x128xf32> to vector<8x128xf32>
    %99 = arith.mulf %96, %98 : vector<8x128xf32>
    %cst_63 = arith.constant dense<0.000000e+00> : vector<8xf32>
    %100 = vector.multi_reduction <add>, %99, %cst_63 [1] : vector<8x128xf32> to vector<8xf32>
    %101 = vector.shape_cast %100 : vector<8xf32> to vector<8x1xf32>
    %c0_64 = arith.constant 0 : index
    %c0_65 = arith.constant 0 : index
    %102 = vector.load %arg18[%c0_64, %c0_65] : memref<1x1xf32, #tpu.memory_space<vmem>>, vector<1x1xf32>
    %103 = vector.broadcast %102 : vector<1x1xf32> to vector<8x1xf32>
    %104 = arith.addf %101, %103 : vector<8x1xf32>
    %105 = arith.truncf %88 : vector<8x256xf32> to vector<8x256xbf16>
    %c0_66 = arith.constant 0 : index
    %c0_67 = arith.constant 0 : index
    %106 = vector.load %arg15[%c0_66, %c0_67] : memref<256x128xbf16, #tpu.memory_space<vmem>>, vector<256x128xbf16>
    %cst_68 = arith.constant dense<0.000000e+00> : vector<8x128xf32>
    %107 = tpu.matmul %105, %106, %cst_68 {dimension_numbers = #tpu.dot_dimension_numbers<[1], [0], [0], [1], [0, 0, 1, 1], [], []>} : vector<8x256xbf16>, vector<256x128xbf16>, vector<8x128xf32> -> vector<8x128xf32>
    %c0_69 = arith.constant 0 : index
    %c0_70 = arith.constant 0 : index
    %108 = vector.load %arg16[%c0_69, %c0_70] : memref<1x128xf32, #tpu.memory_space<vmem>>, vector<1x128xf32>
    %109 = vector.broadcast %108 : vector<1x128xf32> to vector<8x128xf32>
    %110 = arith.addf %107, %109 : vector<8x128xf32>
    %cst_71 = arith.constant 0.000000e+00 : f32
    %111 = vector.broadcast %cst_71 : f32 to vector<8x128xf32>
    %112 = arith.maximumf %110, %111 : vector<8x128xf32>
    %c0_72 = arith.constant 0 : index
    %c0_73 = arith.constant 0 : index
    %113 = vector.load %arg17[%c0_72, %c0_73] : memref<1x128xf32, #tpu.memory_space<vmem>>, vector<1x128xf32>
    %114 = vector.broadcast %113 : vector<1x128xf32> to vector<8x128xf32>
    %115 = arith.mulf %112, %114 : vector<8x128xf32>
    %cst_74 = arith.constant dense<0.000000e+00> : vector<8xf32>
    %116 = vector.multi_reduction <add>, %115, %cst_74 [1] : vector<8x128xf32> to vector<8xf32>
    %117 = vector.shape_cast %116 : vector<8xf32> to vector<8x1xf32>
    %c0_75 = arith.constant 0 : index
    %c0_76 = arith.constant 0 : index
    %118 = vector.load %arg18[%c0_75, %c0_76] : memref<1x1xf32, #tpu.memory_space<vmem>>, vector<1x1xf32>
    %119 = vector.broadcast %118 : vector<1x1xf32> to vector<8x1xf32>
    %120 = arith.addf %117, %119 : vector<8x1xf32>
    %121 = arith.maximumf %104, %120 : vector<8x1xf32>
    %122 = arith.subf %104, %121 : vector<8x1xf32>
    %123 = math.exp %122 : vector<8x1xf32>
    %124 = arith.subf %120, %121 : vector<8x1xf32>
    %125 = math.exp %124 : vector<8x1xf32>
    %126 = arith.addf %123, %125 : vector<8x1xf32>
    %127 = tpu.reciprocal %126 {approx = true} : vector<8x1xf32> -> vector<8x1xf32>
    %128 = arith.mulf %123, %127 : vector<8x1xf32>
    %129 = vector.broadcast %128 : vector<8x1xf32> to vector<8x256xf32>
    %130 = arith.mulf %129, %71 : vector<8x256xf32>
    %131 = arith.mulf %125, %127 : vector<8x1xf32>
    %132 = vector.broadcast %131 : vector<8x1xf32> to vector<8x256xf32>
    %133 = arith.mulf %132, %88 : vector<8x256xf32>
    %134 = arith.addf %130, %133 : vector<8x256xf32>
    %c0_77 = arith.constant 0 : index
    %c0_78 = arith.constant 0 : index
    %135 = vector.load %arg19[%c0_77, %c0_78] : memref<8x256xf32, #tpu.memory_space<vmem>>, vector<8x256xf32>
    tpu.vector_store %arg19[%c0_77, %c0_78], %134 {strides = array<i32>} : memref<8x256xf32, #tpu.memory_space<vmem>>, vector<8x256xf32>,
    return
  }
  func.func @transform_0(%arg0: i32) -> (i32, i32) {
    %c0_i32 = arith.constant 0 : i32
    %c0_i32_0 = arith.constant 0 : i32
    return %arg0, %c0_i32 : i32, i32
  }
  func.func @transform_1(%arg0: i32) -> (i32, i32) {
    %c0_i32 = arith.constant 0 : i32
    %c0_i32_0 = arith.constant 0 : i32
    return %arg0, %c0_i32 : i32, i32
  }
  func.func @transform_2(%arg0: i32) -> (i32, i32) {
    %c0_i32 = arith.constant 0 : i32
    %c0_i32_0 = arith.constant 0 : i32
    %c0_i32_1 = arith.constant 0 : i32
    return %c0_i32, %c0_i32_0 : i32, i32
  }
  func.func @transform_3(%arg0: i32) -> (i32, i32) {
    %c0_i32 = arith.constant 0 : i32
    %c0_i32_0 = arith.constant 0 : i32
    %c0_i32_1 = arith.constant 0 : i32
    return %c0_i32, %c0_i32_0 : i32, i32
  }
  func.func @transform_4(%arg0: i32) -> (i32, i32) {
    %c0_i32 = arith.constant 0 : i32
    %c0_i32_0 = arith.constant 0 : i32
    %c0_i32_1 = arith.constant 0 : i32
    return %c0_i32, %c0_i32_0 : i32, i32
  }
  func.func @transform_5(%arg0: i32) -> (i32, i32) {
    %c0_i32 = arith.constant 0 : i32
    %c0_i32_0 = arith.constant 0 : i32
    %c0_i32_1 = arith.constant 0 : i32
    return %c0_i32, %c0_i32_0 : i32, i32
  }
  func.func @transform_6(%arg0: i32) -> (i32, i32) {
    %c0_i32 = arith.constant 0 : i32
    %c0_i32_0 = arith.constant 0 : i32
    %c0_i32_1 = arith.constant 0 : i32
    return %c0_i32, %c0_i32_0 : i32, i32
  }
  func.func @transform_7(%arg0: i32) -> (i32, i32) {
    %c0_i32 = arith.constant 0 : i32
    %c0_i32_0 = arith.constant 0 : i32
    %c0_i32_1 = arith.constant 0 : i32
    return %c0_i32, %c0_i32_0 : i32, i32
  }
  func.func @transform_8(%arg0: i32) -> (i32, i32) {
    %c0_i32 = arith.constant 0 : i32
    %c0_i32_0 = arith.constant 0 : i32
    %c0_i32_1 = arith.constant 0 : i32
    return %c0_i32, %c0_i32_0 : i32, i32
  }
  func.func @transform_9(%arg0: i32) -> (i32, i32) {
    %c0_i32 = arith.constant 0 : i32
    %c0_i32_0 = arith.constant 0 : i32
    %c0_i32_1 = arith.constant 0 : i32
    return %c0_i32, %c0_i32_0 : i32, i32
  }
  func.func @transform_10(%arg0: i32) -> (i32, i32) {
    %c0_i32 = arith.constant 0 : i32
    %c0_i32_0 = arith.constant 0 : i32
    %c0_i32_1 = arith.constant 0 : i32
    return %c0_i32, %c0_i32_0 : i32, i32
  }
  func.func @transform_11(%arg0: i32) -> (i32, i32) {
    %c0_i32 = arith.constant 0 : i32
    %c0_i32_0 = arith.constant 0 : i32
    %c0_i32_1 = arith.constant 0 : i32
    return %c0_i32, %c0_i32_0 : i32, i32
  }
  func.func @transform_12(%arg0: i32) -> (i32, i32) {
    %c0_i32 = arith.constant 0 : i32
    %c0_i32_0 = arith.constant 0 : i32
    %c0_i32_1 = arith.constant 0 : i32
    return %c0_i32, %c0_i32_0 : i32, i32
  }
  func.func @transform_13(%arg0: i32) -> (i32, i32) {
    %c0_i32 = arith.constant 0 : i32
    %c0_i32_0 = arith.constant 0 : i32
    %c0_i32_1 = arith.constant 0 : i32
    return %c0_i32, %c0_i32_0 : i32, i32
  }
  func.func @transform_14(%arg0: i32) -> (i32, i32) {
    %c0_i32 = arith.constant 0 : i32
    %c0_i32_0 = arith.constant 0 : i32
    %c0_i32_1 = arith.constant 0 : i32
    return %c0_i32, %c0_i32_0 : i32, i32
  }
  func.func @transform_15(%arg0: i32) -> (i32, i32) {
    %c0_i32 = arith.constant 0 : i32
    %c0_i32_0 = arith.constant 0 : i32
    %c0_i32_1 = arith.constant 0 : i32
    return %c0_i32, %c0_i32_0 : i32, i32
  }
  func.func @transform_16(%arg0: i32) -> (i32, i32) {
    %c0_i32 = arith.constant 0 : i32
    %c0_i32_0 = arith.constant 0 : i32
    %c0_i32_1 = arith.constant 0 : i32
    return %c0_i32, %c0_i32_0 : i32, i32
  }
  func.func @transform_17(%arg0: i32) -> (i32, i32) {
    %c0_i32 = arith.constant 0 : i32
    %c0_i32_0 = arith.constant 0 : i32
    %c0_i32_1 = arith.constant 0 : i32
    return %c0_i32, %c0_i32_0 : i32, i32
  }
  func.func @transform_18(%arg0: i32) -> (i32, i32) {
    %c0_i32 = arith.constant 0 : i32
    %c0_i32_0 = arith.constant 0 : i32
    return %arg0, %c0_i32 : i32, i32
  }
}

</mosaic_0001>

<bundles_post_ra>
// kernel: tpu_custom_call.1
= control target key start
LH: loop header
LB: loop body
LE: loop exit
PB: predicated region body
PF: predicated region fallthrough
CT: control target
= control target key end

     0   :  { %s6809_s0 = inlined_call_operand.hbm [shape: f32[8,1536], index: 0, kind: input, shape index: {}]   ;;  %s6810_s1 = inlined_call_operand.hbm [shape: f32[8,32], index: 1, kind: input, shape index: {}]   ;;  %s6811_s2 = inlined_call_operand.hbm [shape: bf16[768,512], index: 2, kind: input, shape index: {}]   ;;  %s6812_s3 = inlined_call_operand.vmem [shape: f32[1,512], index: 3, kind: input, shape index: {}]   ;;  %s6813_s4 = inlined_call_operand.hbm [shape: bf16[512,128], index: 4, kind: input, shape index: {}]   ;;  %s6814_s5 = inlined_call_operand.hbm [shape: f32[1,128], index: 5, kind: input, shape index: {}]   ;;  %s6815_s6 = inlined_call_operand.hbm [shape: f32[1,128], index: 6, kind: input, shape index: {}]   ;;  %s6816_s7 = inlined_call_operand.<no memory space> [shape: f32[1,1], index: 7, kind: input, shape index: {}]   ;;  %s6817_s8 = inlined_call_operand.hbm [shape: bf16[512,256], index: 8, kind: input, shape index: {}]   ;;  %s6818_s9 = inlined_call_operand.vmem [shape: f32[1,256], index: 9, kind: input, shape index: {}]   ;;  %s6819_s10 = inlined_call_operand.hbm [shape: bf16[32,256], index: 10, kind: input, shape index: {}]   ;;  %s6820_s11 = inlined_call_operand.vmem [shape: f32[1,256], index: 11, kind: input, shape index: {}]   ;;  %s6821_s12 = inlined_call_operand.hbm [shape: bf16[256,256], index: 12, kind: input, shape index: {}]   ;;  %s6822_s13 = inlined_call_operand.vmem [shape: f32[1,256], index: 13, kind: input, shape index: {}]   ;;  %s6823_s14 = inlined_call_operand.hbm [shape: bf16[256,128], index: 14, kind: input, shape index: {}]   ;;  %s6824_s15 = inlined_call_operand.vmem [shape: f32[1,128], index: 15, kind: input, shape index: {}]   ;;  %s6825_s16 = inlined_call_operand.vmem [shape: f32[1,128], index: 16, kind: input, shape index: {}]   ;;  %s6826_s18 = inlined_call_operand.hbm [shape: f32[8,256], index: 18, kind: output, shape index: {}]   ;;  %s6827_s17 = inlined_call_operand.<no memory space> [shape: f32[1,1], index: 17, kind: input, shape index: {}]  }
   0x1   :  { %6976 = sst [smem:[#allocation176_spill]] %s6809_s0  ;;  %v23_v0 = vstv %s6816_s7  ;;  %v25_v1 = vstv %s6827_s17 }
   0x2   :  { %6977 = sst [smem:[#allocation177_spill]] %s6810_s1  ;;  %24 = vst [vmem:[#allocation2] sm:$0x1] %v23_v0 }
   0x3   :  { %6978 = sst [smem:[#allocation178_spill]] %s6811_s2  ;;  %26 = vst [vmem:[#allocation3] sm:$0x1] %v25_v1 }
   0x4   :  { %27 = vsyncpa [#allocation5], 0 }
   0x5   :  { %28 = vsyncpa [#allocation8], 0 }
   0x6   :  { %29 = vsyncpa [#allocation11], 0 }
   0x7   :  { %30 = vsyncpa [#allocation14], 0 }
   0x8   :  { %31 = vsyncpa [#allocation17], 0 }
   0x9   :  { %32 = vsyncpa [#allocation20], 0  ;;  %s6979_s1 = sld [smem:[#allocation177_spill]] }
   0xf   :  { %s50_s20 = sshll.u32 %s6979_s1, 4  ;;  %s51_s20 = int_to_ptr.hbm [resolvable:$true] %s50_s20 }
  0x10   :  { %33 = vsyncpa [#allocation6], 0  ;;  %s5547_s21 = smov [#allocation7]   ;;  %s75_s17 = sshll.u32 %s6813_s4, 4  ;;  %s76_s17 = int_to_ptr.hbm [resolvable:$true] %s75_s17 }
  0x11   :  { %s52_s7 = sshll.u32 %s5547_s21, 4  ;;  %s5548_s23 = smov [#allocation10]   ;;  %s53_s7 = int_to_ptr.vmem [resolvable:$true] %s52_s7 }
  0x12   :  { %55 = dma.hbm_to_vmem [thread:$0]  %s51_s20, 128, %s53_s7, [#allocation8]  }
  0x13   :  { %s77_s24 = sshll.u32 %s5548_s23, 4  ;;  %s5549_s25 = smov 64   ;;  %s78_s24 = int_to_ptr.vmem [resolvable:$true] %s77_s24 }
  0x14   :  { %s5550_s26 = smov 4   ;;  %s100_s29 = sshll.u32 %s6815_s6, 4  ;;  %s101_s29 = int_to_ptr.hbm [resolvable:$true] %s100_s29 }
  0x15   :  { %83 = dma.hbm_to_vmem [thread:$0]  %s76_s17, 4096, %s78_s24, [#allocation11], %s5549_s25, %s5549_s25, %s5550_s26  }
  0x16   :  { %s5551_s30 = smov [#allocation13]   ;;  %s127_s1 = sshll.u32 %s6819_s10, 4  ;;  %s128_s1 = int_to_ptr.hbm [resolvable:$true] %s127_s1 }
  0x17   :  { %s102_s0 = sshll.u32 %s5551_s30, 4  ;;  %s5552_s20 = smov [#allocation16]   ;;  %s103_s0 = int_to_ptr.vmem [resolvable:$true] %s102_s0 }
  0x18   :  { %105 = dma.hbm_to_vmem [thread:$0]  %s101_s29, 16, %s103_s0, [#allocation14]  }
  0x19   :  { %s129_s21 = sshll.u32 %s5552_s20, 4  ;;  %s6980_s2 = sld [smem:[#allocation176_spill]]  ;;  %s130_s21 = int_to_ptr.vmem [resolvable:$true] %s129_s21 }
  0x1a   :  { %s5553_s23 = smov 128   ;;  %s5554_s6 = smov 8  }
  0x1b   :  { %135 = dma.hbm_to_vmem [thread:$0]  %s128_s1, 512, %s130_s21, [#allocation17], %s5553_s23, %s5553_s23, %s5554_s6  }
  0x1c   :  { %s6981_s28 = sld [smem:[#allocation178_spill]]  ;;  %s5555_s10 = smov [#allocation4]  }
  0x1d   :  { %s41_s30 = sshll.u32 %s5555_s10, 4  ;;  %s5556_s0 = smov [#allocation9]   ;;  %s42_s30 = int_to_ptr.vmem [resolvable:$true] %s41_s30 }
  0x1e   :  { %s62_s4 = sshll.u32 %s5556_s0, 4  ;;  %s5557_s19 = smov 256   ;;  %s63_s4 = int_to_ptr.vmem [resolvable:$true] %s62_s4 }
  0x1f   :  { %s39_s17 = sshll.u32 %s6980_s2, 4  ;;  %s5558_s20 = smov 16   ;;  %s40_s17 = int_to_ptr.hbm [resolvable:$true] %s39_s17 }
  0x20   :  { %44 = dma.hbm_to_vmem [thread:$0]  %s40_s17, 1536, %s42_s30, [#allocation5]  }
  0x21   :  { %s89_s2 = sshll.u32 %s6814_s5, 4  ;;  %s5559_s1 = smov [#allocation12]   ;;  %s90_s2 = int_to_ptr.hbm [resolvable:$true] %s89_s2 }
  0x22   :  { %s60_s29 = sshll.u32 %s6981_s28, 4  ;;  %s91_s21 = sshll.u32 %s5559_s1, 4  ;;  %s61_s29 = int_to_ptr.hbm [resolvable:$true] %s60_s29  ;;  %s92_s21 = int_to_ptr.vmem [resolvable:$true] %s91_s21 }
  0x23   :  { %68 = dma.hbm_to_vmem [thread:$0]  %s61_s29, 24576, %s63_s4, [#allocation8], %s5557_s19, %s5557_s19, %s5558_s20  }
  0x24   :  { %s112_s28 = sshll.u32 %s6817_s8, 4  ;;  %s5560_s17 = smov [#allocation15]   ;;  %s113_s28 = int_to_ptr.hbm [resolvable:$true] %s112_s28 }
  0x25   :  { %94 = dma.hbm_to_vmem [thread:$0]  %s90_s2, 16, %s92_s21, [#allocation11]  }
  0x26   :  { %s114_s10 = sshll.u32 %s5560_s17, 4  ;;  %s142_s29 = sshll.u32 %s6821_s12, 4  ;;  %s115_s10 = int_to_ptr.vmem [resolvable:$true] %s114_s10  ;;  %s143_s29 = int_to_ptr.hbm [resolvable:$true] %s142_s29 }
  0x27   :  { %120 = dma.hbm_to_vmem [thread:$0]  %s113_s28, 8192, %s115_s10, [#allocation14], %s5553_s23, %s5553_s23, %s5554_s6  }
  0x28   :  { %s157_s19 = sshll.u32 %s6823_s14, 4  ;;  %s5561_s20 = smov [#allocation18]   ;;  %s158_s19 = int_to_ptr.hbm [resolvable:$true] %s157_s19 }
  0x29   :  { %s144_s8 = sshll.u32 %s5561_s20, 4  ;;  %s5562_s7 = smov [#allocation19]   ;;  %s145_s8 = int_to_ptr.vmem [resolvable:$true] %s144_s8 }
  0x2a   :  { %150 = dma.hbm_to_vmem [thread:$0]  %s143_s29, 4096, %s145_s8, [#allocation17], %s5553_s23, %s5553_s23, %s5554_s6  }
  0x2b   :  { %s159_s12 = sshll.u32 %s5562_s7, 4  ;;  %s160_s12 = int_to_ptr.vmem [resolvable:$true] %s159_s12 }
  0x2c   :  { %165 = dma.hbm_to_vmem [thread:$0]  %s158_s19, 2048, %s160_s12, [#allocation20], %s5549_s25, %s5549_s25, %s5550_s26  }
  0x2d   :  { %5533 = dma.done.wait [#allocation5], 1536  }
  0x2e   :  { %5534 = vsyncadd [#allocation5], 4294965760 }
  0x2f   :  { %5535 = dma.done.wait [#allocation8], 24704  }
  0x30   :  { %5536 = vsyncadd [#allocation8], 4294942592 }
  0x31   :  { %5537 = dma.done.wait [#allocation11], 4112  }
  0x32   :  { %5538 = vsyncadd [#allocation11], 4294963184 }
  0x33   :  { %5539 = dma.done.wait [#allocation14], 8208  }
  0x34   :  { %5540 = vsyncadd [#allocation14], 4294959088 }
  0x35   :  { %5541 = dma.done.wait [#allocation17], 4608  }
  0x36   :  { %5542 = vsyncadd [#allocation17], 4294962688 }
  0x37   :  { %5543 = dma.done.wait [#allocation20], 2048  }
  0x38   :  { %5544 = vsyncadd [#allocation20], 4294965248  ;;  %v3643_v2 = vld [vmem:[#allocation9 + $0xe0] sm:$0xf]  ;;  %v4921_v3 = vld [vmem:[#allocation9 + $0xec] sm:$0xf0] }
  0x39   :  { %v3771_v4 = vld [vmem:[#allocation9 + $0x1e0] sm:$0xf]  ;;  %v5711_v5 = vor.u32 %v4921_v3, %v3643_v2  ;;  %v4953_v6 = vld [vmem:[#allocation9 + $0x1ec] sm:$0xf0]  ;;  %vm2986_vm0 = vcmask 261120   ;;  %s3514_s27 = sshll.u32 %s6826_s18, 4  ;;  %s3515_s27 = int_to_ptr.hbm [resolvable:$true] %s3514_s27 }
  0x3a   :  { %v3899_v7 = vld [vmem:[#allocation9 + $0x2e0] sm:$0xf]  ;;  %v4985_v8 = vld [vmem:[#allocation9 + $0x2ec] sm:$0xf0]  ;;  %v5713_v9 = vor.u32 %v4953_v6, %v3771_v4 }
  0x3b   :  { %v5715_v10 = vor.u32 %v4985_v8, %v3899_v7  ;;  %v4027_v11 = vld [vmem:[#allocation9 + $0x3e0] sm:$0xf]  ;;  %v5017_v12 = vld [vmem:[#allocation9 + $0x3ec] sm:$0xf0]  ;;  %1387 = vmatpush.bf16.msra.mxu0 %v5711_v5 }
  0x3c   :  { %v3627_v13 = vld [vmem:[#allocation9 + $0xc0] sm:$0xf]  ;;  %v5718_v14 = vor.u32 %v5017_v12, %v4027_v11  ;;  %v4917_v15 = vld [vmem:[#allocation9 + $0xcc] sm:$0xf0]  ;;  %1400 = vmatpush.bf16.msra.mxu1 %v5713_v9 }
  0x3d   :  { %v3755_v16 = vld [vmem:[#allocation9 + $0x1c0] sm:$0xf]  ;;  %v4949_v17 = vld [vmem:[#allocation9 + $0x1cc] sm:$0xf0]  ;;  %1413 = vmatpush.bf16.msra.mxu2 %v5715_v10  ;;  %v5722_v18 = vor.u32 %v4917_v15, %v3627_v13 }
  0x3e   :  { %v5724_v19 = vor.u32 %v4949_v17, %v3755_v16  ;;  %v3883_v20 = vld [vmem:[#allocation9 + $0x2c0] sm:$0xf]  ;;  %v4981_v21 = vld [vmem:[#allocation9 + $0x2cc] sm:$0xf0]  ;;  %1426 = vmatpush.bf16.msra.mxu3 %v5718_v14 }
  0x3f   :  { %v4011_v22 = vld [vmem:[#allocation9 + $0x3c0] sm:$0xf]  ;;  %v5727_v23 = vor.u32 %v4981_v21, %v3883_v20  ;;  %v5013_v24 = vld [vmem:[#allocation9 + $0x3cc] sm:$0xf0]  ;;  %1388 = vmatpush.bf16.msra.mxu0 %v5722_v18 }
  0x40   :  { %v3611_v25 = vld [vmem:[#allocation9 + $0xa0] sm:$0xf]  ;;  %v4913_v26 = vld [vmem:[#allocation9 + $0xac] sm:$0xf0]  ;;  %v5729_v27 = vor.u32 %v5013_v24, %v4011_v22  ;;  %1401 = vmatpush.bf16.msra.mxu1 %v5724_v19 }
  0x41   :  { %v3739_v28 = vld [vmem:[#allocation9 + $0x1a0] sm:$0xf]  ;;  %v4945_v29 = vld [vmem:[#allocation9 + $0x1ac] sm:$0xf0]  ;;  %v5732_v31 = vor.u32 %v4913_v26, %v3611_v25  ;;  %1414 = vmatpush.bf16.msra.mxu2 %v5727_v23 }
  0x42   :  { %v3867_v30 = vld [vmem:[#allocation9 + $0x2a0] sm:$0xf]  ;;  %v4977_v32 = vld [vmem:[#allocation9 + $0x2ac] sm:$0xf0]  ;;  %v5736_v35 = vor.u32 %v4945_v29, %v3739_v28  ;;  %1427 = vmatpush.bf16.msra.mxu3 %v5729_v27 }
  0x43   :  { %v3995_v33 = vld [vmem:[#allocation9 + $0x3a0] sm:$0xf]  ;;  %v5009_v34 = vld [vmem:[#allocation9 + $0x3ac] sm:$0xf0]  ;;  %v5738_v36 = vor.u32 %v4977_v32, %v3867_v30  ;;  %1389 = vmatpush.bf16.msra.mxu0 %v5732_v31 }
  0x44   :  { %v3595_v37 = vld [vmem:[#allocation9 + $0x80] sm:$0xf]  ;;  %v4909_v38 = vld [vmem:[#allocation9 + $0x8c] sm:$0xf0]  ;;  %v5741_v40 = vor.u32 %v5009_v34, %v3995_v33  ;;  %1402 = vmatpush.bf16.msra.mxu1 %v5736_v35 }
  0x45   :  { %v3723_v39 = vld [vmem:[#allocation9 + $0x180] sm:$0xf]  ;;  %v4941_v41 = vld [vmem:[#allocation9 + $0x18c] sm:$0xf0]  ;;  %v5744_v46 = vor.u32 %v4909_v38, %v3595_v37  ;;  %1415 = vmatpush.bf16.msra.mxu2 %v5738_v36 }
  0x46   :  { %v3851_v42 = vld [vmem:[#allocation9 + $0x280] sm:$0xf]  ;;  %v4973_v43 = vld [vmem:[#allocation9 + $0x28c] sm:$0xf0]  ;;  %v5748_v47 = vor.u32 %v4941_v41, %v3723_v39  ;;  %1428 = vmatpush.bf16.msra.mxu3 %v5741_v40 }
  0x47   :  { %v3979_v44 = vld [vmem:[#allocation9 + $0x380] sm:$0xf]  ;;  %v5005_v45 = vld [vmem:[#allocation9 + $0x38c] sm:$0xf0]  ;;  %v5750_v48 = vor.u32 %v4973_v43, %v3851_v42  ;;  %1390 = vmatpush.bf16.msra.mxu0 %v5744_v46 }
  0x48   :  { %v3579_v49 = vld [vmem:[#allocation9 + $0x60] sm:$0xf]  ;;  %v4905_v50 = vld [vmem:[#allocation9 + $0x6c] sm:$0xf0]  ;;  %v5753_v52 = vor.u32 %v5005_v45, %v3979_v44  ;;  %1403 = vmatpush.bf16.msra.mxu1 %v5748_v47 }
  0x49   :  { %v3707_v51 = vld [vmem:[#allocation9 + $0x160] sm:$0xf]  ;;  %v4937_v53 = vld [vmem:[#allocation9 + $0x16c] sm:$0xf0]  ;;  %v5756_v58 = vor.u32 %v4905_v50, %v3579_v49  ;;  %1416 = vmatpush.bf16.msra.mxu2 %v5750_v48  ;;  %v4919_v50 = vld [vmem:[#allocation9 + $0xe4] sm:$0xf] }
  0x4a   :  { %v3835_v54 = vld [vmem:[#allocation9 + $0x260] sm:$0xf]  ;;  %v4969_v55 = vld [vmem:[#allocation9 + $0x26c] sm:$0xf0]  ;;  %v5760_v59 = vor.u32 %v4937_v53, %v3707_v51  ;;  %1429 = vmatpush.bf16.msra.mxu3 %v5753_v52  ;;  %v3645_v51 = vld [vmem:[#allocation9 + $0xf0] sm:$0xf0] }
  0x4b   :  { %v3963_v56 = vld [vmem:[#allocation9 + $0x360] sm:$0xf]  ;;  %v5001_v57 = vld [vmem:[#allocation9 + $0x36c] sm:$0xf0]  ;;  %v5762_v60 = vor.u32 %v4969_v55, %v3835_v54  ;;  %1391 = vmatpush.bf16.msra.mxu0 %v5756_v58  ;;  %v4951_v55 = vld [vmem:[#allocation9 + $0x1e4] sm:$0xf] }
  0x4c   :  { %v3563_v61 = vld [vmem:[#allocation9 + $0x40] sm:$0xf]  ;;  %v4901_v62 = vld [vmem:[#allocation9 + $0x4c] sm:$0xf0]  ;;  %v5765_v0 = vor.u32 %v5001_v57, %v3963_v56  ;;  %1404 = vmatpush.bf16.msra.mxu1 %v5760_v59  ;;  %v3773_v56 = vld [vmem:[#allocation9 + $0x1f0] sm:$0xf0] }
  0x4d   :  { %v3691_v63 = vld [vmem:[#allocation9 + $0x140] sm:$0xf]  ;;  %v4933_v1 = vld [vmem:[#allocation9 + $0x14c] sm:$0xf0]  ;;  %v5768_v7 = vor.u32 %v4901_v62, %v3563_v61  ;;  %1417 = vmatpush.bf16.msra.mxu2 %v5762_v60 }
  0x4e   :  { %v3819_v2 = vld [vmem:[#allocation9 + $0x240] sm:$0xf]  ;;  %v4965_v3 = vld [vmem:[#allocation9 + $0x24c] sm:$0xf0]  ;;  %v5772_v8 = vor.u32 %v4933_v1, %v3691_v63  ;;  %1430 = vmatpush.bf16.msra.mxu3 %v5765_v0  ;;  %v5807_v63 = vor.u32 %v4919_v50, %v3645_v51  ;;  %v213_v50 = vld [vmem:[#allocation4] sm:$0xff] }
  0x4f   :  { %v3947_v4 = vld [vmem:[#allocation9 + $0x340] sm:$0xf]  ;;  %v4997_v6 = vld [vmem:[#allocation9 + $0x34c] sm:$0xf0]  ;;  %v5774_v11 = vor.u32 %v4965_v3, %v3819_v2  ;;  %1392 = vmatpush.bf16.msra.mxu0 %v5768_v7 }
  0x50   :  { %v3547_v12 = vld [vmem:[#allocation9 + $0x20] sm:$0xf]  ;;  %v4897_v13 = vld [vmem:[#allocation9 + $0x2c] sm:$0xf0]  ;;  %v5777_v16 = vor.u32 %v4997_v6, %v3947_v4  ;;  %1405 = vmatpush.bf16.msra.mxu1 %v5772_v8  ;;  %6984 = vst [vmem:[#allocation31_spill] sm:$0xff] %v5807_v63  ;;  %v5810_v4 = vor.u32 %v4951_v55, %v3773_v56 }
  0x51   :  { %v3675_v15 = vld [vmem:[#allocation9 + $0x120] sm:$0xf]  ;;  %v4929_v17 = vld [vmem:[#allocation9 + $0x12c] sm:$0xf0]  ;;  %v5780_v25 = vor.u32 %v4897_v13, %v3547_v12  ;;  %1418 = vmatpush.bf16.msra.mxu2 %v5774_v11  ;;  %v4915_v12 = vld [vmem:[#allocation9 + $0xc4] sm:$0xf] }
  0x52   :  { %v3803_v20 = vld [vmem:[#allocation9 + $0x220] sm:$0xf]  ;;  %v4961_v21 = vld [vmem:[#allocation9 + $0x22c] sm:$0xf0]  ;;  %v5784_v29 = vor.u32 %v4929_v17, %v3675_v15  ;;  %1431 = vmatpush.bf16.msra.mxu3 %v5777_v16  ;;  %6985 = vst [vmem:[#allocation32_spill] sm:$0xff] %v5810_v4 }
  0x53   :  { %v3931_v22 = vld [vmem:[#allocation9 + $0x320] sm:$0xf]  ;;  %v4993_v24 = vld [vmem:[#allocation9 + $0x32c] sm:$0xf0]  ;;  %v5786_v30 = vor.u32 %v4961_v21, %v3803_v20  ;;  %1393 = vmatpush.bf16.msra.mxu0 %v5780_v25  ;;  %v3629_v13 = vld [vmem:[#allocation9 + $0xd0] sm:$0xf0] }
  0x54   :  { %v3531_v26 = vld [vmem:[#allocation9] sm:$0xf]  ;;  %v4893_v28 = vld [vmem:[#allocation9 + $0xc] sm:$0xf0]  ;;  %v5789_v37 = vor.u32 %v4993_v24, %v3931_v22  ;;  %1406 = vmatpush.bf16.msra.mxu1 %v5784_v29  ;;  %v4947_v15 = vld [vmem:[#allocation9 + $0x1c4] sm:$0xf]  ;;  %v5822_v24 = vor.u32 %v4915_v12, %v3629_v13 }
  0x55   :  { %v3659_v32 = vld [vmem:[#allocation9 + $0x100] sm:$0xf]  ;;  %v4925_v33 = vld [vmem:[#allocation9 + $0x10c] sm:$0xf0]  ;;  %v5792_v45 = vor.u32 %v4893_v28, %v3531_v26  ;;  %1419 = vmatpush.bf16.msra.mxu2 %v5786_v30  ;;  %v3757_v17 = vld [vmem:[#allocation9 + $0x1d0] sm:$0xf0] }
  0x56   :  { %v3787_v34 = vld [vmem:[#allocation9 + $0x200] sm:$0xf]  ;;  %v4957_v38 = vld [vmem:[#allocation9 + $0x20c] sm:$0xf0]  ;;  %v5796_v53 = vor.u32 %v4925_v33, %v3659_v32  ;;  %1432 = vmatpush.bf16.msra.mxu3 %v5789_v37  ;;  %6988 = vst [vmem:[#allocation35_spill] sm:$0xff] %v5822_v24  ;;  %v5825_v33 = vor.u32 %v4947_v15, %v3757_v17 }
  0x57   :  { %v3915_v39 = vld [vmem:[#allocation9 + $0x300] sm:$0xf]  ;;  %v4989_v41 = vld [vmem:[#allocation9 + $0x30c] sm:$0xf0]  ;;  %v5798_v54 = vor.u32 %v4957_v38, %v3787_v34  ;;  %1394 = vmatpush.bf16.msra.mxu0 %v5792_v45  ;;  %v4911_v34 = vld [vmem:[#allocation9 + $0xa4] sm:$0xf] }
  0x58   :  { %v4155_v42 = vld [vmem:[#allocation9 + $0x4e0] sm:$0xf]  ;;  %v5049_v43 = vld [vmem:[#allocation9 + $0x4ec] sm:$0xf0]  ;;  %v5801_v57 = vor.u32 %v4989_v41, %v3915_v39  ;;  %1407 = vmatpush.bf16.msra.mxu1 %v5796_v53  ;;  %6989 = vst [vmem:[#allocation36_spill] sm:$0xff] %v5825_v33 }
  0x59   :  { %v4283_v44 = vld [vmem:[#allocation9 + $0x5e0] sm:$0xf]  ;;  %v5081_v49 = vld [vmem:[#allocation9 + $0x5ec] sm:$0xf0]  ;;  %v5803_v61 = vor.u32 %v5049_v43, %v4155_v42  ;;  %1420 = vmatpush.bf16.msra.mxu2 %v5798_v54  ;;  %v3613_v38 = vld [vmem:[#allocation9 + $0xb0] sm:$0xf0] }
  0x5a   :  { %v5805_v62 = vor.u32 %v5081_v49, %v4283_v44  ;;  %v4139_v1 = vld [vmem:[#allocation9 + $0x4c0] sm:$0xf]  ;;  %v5045_v2 = vld [vmem:[#allocation9 + $0x4cc] sm:$0xf0]  ;;  %1433 = vmatpush.bf16.msra.mxu3 %v5801_v57  ;;  %v4943_v39 = vld [vmem:[#allocation9 + $0x1a4] sm:$0xf]  ;;  %v5834_v51 = vor.u32 %v4911_v34, %v3613_v38 }
  0x5b   :  { %6982 = vst [vmem:[#allocation29_spill] sm:$0xff] %v5803_v61  ;;  %v4267_v3 = vld [vmem:[#allocation9 + $0x5c0] sm:$0xf]  ;;  %v5077_v6 = vld [vmem:[#allocation9 + $0x5cc] sm:$0xf0]  ;;  %1439 = vmatpush.bf16.msrb.mxu0 %v5803_v61  ;;  %v5816_v20 = vor.u32 %v5045_v2, %v4139_v1  ;;  %v215_v49 = vld [vmem:[#allocation4 + $0x10] sm:$0xff]  ;;  %v5838_v2 = vpack.c.bf16 %v213_v50, %v213_v50 }
  0x5c   :  { %6983 = vst [vmem:[#allocation30_spill] sm:$0xff] %v5805_v62  ;;  %v4123_v21 = vld [vmem:[#allocation9 + $0x4a0] sm:$0xf]  ;;  %1452 = vmatpush.bf16.msrb.mxu1 %v5805_v62  ;;  %v5820_v22 = vor.u32 %v5077_v6, %v4267_v3  ;;  %v5041_v26 = vld [vmem:[#allocation9 + $0x4ac] sm:$0xf0]  ;;  %v5836_v1 = vpack.c.bf16 %v215_v49, %v215_v49 }
  0x5d   :  { %6986 = vst [vmem:[#allocation33_spill] sm:$0xff] %v5816_v20  ;;  %1465 = vmatpush.bf16.msrb.mxu2 %v5807_v63  ;;  %v4251_v28 = vld [vmem:[#allocation9 + $0x5a0] sm:$0xf]  ;;  %v5073_v32 = vld [vmem:[#allocation9 + $0x5ac] sm:$0xf0]  ;;  %v5828_v42 = vor.u32 %v5041_v26, %v4123_v21  ;;  %1395 = vmatmul.bf16.vlgmr.msra.gmra.mxu0 %v5838_v2 }
  0x5e   :  { %6987 = vst [vmem:[#allocation34_spill] sm:$0xff] %v5820_v22  ;;  %1478 = vmatpush.bf16.msrb.mxu3 %v5810_v4  ;;  %v3741_v41 = vld [vmem:[#allocation9 + $0x1b0] sm:$0xf0]  ;;  %v5830_v43 = vor.u32 %v5073_v32, %v4251_v28  ;;  %v4107_v44 = vld [vmem:[#allocation9 + $0x480] sm:$0xf]  ;;  %1421 = vmatmul.bf16.vlgmr.msra.gmra.mxu2 %v5836_v1 }
  0x5f   :  { %1440 = vmatpush.bf16.msrb.mxu0 %v5816_v20  ;;  %6990 = vst [vmem:[#allocation37_spill] sm:$0xff] %v5828_v42  ;;  %v5037_v55 = vld [vmem:[#allocation9 + $0x48c] sm:$0xf0]  ;;  %v4235_v56 = vld [vmem:[#allocation9 + $0x580] sm:$0xf]  ;;  %v5841_v6 = vor.u32 %v4943_v39, %v3741_v41 }
  0x60   :  { %6991 = vst [vmem:[#allocation38_spill] sm:$0xff] %v5830_v43  ;;  %1453 = vmatpush.bf16.msrb.mxu1 %v5820_v22  ;;  %v216_v3 = vld [vmem:[#allocation4 + $0x18] sm:$0xff]  ;;  %v4907_v13 = vld [vmem:[#allocation9 + $0x84] sm:$0xf]  ;;  %v5848_v28 = vor.u32 %v5037_v55, %v4107_v44  ;;  %v4091_v39 = vld [vmem:[#allocation9 + $0x460] sm:$0xf] }
  0x61   :  { %1466 = vmatpush.bf16.msrb.mxu2 %v5822_v24  ;;  %6992 = vst [vmem:[#allocation39_spill] sm:$0xff] %v5834_v51  ;;  %v5069_v12 = vld [vmem:[#allocation9 + $0x58c] sm:$0xf0]  ;;  %v3597_v15 = vld [vmem:[#allocation9 + $0x90] sm:$0xf0]  ;;  %v5843_v17 = vpack.c.bf16 %v216_v3, %v216_v3  ;;  %v214_v32 = vld [vmem:[#allocation4 + $0x8] sm:$0xff] }
  0x62   :  { %1479 = vmatpush.bf16.msrb.mxu3 %v5825_v33  ;;  %6993 = vst [vmem:[#allocation40_spill] sm:$0xff] %v5841_v6  ;;  %v4939_v21 = vld [vmem:[#allocation9 + $0x184] sm:$0xf]  ;;  %v3725_v26 = vld [vmem:[#allocation9 + $0x190] sm:$0xf0]  ;;  %v5853_v34 = vor.u32 %v5069_v12, %v4235_v56  ;;  %v5855_v38 = vor.u32 %v4907_v13, %v3597_v15  ;;  %v5857_v50 = vpack.c.bf16 %v214_v32, %v214_v32 }
  0x63   :  { %1441 = vmatpush.bf16.msrb.mxu0 %v5828_v42  ;;  %6994 = vst [vmem:[#allocation41_spill] sm:$0xff] %v5848_v28  ;;  %1434 = vmatmul.bf16.vlgmr.msra.gmra.mxu3 %v5843_v17  ;;  %v5033_v41 = vld [vmem:[#allocation9 + $0x46c] sm:$0xf0]  ;;  %v4219_v49 = vld [vmem:[#allocation9 + $0x560] sm:$0xf]  ;;  %v5860_v44 = vor.u32 %v4939_v21, %v3725_v26 }
  0x64   :  { %1454 = vmatpush.bf16.msrb.mxu1 %v5830_v43  ;;  %6995 = vst [vmem:[#allocation42_spill] sm:$0xff] %v5853_v34  ;;  %v5065_v55 = vld [vmem:[#allocation9 + $0x56c] sm:$0xf0]  ;;  %v4903_v3 = vld [vmem:[#allocation9 + $0x64] sm:$0xf]  ;;  %v5864_v56 = vor.u32 %v5033_v41, %v4091_v39 }
  0x65   :  { %1467 = vmatpush.bf16.msrb.mxu2 %v5834_v51  ;;  %6996 = vst [vmem:[#allocation43_spill] sm:$0xff] %v5855_v38  ;;  %v3581_v42 = vld [vmem:[#allocation9 + $0x70] sm:$0xf0]  ;;  %v4935_v33 = vld [vmem:[#allocation9 + $0x164] sm:$0xf]  ;;  %1408 = vmatmul.bf16.vlgmr.msra.gmra.mxu1 %v5857_v50  ;;  %v5868_v12 = vor.u32 %v5065_v55, %v4219_v49 }
  0x66   :  { %1480 = vmatpush.bf16.msrb.mxu3 %v5841_v6  ;;  %6997 = vst [vmem:[#allocation44_spill] sm:$0xff] %v5860_v44  ;;  %v3709_v43 = vld [vmem:[#allocation9 + $0x170] sm:$0xf0]  ;;  %v5870_v13 = vor.u32 %v4903_v3, %v3581_v42  ;;  %v4075_v15 = vld [vmem:[#allocation9 + $0x440] sm:$0xf] }
  0x67   :  { %1442 = vmatpush.bf16.msrb.mxu0 %v5848_v28  ;;  %6998 = vst [vmem:[#allocation45_spill] sm:$0xff] %v5864_v56  ;;  %v5029_v21 = vld [vmem:[#allocation9 + $0x44c] sm:$0xf0]  ;;  %v4203_v26 = vld [vmem:[#allocation9 + $0x540] sm:$0xf]  ;;  %v5873_v32 = vor.u32 %v4935_v33, %v3709_v43 }
  0x68   :  { %1455 = vmatpush.bf16.msrb.mxu1 %v5853_v34  ;;  %6999 = vst [vmem:[#allocation46_spill] sm:$0xff] %v5868_v12  ;;  %v5061_v6 = vld [vmem:[#allocation9 + $0x54c] sm:$0xf0]  ;;  %v4899_v51 = vld [vmem:[#allocation9 + $0x44] sm:$0xf]  ;;  %v5876_v34 = vor.u32 %v5029_v21, %v4075_v15 }
  0x69   :  { %1468 = vmatpush.bf16.msrb.mxu2 %v5855_v38  ;;  %7000 = vst [vmem:[#allocation47_spill] sm:$0xff] %v5870_v13  ;;  %v3565_v28 = vld [vmem:[#allocation9 + $0x50] sm:$0xf0]  ;;  %v4931_v39 = vld [vmem:[#allocation9 + $0x144] sm:$0xf]  ;;  %v5880_v42 = vor.u32 %v5061_v6, %v4203_v26 }
  0x6a   :  { %1481 = vmatpush.bf16.msrb.mxu3 %v5860_v44  ;;  %7001 = vst [vmem:[#allocation48_spill] sm:$0xff] %v5873_v32  ;;  %v3693_v41 = vld [vmem:[#allocation9 + $0x150] sm:$0xf0]  ;;  %v5882_v49 = vor.u32 %v4899_v51, %v3565_v28  ;;  %v4059_v55 = vld [vmem:[#allocation9 + $0x420] sm:$0xf] }
  0x6b   :  { %1443 = vmatpush.bf16.msrb.mxu0 %v5864_v56  ;;  %7002 = vst [vmem:[#allocation49_spill] sm:$0xff] %v5876_v34  ;;  %v5025_v33 = vld [vmem:[#allocation9 + $0x42c] sm:$0xf0]  ;;  %v4187_v43 = vld [vmem:[#allocation9 + $0x520] sm:$0xf]  ;;  %v5885_v3 = vor.u32 %v4931_v39, %v3693_v41 }
  0x6c   :  { %1456 = vmatpush.bf16.msrb.mxu1 %v5868_v12  ;;  %7003 = vst [vmem:[#allocation50_spill] sm:$0xff] %v5880_v42  ;;  %v5057_v44 = vld [vmem:[#allocation9 + $0x52c] sm:$0xf0]  ;;  %v4895_v38 = vld [vmem:[#allocation9 + $0x24] sm:$0xf]  ;;  %v5888_v12 = vor.u32 %v5025_v33, %v4059_v55 }
  0x6d   :  { %1469 = vmatpush.bf16.msrb.mxu2 %v5870_v13  ;;  %7004 = vst [vmem:[#allocation51_spill] sm:$0xff] %v5882_v49  ;;  %v3549_v56 = vld [vmem:[#allocation9 + $0x30] sm:$0xf0]  ;;  %v4927_v15 = vld [vmem:[#allocation9 + $0x124] sm:$0xf]  ;;  %v5892_v51 = vor.u32 %v5057_v44, %v4187_v43 }
  0x6e   :  { %1482 = vmatpush.bf16.msrb.mxu3 %v5873_v32  ;;  %7005 = vst [vmem:[#allocation52_spill] sm:$0xff] %v5885_v3  ;;  %v3677_v21 = vld [vmem:[#allocation9 + $0x130] sm:$0xf0]  ;;  %v4043_v6 = vld [vmem:[#allocation9 + $0x400] sm:$0xf]  ;;  %v5894_v28 = vor.u32 %v4895_v38, %v3549_v56 }
  0x6f   :  { %1444 = vmatpush.bf16.msrb.mxu0 %v5876_v34  ;;  %7006 = vst [vmem:[#allocation53_spill] sm:$0xff] %v5888_v12  ;;  %v5021_v26 = vld [vmem:[#allocation9 + $0x40c] sm:$0xf0]  ;;  %v4171_v39 = vld [vmem:[#allocation9 + $0x500] sm:$0xf]  ;;  %v5897_v13 = vor.u32 %v4927_v15, %v3677_v21 }
  0x70   :  { %1457 = vmatpush.bf16.msrb.mxu1 %v5880_v42  ;;  %7007 = vst [vmem:[#allocation54_spill] sm:$0xff] %v5892_v51  ;;  %v5053_v41 = vld [vmem:[#allocation9 + $0x50c] sm:$0xf0]  ;;  %v4891_v32 = vld [vmem:[#allocation9 + $0x4] sm:$0xf]  ;;  %v217_v42 = vld [vmem:[#allocation4 + $0x20] sm:$0xff] }
  0x71   :  { %1470 = vmatpush.bf16.msrb.mxu2 %v5882_v49  ;;  %7008 = vst [vmem:[#allocation55_spill] sm:$0xff] %v5894_v28  ;;  %v3533_v34 = vld [vmem:[#allocation9 + $0x10] sm:$0xf0]  ;;  %v4923_v55 = vld [vmem:[#allocation9 + $0x104] sm:$0xf]  ;;  %v5900_v49 = vor.u32 %v5021_v26, %v4043_v6  ;;  %v5904_v43 = vor.u32 %v5053_v41, %v4171_v39 }
  0x72   :  { %1483 = vmatpush.bf16.msrb.mxu3 %v5885_v3  ;;  %7009 = vst [vmem:[#allocation56_spill] sm:$0xff] %v5897_v13  ;;  %v3661_v33 = vld [vmem:[#allocation9 + $0x110] sm:$0xf0]  ;;  %v4983_v24 = vld [vmem:[#allocation9 + $0x2e4] sm:$0xf]  ;;  %v5906_v15 = vor.u32 %v4891_v32, %v3533_v34 }
  0x73   :  { %v3901_v22 = vld [vmem:[#allocation9 + $0x2f0] sm:$0xf0]  ;;  %v5015_v20 = vld [vmem:[#allocation9 + $0x3e4] sm:$0xf]  ;;  %1445 = vmatpush.bf16.msrb.mxu0 %v5888_v12  ;;  %7010 = vst [vmem:[#allocation57_spill] sm:$0xff] %v5900_v49  ;;  %v5909_v4 = vor.u32 %v4923_v55, %v3661_v33 }
  0x74   :  { %v4029_v44 = vld [vmem:[#allocation9 + $0x3f0] sm:$0xf0]  ;;  %v5047_v38 = vld [vmem:[#allocation9 + $0x4e4] sm:$0xf]  ;;  %1458 = vmatpush.bf16.msrb.mxu1 %v5892_v51  ;;  %7011 = vst [vmem:[#allocation58_spill] sm:$0xff] %v5904_v43  ;;  %v5911_v6 = vor.u32 %v4983_v24, %v3901_v22 }
  0x75   :  { %v4157_v56 = vld [vmem:[#allocation9 + $0x4f0] sm:$0xf0]  ;;  %1471 = vmatpush.bf16.msrb.mxu2 %v5894_v28  ;;  %7012 = vst [vmem:[#allocation59_spill] sm:$0xff] %v5906_v15  ;;  %v5079_v21 = vld [vmem:[#allocation9 + $0x5e4] sm:$0xf]  ;;  %v5913_v12 = vor.u32 %v5015_v20, %v4029_v44 }
  0x76   :  { %v4285_v3 = vld [vmem:[#allocation9 + $0x5f0] sm:$0xf0]  ;;  %1484 = vmatpush.bf16.msrb.mxu3 %v5897_v13  ;;  %7013 = vst [vmem:[#allocation60_spill] sm:$0xff] %v5909_v4  ;;  %v218_v26 = vld [vmem:[#allocation4 + $0x28] sm:$0xff]  ;;  %v5915_v63 = vor.u32 %v5047_v38, %v4157_v56  ;;  %v5920_v13 = vpack.c.bf16 %v217_v42, %v217_v42  ;;  %v3763_v61 = vld [vmem:[#allocation9 + $0x1c8] sm:$0xf] }
  0x77   :  { %7014 = vst [vmem:[#allocation61_spill] sm:$0xff] %v5911_v6  ;;  %v4979_v51 = vld [vmem:[#allocation9 + $0x2c4] sm:$0xf]  ;;  %v3885_v28 = vld [vmem:[#allocation9 + $0x2d0] sm:$0xf0]  ;;  %1446 = vmatpush.bf16.msrb.mxu0 %v5900_v49  ;;  %v5918_v34 = vor.u32 %v5079_v21, %v4285_v3  ;;  %v5924_v24 = vpack.c.bf16 %v218_v26, %v218_v26 }
  0x78   :  { %7015 = vst [vmem:[#allocation62_spill] sm:$0xff] %v5913_v12  ;;  %v5011_v39 = vld [vmem:[#allocation9 + $0x3c4] sm:$0xf]  ;;  %v4013_v32 = vld [vmem:[#allocation9 + $0x3d0] sm:$0xf0]  ;;  %1459 = vmatpush.bf16.msrb.mxu1 %v5904_v43  ;;  %v5928_v55 = vor.u32 %v4979_v51, %v3885_v28 }
  0x79   :  { %7016 = vst [vmem:[#allocation63_spill] sm:$0xff] %v5915_v63  ;;  %v5043_v41 = vld [vmem:[#allocation9 + $0x4c4] sm:$0xf]  ;;  %v4141_v62 = vld [vmem:[#allocation9 + $0x4d0] sm:$0xf0]  ;;  %1472 = vmatpush.bf16.msrb.mxu2 %v5906_v15  ;;  %v5932_v42 = vor.u32 %v5011_v39, %v4013_v32 }
  0x7a   :  { %7017 = vst [vmem:[#allocation64_spill] sm:$0xff] %v5918_v34  ;;  %v5075_v20 = vld [vmem:[#allocation9 + $0x5c4] sm:$0xf]  ;;  %v4269_v22 = vld [vmem:[#allocation9 + $0x5d0] sm:$0xf0]  ;;  %1485 = vmatpush.bf16.msrb.mxu3 %v5909_v4  ;;  %v5934_v3 = vor.u32 %v5043_v41, %v4141_v62  ;;  %1447 = vmatmul.bf16.vlgmr.msrb.gmra.mxu0 %v5920_v13 }
  0x7b   :  { %1491 = vmatpush.bf16.msra.mxu0 %v5911_v6  ;;  %7018 = vst [vmem:[#allocation65_spill] sm:$0xff] %v5928_v55  ;;  %v4975_v33 = vld [vmem:[#allocation9 + $0x2a4] sm:$0xf]  ;;  %v3869_v44 = vld [vmem:[#allocation9 + $0x2b0] sm:$0xf0]  ;;  %v5937_v56 = vor.u32 %v5075_v20, %v4269_v22  ;;  %1460 = vmatmul.bf16.vlgmr.msrb.gmra.mxu1 %v5924_v24 }
  0x7c   :  { %1504 = vmatpush.bf16.msra.mxu1 %v5913_v12  ;;  %7019 = vst [vmem:[#allocation66_spill] sm:$0xff] %v5932_v42  ;;  %v5007_v38 = vld [vmem:[#allocation9 + $0x3a4] sm:$0xf]  ;;  %v3997_v21 = vld [vmem:[#allocation9 + $0x3b0] sm:$0xf0]  ;;  %1473 = vmatmul.bf16.vlgmr.msrb.gmra.mxu2 %v5838_v2  ;;  %v5943_v62 = vor.u32 %v4975_v33, %v3869_v44 }
  0x7d   :  { %1517 = vmatpush.bf16.msra.mxu2 %v5915_v63  ;;  %7020 = vst [vmem:[#allocation67_spill] sm:$0xff] %v5934_v3  ;;  %v5039_v26 = vld [vmem:[#allocation9 + $0x4a4] sm:$0xf]  ;;  %v4125_v6 = vld [vmem:[#allocation9 + $0x4b0] sm:$0xf0]  ;;  %1486 = vmatmul.bf16.vlgmr.msrb.gmra.mxu3 %v5857_v50  ;;  %v5948_v39 = vor.u32 %v5007_v38, %v3997_v21 }
  0x7e   :  { %1530 = vmatpush.bf16.msra.mxu3 %v5918_v34  ;;  %7021 = vst [vmem:[#allocation68_spill] sm:$0xff] %v5937_v56  ;;  %v5071_v51 = vld [vmem:[#allocation9 + $0x5a4] sm:$0xf]  ;;  %v4253_v28 = vld [vmem:[#allocation9 + $0x5b0] sm:$0xf0]  ;;  %v5950_v32 = vor.u32 %v5039_v26, %v4125_v6 }
  0x7f   :  { %1492 = vmatpush.bf16.msra.mxu0 %v5928_v55  ;;  %7022 = vst [vmem:[#allocation69_spill] sm:$0xff] %v5943_v62  ;;  %v4971_v41 = vld [vmem:[#allocation9 + $0x284] sm:$0xf]  ;;  %v3853_v20 = vld [vmem:[#allocation9 + $0x290] sm:$0xf0]  ;;  %v5953_v34 = vor.u32 %v5071_v51, %v4253_v28 }
  0x80   :  { %1505 = vmatpush.bf16.msra.mxu1 %v5932_v42  ;;  %7023 = vst [vmem:[#allocation70_spill] sm:$0xff] %v5948_v39  ;;  %v5003_v22 = vld [vmem:[#allocation9 + $0x384] sm:$0xf]  ;;  %v3981_v55 = vld [vmem:[#allocation9 + $0x390] sm:$0xf0]  ;;  %v5956_v42 = vor.u32 %v4971_v41, %v3853_v20 }
  0x81   :  { %1518 = vmatpush.bf16.msra.mxu2 %v5934_v3  ;;  %7024 = vst [vmem:[#allocation71_spill] sm:$0xff] %v5950_v32  ;;  %v5035_v33 = vld [vmem:[#allocation9 + $0x484] sm:$0xf]  ;;  %v4109_v44 = vld [vmem:[#allocation9 + $0x490] sm:$0xf0]  ;;  %v5960_v6 = vor.u32 %v5003_v22, %v3981_v55 }
  0x82   :  { %1531 = vmatpush.bf16.msra.mxu3 %v5937_v56  ;;  %7025 = vst [vmem:[#allocation72_spill] sm:$0xff] %v5953_v34  ;;  %v5067_v63 = vld [vmem:[#allocation9 + $0x584] sm:$0xf]  ;;  %v4237_v12 = vld [vmem:[#allocation9 + $0x590] sm:$0xf0]  ;;  %v5962_v38 = vor.u32 %v5035_v33, %v4109_v44 }
  0x83   :  { %1493 = vmatpush.bf16.msra.mxu0 %v5943_v62  ;;  %7026 = vst [vmem:[#allocation73_spill] sm:$0xff] %v5956_v42  ;;  %v4967_v21 = vld [vmem:[#allocation9 + $0x264] sm:$0xf]  ;;  %v3837_v26 = vld [vmem:[#allocation9 + $0x270] sm:$0xf0]  ;;  %v5965_v28 = vor.u32 %v5067_v63, %v4237_v12 }
  0x84   :  { %1506 = vmatpush.bf16.msra.mxu1 %v5948_v39  ;;  %7027 = vst [vmem:[#allocation74_spill] sm:$0xff] %v5960_v6  ;;  %v4999_v51 = vld [vmem:[#allocation9 + $0x364] sm:$0xf]  ;;  %v3965_v56 = vld [vmem:[#allocation9 + $0x370] sm:$0xf0]  ;;  %v5968_v39 = vor.u32 %v4967_v21, %v3837_v26 }
  0x85   :  { %1519 = vmatpush.bf16.msra.mxu2 %v5950_v32  ;;  %7028 = vst [vmem:[#allocation75_spill] sm:$0xff] %v5962_v38  ;;  %v5031_v3 = vld [vmem:[#allocation9 + $0x464] sm:$0xf]  ;;  %v4093_v62 = vld [vmem:[#allocation9 + $0x470] sm:$0xf0]  ;;  %v5972_v55 = vor.u32 %v4999_v51, %v3965_v56 }
  0x86   :  { %1532 = vmatpush.bf16.msra.mxu3 %v5953_v34  ;;  %7029 = vst [vmem:[#allocation76_spill] sm:$0xff] %v5965_v28  ;;  %v5063_v41 = vld [vmem:[#allocation9 + $0x564] sm:$0xf]  ;;  %v4221_v20 = vld [vmem:[#allocation9 + $0x570] sm:$0xf0]  ;;  %v5974_v22 = vor.u32 %v5031_v3, %v4093_v62 }
  0x87   :  { %1494 = vmatpush.bf16.msra.mxu0 %v5956_v42  ;;  %7030 = vst [vmem:[#allocation77_spill] sm:$0xff] %v5968_v39  ;;  %v4963_v33 = vld [vmem:[#allocation9 + $0x244] sm:$0xf]  ;;  %v3821_v63 = vld [vmem:[#allocation9 + $0x250] sm:$0xf0]  ;;  %v5977_v44 = vor.u32 %v5063_v41, %v4221_v20 }
  0x88   :  { %1507 = vmatpush.bf16.msra.mxu1 %v5960_v6  ;;  %7031 = vst [vmem:[#allocation78_spill] sm:$0xff] %v5972_v55  ;;  %v4995_v12 = vld [vmem:[#allocation9 + $0x344] sm:$0xf]  ;;  %v3949_v34 = vld [vmem:[#allocation9 + $0x350] sm:$0xf0]  ;;  %v5980_v6 = vor.u32 %v4963_v33, %v3821_v63 }
  0x89   :  { %1520 = vmatpush.bf16.msra.mxu2 %v5962_v38  ;;  %7032 = vst [vmem:[#allocation79_spill] sm:$0xff] %v5974_v22  ;;  %v5027_v32 = vld [vmem:[#allocation9 + $0x444] sm:$0xf]  ;;  %v4077_v42 = vld [vmem:[#allocation9 + $0x450] sm:$0xf0]  ;;  %v5984_v3 = vor.u32 %v4995_v12, %v3949_v34 }
  0x8a   :  { %1533 = vmatpush.bf16.msra.mxu3 %v5965_v28  ;;  %7033 = vst [vmem:[#allocation80_spill] sm:$0xff] %v5977_v44  ;;  %v5059_v21 = vld [vmem:[#allocation9 + $0x544] sm:$0xf]  ;;  %v4205_v26 = vld [vmem:[#allocation9 + $0x550] sm:$0xf0]  ;;  %v5986_v62 = vor.u32 %v5027_v32, %v4077_v42 }
  0x8b   :  { %1495 = vmatpush.bf16.msra.mxu0 %v5968_v39  ;;  %7034 = vst [vmem:[#allocation81_spill] sm:$0xff] %v5980_v6  ;;  %v4959_v56 = vld [vmem:[#allocation9 + $0x224] sm:$0xf]  ;;  %v3805_v51 = vld [vmem:[#allocation9 + $0x230] sm:$0xf0]  ;;  %v5989_v38 = vor.u32 %v5059_v21, %v4205_v26 }
  0x8c   :  { %1508 = vmatpush.bf16.msra.mxu1 %v5972_v55  ;;  %7035 = vst [vmem:[#allocation82_spill] sm:$0xff] %v5984_v3  ;;  %v4991_v41 = vld [vmem:[#allocation9 + $0x324] sm:$0xf]  ;;  %v3933_v20 = vld [vmem:[#allocation9 + $0x330] sm:$0xf0]  ;;  %v5992_v55 = vor.u32 %v4959_v56, %v3805_v51 }
  0x8d   :  { %1521 = vmatpush.bf16.msra.mxu2 %v5974_v22  ;;  %7036 = vst [vmem:[#allocation83_spill] sm:$0xff] %v5986_v62  ;;  %v5023_v28 = vld [vmem:[#allocation9 + $0x424] sm:$0xf]  ;;  %v4061_v39 = vld [vmem:[#allocation9 + $0x430] sm:$0xf0]  ;;  %v5996_v42 = vor.u32 %v4991_v41, %v3933_v20 }
  0x8e   :  { %1534 = vmatpush.bf16.msra.mxu3 %v5977_v44  ;;  %7037 = vst [vmem:[#allocation84_spill] sm:$0xff] %v5989_v38  ;;  %v5055_v33 = vld [vmem:[#allocation9 + $0x524] sm:$0xf]  ;;  %v4189_v63 = vld [vmem:[#allocation9 + $0x530] sm:$0xf0]  ;;  %v5998_v32 = vor.u32 %v5023_v28, %v4061_v39 }
  0x8f   :  { %v4955_v4 = vld [vmem:[#allocation9 + $0x204] sm:$0xf]  ;;  %v3789_v15 = vld [vmem:[#allocation9 + $0x210] sm:$0xf0]  ;;  %1496 = vmatpush.bf16.msra.mxu0 %v5980_v6  ;;  %7038 = vst [vmem:[#allocation85_spill] sm:$0xff] %v5992_v55  ;;  %v6001_v22 = vor.u32 %v5055_v33, %v4189_v63 }
  0x90   :  { %v4987_v34 = vld [vmem:[#allocation9 + $0x304] sm:$0xf]  ;;  %v3917_v12 = vld [vmem:[#allocation9 + $0x310] sm:$0xf0]  ;;  %1509 = vmatpush.bf16.msra.mxu1 %v5984_v3  ;;  %7039 = vst [vmem:[#allocation86_spill] sm:$0xff] %v5996_v42  ;;  %v6004_v3 = vor.u32 %v4955_v4, %v3789_v15 }
  0x91   :  { %1522 = vmatpush.bf16.msra.mxu2 %v5986_v62  ;;  %7040 = vst [vmem:[#allocation87_spill] sm:$0xff] %v5998_v32  ;;  %v5019_v21 = vld [vmem:[#allocation9 + $0x404] sm:$0xf]  ;;  %v4045_v26 = vld [vmem:[#allocation9 + $0x410] sm:$0xf0]  ;;  %v6008_v39 = vor.u32 %v4987_v34, %v3917_v12 }
  0x92   :  { %v5051_v44 = vld [vmem:[#allocation9 + $0x504] sm:$0xf]  ;;  %1535 = vmatpush.bf16.msra.mxu3 %v5989_v38  ;;  %7041 = vst [vmem:[#allocation88_spill] sm:$0xff] %v6001_v22  ;;  %v4173_v6 = vld [vmem:[#allocation9 + $0x510] sm:$0xf0]  ;;  %v6010_v28 = vor.u32 %v5019_v21, %v4045_v26 }
  0x93   :  { %v3651_v56 = vld [vmem:[#allocation9 + $0xe8] sm:$0xf]  ;;  %v4922_v51 = vld [vmem:[#allocation9 + $0xf4] sm:$0xf0]  ;;  %1497 = vmatpush.bf16.msra.mxu0 %v5992_v55  ;;  %7042 = vst [vmem:[#allocation89_spill] sm:$0xff] %v6004_v3  ;;  %v6013_v38 = vor.u32 %v5051_v44, %v4173_v6 }
  0x94   :  { %v3779_v43 = vld [vmem:[#allocation9 + $0x1e8] sm:$0xf]  ;;  %v4954_v62 = vld [vmem:[#allocation9 + $0x1f4] sm:$0xf0]  ;;  %1510 = vmatpush.bf16.msra.mxu1 %v5996_v42  ;;  %7043 = vst [vmem:[#allocation90_spill] sm:$0xff] %v6008_v39  ;;  %v6015_v55 = vor.u32 %v4922_v51, %v3651_v56 }
  0x95   :  { %v3907_v41 = vld [vmem:[#allocation9 + $0x2e8] sm:$0xf]  ;;  %v4986_v20 = vld [vmem:[#allocation9 + $0x2f4] sm:$0xf0]  ;;  %1523 = vmatpush.bf16.msra.mxu2 %v5998_v32  ;;  %7044 = vst [vmem:[#allocation91_spill] sm:$0xff] %v6010_v28  ;;  %v6017_v4 = vor.u32 %v4954_v62, %v3779_v43 }
  0x96   :  { %v4035_v33 = vld [vmem:[#allocation9 + $0x3e8] sm:$0xf]  ;;  %v5018_v63 = vld [vmem:[#allocation9 + $0x3f4] sm:$0xf0]  ;;  %1536 = vmatpush.bf16.msra.mxu3 %v6001_v22  ;;  %7045 = vst [vmem:[#allocation92_spill] sm:$0xff] %v6013_v38  ;;  %v6019_v15 = vor.u32 %v4986_v20, %v3907_v41 }
  0x97   :  { %7046 = vst [vmem:[#allocation93_spill] sm:$0xff] %v6015_v55  ;;  %v3635_v49 = vld [vmem:[#allocation9 + $0xc8] sm:$0xf]  ;;  %v4918_v42 = vld [vmem:[#allocation9 + $0xd4] sm:$0xf0]  ;;  %1498 = vmatpush.bf16.msra.mxu0 %v6004_v3  ;;  %v6022_v34 = vor.u32 %v5018_v63, %v4035_v33 }
  0x98   :  { %7047 = vst [vmem:[#allocation94_spill] sm:$0xff] %v6017_v4  ;;  %v4950_v12 = vld [vmem:[#allocation9 + $0x1d4] sm:$0xf0]  ;;  %v3891_v21 = vld [vmem:[#allocation9 + $0x2c8] sm:$0xf]  ;;  %1511 = vmatpush.bf16.msra.mxu1 %v6008_v39  ;;  %v6028_v43 = vor.u32 %v4918_v42, %v3635_v49 }
  0x99   :  { %7048 = vst [vmem:[#allocation95_spill] sm:$0xff] %v6019_v15  ;;  %v4982_v26 = vld [vmem:[#allocation9 + $0x2d4] sm:$0xf0]  ;;  %1524 = vmatpush.bf16.msra.mxu2 %v6010_v28  ;;  %v4019_v6 = vld [vmem:[#allocation9 + $0x3c8] sm:$0xf]  ;;  %v6032_v62 = vor.u32 %v4950_v12, %v3763_v61 }
  0x9a   :  { %7049 = vst [vmem:[#allocation96_spill] sm:$0xff] %v6022_v34  ;;  %v5014_v44 = vld [vmem:[#allocation9 + $0x3d4] sm:$0xf0]  ;;  %1537 = vmatpush.bf16.msra.mxu3 %v6013_v38  ;;  %v6034_v56 = vor.u32 %v4982_v26, %v3891_v21  ;;  %v3619_v51 = vld [vmem:[#allocation9 + $0xa8] sm:$0xf]  ;;  %1499 = vmatmul.bf16.vlgmr.msra.gmra.mxu0 %v5836_v1 }
  0x9b   :  { %1543 = vmatpush.bf16.msrb.mxu0 %v6015_v55  ;;  %7050 = vst [vmem:[#allocation97_spill] sm:$0xff] %v6028_v43  ;;  %v4914_v41 = vld [vmem:[#allocation9 + $0xb4] sm:$0xf0]  ;;  %v3747_v20 = vld [vmem:[#allocation9 + $0x1a8] sm:$0xf]  ;;  %v6037_v33 = vor.u32 %v5014_v44, %v4019_v6  ;;  %1512 = vmatmul.bf16.vlgmr.msra.gmra.mxu1 %v5843_v17 }
  0x9c   :  { %1556 = vmatpush.bf16.msrb.mxu1 %v6017_v4  ;;  %7051 = vst [vmem:[#allocation98_spill] sm:$0xff] %v6032_v62  ;;  %1525 = vmatmul.bf16.vlgmr.msra.gmra.mxu2 %v5920_v13  ;;  %v4946_v63 = vld [vmem:[#allocation9 + $0x1b4] sm:$0xf0]  ;;  %v3875_v49 = vld [vmem:[#allocation9 + $0x2a8] sm:$0xf]  ;;  %v6043_v61 = vor.u32 %v4914_v41, %v3619_v51 }
  0x9d   :  { %1569 = vmatpush.bf16.msrb.mxu2 %v6019_v15  ;;  %7052 = vst [vmem:[#allocation99_spill] sm:$0xff] %v6034_v56  ;;  %v4978_v42 = vld [vmem:[#allocation9 + $0x2b4] sm:$0xf0]  ;;  %v4003_v55 = vld [vmem:[#allocation9 + $0x3a8] sm:$0xf]  ;;  %1538 = vmatmul.bf16.vlgmr.msra.gmra.mxu3 %v5924_v24  ;;  %v6048_v12 = vor.u32 %v4946_v63, %v3747_v20 }
  0x9e   :  { %1582 = vmatpush.bf16.msrb.mxu3 %v6022_v34  ;;  %7053 = vst [vmem:[#allocation100_spill] sm:$0xff] %v6037_v33  ;;  %v5010_v4 = vld [vmem:[#allocation9 + $0x3b4] sm:$0xf0]  ;;  %v6050_v21 = vor.u32 %v4978_v42, %v3875_v49  ;;  %v3603_v26 = vld [vmem:[#allocation9 + $0x88] sm:$0xf] }
  0x9f   :  { %1544 = vmatpush.bf16.msrb.mxu0 %v6028_v43  ;;  %7054 = vst [vmem:[#allocation101_spill] sm:$0xff] %v6043_v61  ;;  %v4910_v6 = vld [vmem:[#allocation9 + $0x94] sm:$0xf0]  ;;  %v3731_v44 = vld [vmem:[#allocation9 + $0x188] sm:$0xf]  ;;  %v6053_v34 = vor.u32 %v5010_v4, %v4003_v55 }
  0xa0   :  { %1557 = vmatpush.bf16.msrb.mxu1 %v6032_v62  ;;  %7055 = vst [vmem:[#allocation102_spill] sm:$0xff] %v6048_v12  ;;  %v4942_v43 = vld [vmem:[#allocation9 + $0x194] sm:$0xf0]  ;;  %v3859_v51 = vld [vmem:[#allocation9 + $0x288] sm:$0xf]  ;;  %v6056_v62 = vor.u32 %v4910_v6, %v3603_v26 }
  0xa1   :  { %1570 = vmatpush.bf16.msrb.mxu2 %v6034_v56  ;;  %7056 = vst [vmem:[#allocation103_spill] sm:$0xff] %v6050_v21  ;;  %v4974_v41 = vld [vmem:[#allocation9 + $0x294] sm:$0xf0]  ;;  %v3987_v15 = vld [vmem:[#allocation9 + $0x388] sm:$0xf]  ;;  %v6060_v20 = vor.u32 %v4942_v43, %v3731_v44 }
  0xa2   :  { %1583 = vmatpush.bf16.msrb.mxu3 %v6037_v33  ;;  %7057 = vst [vmem:[#allocation104_spill] sm:$0xff] %v6053_v34  ;;  %v5006_v38 = vld [vmem:[#allocation9 + $0x394] sm:$0xf0]  ;;  %v6062_v63 = vor.u32 %v4974_v41, %v3859_v51  ;;  %v3587_v49 = vld [vmem:[#allocation9 + $0x68] sm:$0xf] }
  0xa3   :  { %1545 = vmatpush.bf16.msrb.mxu0 %v6043_v61  ;;  %7058 = vst [vmem:[#allocation105_spill] sm:$0xff] %v6056_v62  ;;  %v4906_v55 = vld [vmem:[#allocation9 + $0x74] sm:$0xf0]  ;;  %v3715_v4 = vld [vmem:[#allocation9 + $0x168] sm:$0xf]  ;;  %v6065_v42 = vor.u32 %v5006_v38, %v3987_v15 }
  0xa4   :  { %1558 = vmatpush.bf16.msrb.mxu1 %v6048_v12  ;;  %7059 = vst [vmem:[#allocation106_spill] sm:$0xff] %v6060_v20  ;;  %v4938_v33 = vld [vmem:[#allocation9 + $0x174] sm:$0xf0]  ;;  %v3843_v56 = vld [vmem:[#allocation9 + $0x268] sm:$0xf]  ;;  %v6068_v12 = vor.u32 %v4906_v55, %v3587_v49 }
  0xa5   :  { %1571 = vmatpush.bf16.msrb.mxu2 %v6050_v21  ;;  %7060 = vst [vmem:[#allocation107_spill] sm:$0xff] %v6062_v63  ;;  %v4970_v61 = vld [vmem:[#allocation9 + $0x274] sm:$0xf0]  ;;  %v3971_v26 = vld [vmem:[#allocation9 + $0x368] sm:$0xf]  ;;  %v6072_v43 = vor.u32 %v4938_v33, %v3715_v4 }
  0xa6   :  { %1584 = vmatpush.bf16.msrb.mxu3 %v6053_v34  ;;  %7061 = vst [vmem:[#allocation108_spill] sm:$0xff] %v6065_v42  ;;  %v5002_v6 = vld [vmem:[#allocation9 + $0x374] sm:$0xf0]  ;;  %v6074_v44 = vor.u32 %v4970_v61, %v3843_v56  ;;  %v3571_v51 = vld [vmem:[#allocation9 + $0x48] sm:$0xf] }
  0xa7   :  { %1546 = vmatpush.bf16.msrb.mxu0 %v6056_v62  ;;  %7062 = vst [vmem:[#allocation109_spill] sm:$0xff] %v6068_v12  ;;  %v4902_v38 = vld [vmem:[#allocation9 + $0x54] sm:$0xf0]  ;;  %v3699_v15 = vld [vmem:[#allocation9 + $0x148] sm:$0xf]  ;;  %v6077_v41 = vor.u32 %v5002_v6, %v3971_v26 }
  0xa8   :  { %1559 = vmatpush.bf16.msrb.mxu1 %v6060_v20  ;;  %7063 = vst [vmem:[#allocation110_spill] sm:$0xff] %v6072_v43  ;;  %v4934_v34 = vld [vmem:[#allocation9 + $0x154] sm:$0xf0]  ;;  %v3827_v21 = vld [vmem:[#allocation9 + $0x248] sm:$0xf]  ;;  %v6080_v20 = vor.u32 %v4902_v38, %v3571_v51 }
  0xa9   :  { %1572 = vmatpush.bf16.msrb.mxu2 %v6062_v63  ;;  %7064 = vst [vmem:[#allocation111_spill] sm:$0xff] %v6074_v44  ;;  %v4966_v62 = vld [vmem:[#allocation9 + $0x254] sm:$0xf0]  ;;  %v3955_v49 = vld [vmem:[#allocation9 + $0x348] sm:$0xf]  ;;  %v6084_v56 = vor.u32 %v4934_v34, %v3699_v15 }
  0xaa   :  { %1585 = vmatpush.bf16.msrb.mxu3 %v6065_v42  ;;  %7065 = vst [vmem:[#allocation112_spill] sm:$0xff] %v6077_v41  ;;  %v4998_v55 = vld [vmem:[#allocation9 + $0x354] sm:$0xf0]  ;;  %v6086_v33 = vor.u32 %v4966_v62, %v3827_v21  ;;  %v3555_v61 = vld [vmem:[#allocation9 + $0x28] sm:$0xf] }
  0xab   :  { %1547 = vmatpush.bf16.msrb.mxu0 %v6068_v12  ;;  %7066 = vst [vmem:[#allocation113_spill] sm:$0xff] %v6080_v20  ;;  %v4898_v4 = vld [vmem:[#allocation9 + $0x34] sm:$0xf0]  ;;  %v3683_v26 = vld [vmem:[#allocation9 + $0x128] sm:$0xf]  ;;  %v6089_v6 = vor.u32 %v4998_v55, %v3955_v49 }
  0xac   :  { %1560 = vmatpush.bf16.msrb.mxu1 %v6072_v43  ;;  %7067 = vst [vmem:[#allocation114_spill] sm:$0xff] %v6084_v56  ;;  %v4930_v42 = vld [vmem:[#allocation9 + $0x134] sm:$0xf0]  ;;  %v3811_v63 = vld [vmem:[#allocation9 + $0x228] sm:$0xf]  ;;  %v6092_v43 = vor.u32 %v4898_v4, %v3555_v61 }
  0xad   :  { %1573 = vmatpush.bf16.msrb.mxu2 %v6074_v44  ;;  %7068 = vst [vmem:[#allocation115_spill] sm:$0xff] %v6086_v33  ;;  %v4962_v12 = vld [vmem:[#allocation9 + $0x234] sm:$0xf0]  ;;  %v3939_v51 = vld [vmem:[#allocation9 + $0x328] sm:$0xf]  ;;  %v6096_v62 = vor.u32 %v4930_v42, %v3683_v26 }
  0xae   :  { %1586 = vmatpush.bf16.msrb.mxu3 %v6077_v41  ;;  %7069 = vst [vmem:[#allocation116_spill] sm:$0xff] %v6089_v6  ;;  %v4994_v38 = vld [vmem:[#allocation9 + $0x334] sm:$0xf0]  ;;  %v3539_v34 = vld [vmem:[#allocation9 + $0x8] sm:$0xf]  ;;  %v6098_v21 = vor.u32 %v4962_v12, %v3811_v63 }
  0xaf   :  { %1548 = vmatpush.bf16.msrb.mxu0 %v6080_v20  ;;  %7070 = vst [vmem:[#allocation117_spill] sm:$0xff] %v6092_v43  ;;  %v4894_v15 = vld [vmem:[#allocation9 + $0x14] sm:$0xf0]  ;;  %v3667_v49 = vld [vmem:[#allocation9 + $0x108] sm:$0xf]  ;;  %v6101_v44 = vor.u32 %v4994_v38, %v3939_v51 }
  0xb0   :  { %1561 = vmatpush.bf16.msrb.mxu1 %v6084_v56  ;;  %7071 = vst [vmem:[#allocation118_spill] sm:$0xff] %v6096_v62  ;;  %v4926_v55 = vld [vmem:[#allocation9 + $0x114] sm:$0xf0]  ;;  %v3795_v41 = vld [vmem:[#allocation9 + $0x208] sm:$0xf] }
  0xb1   :  { %1574 = vmatpush.bf16.msrb.mxu2 %v6086_v33  ;;  %7072 = vst [vmem:[#allocation119_spill] sm:$0xff] %v6098_v21  ;;  %v4958_v20 = vld [vmem:[#allocation9 + $0x214] sm:$0xf0]  ;;  %v3923_v61 = vld [vmem:[#allocation9 + $0x308] sm:$0xf]  ;;  %v6104_v33 = vor.u32 %v4894_v15, %v3539_v34  ;;  %v6108_v26 = vor.u32 %v4926_v55, %v3667_v49 }
  0xb2   :  { %1587 = vmatpush.bf16.msrb.mxu3 %v6089_v6  ;;  %7073 = vst [vmem:[#allocation120_spill] sm:$0xff] %v6101_v44  ;;  %v4990_v4 = vld [vmem:[#allocation9 + $0x314] sm:$0xf0]  ;;  %v4163_v28 = vld [vmem:[#allocation9 + $0x4e8] sm:$0xf]  ;;  %v6110_v51 = vor.u32 %v4958_v20, %v3795_v41 }
  0xb3   :  { %v5050_v39 = vld [vmem:[#allocation9 + $0x4f4] sm:$0xf0]  ;;  %v4291_v3 = vld [vmem:[#allocation9 + $0x5e8] sm:$0xf]  ;;  %1549 = vmatpush.bf16.msrb.mxu0 %v6092_v43  ;;  %7074 = vst [vmem:[#allocation121_spill] sm:$0xff] %v6104_v33  ;;  %v6113_v56 = vor.u32 %v4990_v4, %v3923_v61 }
  0xb4   :  { %v5082_v42 = vld [vmem:[#allocation9 + $0x5f4] sm:$0xf0]  ;;  %v4920_v12 = vld [vmem:[#allocation9 + $0xec] sm:$0xf]  ;;  %v3653_v63 = vld [vmem:[#allocation9 + $0xf8] sm:$0xf0]  ;;  %1562 = vmatpush.bf16.msrb.mxu1 %v6096_v62  ;;  %v6115_v43 = vor.u32 %v5050_v39, %v4163_v28 }
  0xb5   :  { %1575 = vmatpush.bf16.msrb.mxu2 %v6098_v21  ;;  %7075 = vst [vmem:[#allocation122_spill] sm:$0xff] %v6108_v26  ;;  %v4952_v38 = vld [vmem:[#allocation9 + $0x1ec] sm:$0xf]  ;;  %v3781_v6 = vld [vmem:[#allocation9 + $0x1f8] sm:$0xf0]  ;;  %v6117_v34 = vor.u32 %v5082_v42, %v4291_v3  ;;  %v6119_v15 = vor.u32 %v4920_v12, %v3653_v63 }
  0xb6   :  { %7076 = vst [vmem:[#allocation123_spill] sm:$0xff] %v6110_v51  ;;  %1588 = vmatpush.bf16.msrb.mxu3 %v6101_v44  ;;  %v4147_v22 = vld [vmem:[#allocation9 + $0x4c8] sm:$0xf]  ;;  %v5046_v62 = vld [vmem:[#allocation9 + $0x4d4] sm:$0xf0]  ;;  %v6122_v49 = vor.u32 %v4952_v38, %v3781_v6 }
  0xb7   :  { %7077 = vst [vmem:[#allocation124_spill] sm:$0xff] %v6113_v56  ;;  %v4275_v32 = vld [vmem:[#allocation9 + $0x5c8] sm:$0xf]  ;;  %1550 = vmatpush.bf16.msrb.mxu0 %v6104_v33  ;;  %v5078_v20 = vld [vmem:[#allocation9 + $0x5d4] sm:$0xf0]  ;;  %v6128_v3 = vor.u32 %v5046_v62, %v4147_v22 }
  0xb8   :  { %7078 = vst [vmem:[#allocation125_spill] sm:$0xff] %v6115_v43  ;;  %v4916_v41 = vld [vmem:[#allocation9 + $0xcc] sm:$0xf]  ;;  %v3637_v55 = vld [vmem:[#allocation9 + $0xd8] sm:$0xf0]  ;;  %1563 = vmatpush.bf16.msrb.mxu1 %v6108_v26  ;;  %v6132_v6 = vor.u32 %v5078_v20, %v4275_v32 }
  0xb9   :  { %7079 = vst [vmem:[#allocation126_spill] sm:$0xff] %v6117_v34  ;;  %1576 = vmatpush.bf16.msrb.mxu2 %v6110_v51  ;;  %v4948_v39 = vld [vmem:[#allocation9 + $0x1cc] sm:$0xf]  ;;  %v3765_v28 = vld [vmem:[#allocation9 + $0x1d8] sm:$0xf0]  ;;  %v6134_v61 = vor.u32 %v4916_v41, %v3637_v55 }
  0xba   :  { %7080 = vst [vmem:[#allocation127_spill] sm:$0xff] %v6119_v15  ;;  %1589 = vmatpush.bf16.msrb.mxu3 %v6113_v56  ;;  %v4131_v4 = vld [vmem:[#allocation9 + $0x4a8] sm:$0xf]  ;;  %v5042_v42 = vld [vmem:[#allocation9 + $0x4b4] sm:$0xf0]  ;;  %v6137_v63 = vor.u32 %v4948_v39, %v3765_v28  ;;  %1551 = vmatmul.bf16.vlgmr.msrb.gmra.mxu0 %v5838_v2 }
  0xbb   :  { %7081 = vst [vmem:[#allocation128_spill] sm:$0xff] %v6122_v49  ;;  %1595 = vmatpush.bf16.msra.mxu0 %v6115_v43  ;;  %v4259_v12 = vld [vmem:[#allocation9 + $0x5a8] sm:$0xf]  ;;  %v5074_v38 = vld [vmem:[#allocation9 + $0x5b4] sm:$0xf0]  ;;  %v6143_v32 = vor.u32 %v5042_v42, %v4131_v4  ;;  %1564 = vmatmul.bf16.vlgmr.msrb.gmra.mxu1 %v5857_v50 }
  0xbc   :  { %7082 = vst [vmem:[#allocation129_spill] sm:$0xff] %v6128_v3  ;;  %1608 = vmatpush.bf16.msra.mxu1 %v6117_v34  ;;  %v4912_v56 = vld [vmem:[#allocation9 + $0xac] sm:$0xf]  ;;  %v3621_v43 = vld [vmem:[#allocation9 + $0xb8] sm:$0xf0]  ;;  %1577 = vmatmul.bf16.vlgmr.msrb.gmra.mxu2 %v5836_v1  ;;  %v6148_v20 = vor.u32 %v5074_v38, %v4259_v12 }
  0xbd   :  { %1621 = vmatpush.bf16.msra.mxu2 %v6119_v15  ;;  %7083 = vst [vmem:[#allocation130_spill] sm:$0xff] %v6132_v6  ;;  %v4944_v22 = vld [vmem:[#allocation9 + $0x1ac] sm:$0xf]  ;;  %v3749_v62 = vld [vmem:[#allocation9 + $0x1b8] sm:$0xf0]  ;;  %1590 = vmatmul.bf16.vlgmr.msrb.gmra.mxu3 %v5843_v17  ;;  %v6150_v41 = vor.u32 %v4912_v56, %v3621_v43 }
  0xbe   :  { %7084 = vst [vmem:[#allocation131_spill] sm:$0xff] %v6134_v61  ;;  %1634 = vmatpush.bf16.msra.mxu3 %v6122_v49  ;;  %v4115_v55 = vld [vmem:[#allocation9 + $0x488] sm:$0xf]  ;;  %v5038_v39 = vld [vmem:[#allocation9 + $0x494] sm:$0xf0]  ;;  %v6153_v49 = vor.u32 %v4944_v22, %v3749_v62 }
  0xbf   :  { %7085 = vst [vmem:[#allocation132_spill] sm:$0xff] %v6137_v63  ;;  %1596 = vmatpush.bf16.msra.mxu0 %v6128_v3  ;;  %v4243_v28 = vld [vmem:[#allocation9 + $0x588] sm:$0xf]  ;;  %v5070_v3 = vld [vmem:[#allocation9 + $0x594] sm:$0xf0] }
  0xc0   :  { %7086 = vst [vmem:[#allocation133_spill] sm:$0xff] %v6143_v32  ;;  %1609 = vmatpush.bf16.msra.mxu1 %v6132_v6  ;;  %v4908_v4 = vld [vmem:[#allocation9 + $0x8c] sm:$0xf]  ;;  %v3605_v42 = vld [vmem:[#allocation9 + $0x98] sm:$0xf0]  ;;  %v6156_v6 = vor.u32 %v5038_v39, %v4115_v55  ;;  %v6160_v43 = vor.u32 %v5070_v3, %v4243_v28 }
  0xc1   :  { %1622 = vmatpush.bf16.msra.mxu2 %v6134_v61  ;;  %7087 = vst [vmem:[#allocation134_spill] sm:$0xff] %v6148_v20  ;;  %v4940_v15 = vld [vmem:[#allocation9 + $0x18c] sm:$0xf]  ;;  %v3733_v34 = vld [vmem:[#allocation9 + $0x198] sm:$0xf0]  ;;  %v6162_v56 = vor.u32 %v4908_v4, %v3605_v42 }
  0xc2   :  { %7088 = vst [vmem:[#allocation135_spill] sm:$0xff] %v6150_v41  ;;  %1635 = vmatpush.bf16.msra.mxu3 %v6137_v63  ;;  %v4099_v12 = vld [vmem:[#allocation9 + $0x468] sm:$0xf]  ;;  %v5034_v38 = vld [vmem:[#allocation9 + $0x474] sm:$0xf0]  ;;  %v6165_v62 = vor.u32 %v4940_v15, %v3733_v34 }
  0xc3   :  { %7089 = vst [vmem:[#allocation136_spill] sm:$0xff] %v6153_v49  ;;  %1597 = vmatpush.bf16.msra.mxu0 %v6143_v32  ;;  %v4227_v22 = vld [vmem:[#allocation9 + $0x568] sm:$0xf]  ;;  %v5066_v63 = vld [vmem:[#allocation9 + $0x574] sm:$0xf0] }
  0xc4   :  { %7090 = vst [vmem:[#allocation137_spill] sm:$0xff] %v6156_v6  ;;  %1610 = vmatpush.bf16.msra.mxu1 %v6148_v20  ;;  %v4904_v61 = vld [vmem:[#allocation9 + $0x6c] sm:$0xf]  ;;  %v3589_v32 = vld [vmem:[#allocation9 + $0x78] sm:$0xf0]  ;;  %v6168_v20 = vor.u32 %v5034_v38, %v4099_v12  ;;  %v6172_v3 = vor.u32 %v5066_v63, %v4227_v22 }
  0xc5   :  { %1623 = vmatpush.bf16.msra.mxu2 %v6150_v41  ;;  %7091 = vst [vmem:[#allocation138_spill] sm:$0xff] %v6160_v43  ;;  %v4936_v55 = vld [vmem:[#allocation9 + $0x16c] sm:$0xf]  ;;  %v3717_v39 = vld [vmem:[#allocation9 + $0x178] sm:$0xf0]  ;;  %v6174_v28 = vor.u32 %v4904_v61, %v3589_v32 }
  0xc6   :  { %7092 = vst [vmem:[#allocation139_spill] sm:$0xff] %v6162_v56  ;;  %1636 = vmatpush.bf16.msra.mxu3 %v6153_v49  ;;  %v4083_v4 = vld [vmem:[#allocation9 + $0x448] sm:$0xf]  ;;  %v5030_v34 = vld [vmem:[#allocation9 + $0x454] sm:$0xf0]  ;;  %v6177_v42 = vor.u32 %v4936_v55, %v3717_v39 }
  0xc7   :  { %7093 = vst [vmem:[#allocation140_spill] sm:$0xff] %v6165_v62  ;;  %1598 = vmatpush.bf16.msra.mxu0 %v6156_v6  ;;  %v4211_v15 = vld [vmem:[#allocation9 + $0x548] sm:$0xf]  ;;  %v5062_v49 = vld [vmem:[#allocation9 + $0x554] sm:$0xf0] }
  0xc8   :  { %7094 = vst [vmem:[#allocation141_spill] sm:$0xff] %v6168_v20  ;;  %1611 = vmatpush.bf16.msra.mxu1 %v6160_v43  ;;  %v4900_v41 = vld [vmem:[#allocation9 + $0x4c] sm:$0xf]  ;;  %v3573_v6 = vld [vmem:[#allocation9 + $0x58] sm:$0xf0]  ;;  %v6180_v43 = vor.u32 %v5030_v34, %v4083_v4  ;;  %v6184_v61 = vor.u32 %v5062_v49, %v4211_v15 }
  0xc9   :  { %1624 = vmatpush.bf16.msra.mxu2 %v6162_v56  ;;  %7095 = vst [vmem:[#allocation142_spill] sm:$0xff] %v6172_v3  ;;  %v4932_v12 = vld [vmem:[#allocation9 + $0x14c] sm:$0xf]  ;;  %v3701_v38 = vld [vmem:[#allocation9 + $0x158] sm:$0xf0]  ;;  %v6186_v63 = vor.u32 %v4900_v41, %v3573_v6 }
  0xca   :  { %7096 = vst [vmem:[#allocation143_spill] sm:$0xff] %v6174_v28  ;;  %1637 = vmatpush.bf16.msra.mxu3 %v6165_v62  ;;  %v4067_v32 = vld [vmem:[#allocation9 + $0x428] sm:$0xf]  ;;  %v5026_v22 = vld [vmem:[#allocation9 + $0x434] sm:$0xf0]  ;;  %v6189_v39 = vor.u32 %v4932_v12, %v3701_v38 }
  0xcb   :  { %7097 = vst [vmem:[#allocation144_spill] sm:$0xff] %v6177_v42  ;;  %1599 = vmatpush.bf16.msra.mxu0 %v6168_v20  ;;  %v4195_v55 = vld [vmem:[#allocation9 + $0x528] sm:$0xf]  ;;  %v5058_v62 = vld [vmem:[#allocation9 + $0x534] sm:$0xf0] }
  0xcc   :  { %7098 = vst [vmem:[#allocation145_spill] sm:$0xff] %v6180_v43  ;;  %1612 = vmatpush.bf16.msra.mxu1 %v6172_v3  ;;  %v4896_v56 = vld [vmem:[#allocation9 + $0x2c] sm:$0xf]  ;;  %v3557_v20 = vld [vmem:[#allocation9 + $0x38] sm:$0xf0]  ;;  %v6192_v3 = vor.u32 %v5026_v22, %v4067_v32  ;;  %v6196_v6 = vor.u32 %v5058_v62, %v4195_v55 }
  0xcd   :  { %1625 = vmatpush.bf16.msra.mxu2 %v6174_v28  ;;  %7099 = vst [vmem:[#allocation146_spill] sm:$0xff] %v6184_v61  ;;  %v4928_v4 = vld [vmem:[#allocation9 + $0x12c] sm:$0xf]  ;;  %v3685_v34 = vld [vmem:[#allocation9 + $0x138] sm:$0xf0]  ;;  %v6198_v41 = vor.u32 %v4896_v56, %v3557_v20 }
  0xce   :  { %7100 = vst [vmem:[#allocation147_spill] sm:$0xff] %v6186_v63  ;;  %1638 = vmatpush.bf16.msra.mxu3 %v6177_v42  ;;  %v4051_v49 = vld [vmem:[#allocation9 + $0x408] sm:$0xf]  ;;  %v5022_v15 = vld [vmem:[#allocation9 + $0x414] sm:$0xf0]  ;;  %v6201_v28 = vor.u32 %v4928_v4, %v3685_v34 }
  0xcf   :  { %7101 = vst [vmem:[#allocation148_spill] sm:$0xff] %v6189_v39  ;;  %1600 = vmatpush.bf16.msra.mxu0 %v6180_v43  ;;  %v4179_v12 = vld [vmem:[#allocation9 + $0x508] sm:$0xf]  ;;  %v5054_v38 = vld [vmem:[#allocation9 + $0x514] sm:$0xf0] }
  0xd0   :  { %7102 = vst [vmem:[#allocation149_spill] sm:$0xff] %v6192_v3  ;;  %1613 = vmatpush.bf16.msra.mxu1 %v6184_v61  ;;  %v4892_v42 = vld [vmem:[#allocation9 + $0xc] sm:$0xf]  ;;  %v3541_v43 = vld [vmem:[#allocation9 + $0x18] sm:$0xf0]  ;;  %v6208_v55 = vor.u32 %v5054_v38, %v4179_v12 }
  0xd1   :  { %1626 = vmatpush.bf16.msra.mxu2 %v6186_v63  ;;  %7103 = vst [vmem:[#allocation150_spill] sm:$0xff] %v6196_v6  ;;  %v4924_v32 = vld [vmem:[#allocation9 + $0x10c] sm:$0xf]  ;;  %v3669_v22 = vld [vmem:[#allocation9 + $0x118] sm:$0xf0]  ;;  %v6204_v63 = vor.u32 %v5022_v15, %v4051_v49  ;;  %v6210_v4 = vor.u32 %v4892_v42, %v3541_v43 }
  0xd2   :  { %1639 = vmatpush.bf16.msra.mxu3 %v6189_v39  ;;  %v4984_v51 = vld [vmem:[#allocation9 + $0x2ec] sm:$0xf]  ;;  %v3909_v26 = vld [vmem:[#allocation9 + $0x2f8] sm:$0xf0]  ;;  %7105 = vst [vmem:[#allocation152_spill] sm:$0xff] %v6208_v55  ;;  %v6213_v61 = vor.u32 %v4924_v32, %v3669_v22 }
  0xd3   :  { %v5016_v33 = vld [vmem:[#allocation9 + $0x3ec] sm:$0xf]  ;;  %1601 = vmatpush.bf16.msra.mxu0 %v6192_v3  ;;  %7104 = vst [vmem:[#allocation151_spill] sm:$0xff] %v6204_v63  ;;  %v4037_v62 = vld [vmem:[#allocation9 + $0x3f8] sm:$0xf0]  ;;  %v6215_v3 = vor.u32 %v4984_v51, %v3909_v26 }
  0xd4   :  { %v5048_v20 = vld [vmem:[#allocation9 + $0x4ec] sm:$0xf]  ;;  %v4165_v56 = vld [vmem:[#allocation9 + $0x4f8] sm:$0xf0]  ;;  %1614 = vmatpush.bf16.msra.mxu1 %v6196_v6  ;;  %7106 = vst [vmem:[#allocation153_spill] sm:$0xff] %v6210_v4  ;;  %v6217_v49 = vor.u32 %v5016_v33, %v4037_v62 }
  0xd5   :  { %1627 = vmatpush.bf16.msra.mxu2 %v6198_v41  ;;  %v5080_v34 = vld [vmem:[#allocation9 + $0x5ec] sm:$0xf]  ;;  %v4293_v39 = vld [vmem:[#allocation9 + $0x5f8] sm:$0xf0]  ;;  %7107 = vst [vmem:[#allocation154_spill] sm:$0xff] %v6213_v61  ;;  %v6219_v15 = vor.u32 %v5048_v20, %v4165_v56 }
  0xd6   :  { %1640 = vmatpush.bf16.msra.mxu3 %v6201_v28  ;;  %7108 = vst [vmem:[#allocation155_spill] sm:$0xff] %v6215_v3  ;;  %v4980_v44 = vld [vmem:[#allocation9 + $0x2cc] sm:$0xf]  ;;  %v3893_v6 = vld [vmem:[#allocation9 + $0x2d8] sm:$0xf0]  ;;  %v6222_v12 = vor.u32 %v5080_v34, %v4293_v39 }
  0xd7   :  { %7109 = vst [vmem:[#allocation156_spill] sm:$0xff] %v6217_v49  ;;  %v5012_v21 = vld [vmem:[#allocation9 + $0x3cc] sm:$0xf]  ;;  %1602 = vmatpush.bf16.msra.mxu0 %v6204_v63  ;;  %v4021_v43 = vld [vmem:[#allocation9 + $0x3d8] sm:$0xf0]  ;;  %v6228_v33 = vor.u32 %v4980_v44, %v3893_v6 }
  0xd8   :  { %7110 = vst [vmem:[#allocation157_spill] sm:$0xff] %v6219_v15  ;;  %v5044_v42 = vld [vmem:[#allocation9 + $0x4cc] sm:$0xf]  ;;  %v4149_v38 = vld [vmem:[#allocation9 + $0x4d8] sm:$0xf0]  ;;  %1615 = vmatpush.bf16.msra.mxu1 %v6208_v55  ;;  %v6232_v39 = vor.u32 %v5012_v21, %v4021_v43 }
  0xd9   :  { %7111 = vst [vmem:[#allocation158_spill] sm:$0xff] %v6222_v12  ;;  %1628 = vmatpush.bf16.msra.mxu2 %v6210_v4  ;;  %v5076_v26 = vld [vmem:[#allocation9 + $0x5cc] sm:$0xf]  ;;  %v4277_v51 = vld [vmem:[#allocation9 + $0x5d8] sm:$0xf0]  ;;  %v6234_v32 = vor.u32 %v5044_v42, %v4149_v38 }
  0xda   :  { %1641 = vmatpush.bf16.msra.mxu3 %v6213_v61  ;;  %7112 = vst [vmem:[#allocation159_spill] sm:$0xff] %v6228_v33  ;;  %v4976_v22 = vld [vmem:[#allocation9 + $0x2ac] sm:$0xf]  ;;  %v3877_v62 = vld [vmem:[#allocation9 + $0x2b8] sm:$0xf0]  ;;  %v6237_v56 = vor.u32 %v5076_v26, %v4277_v51  ;;  %1603 = vmatmul.bf16.vlgmr.msra.gmra.mxu0 %v5920_v13 }
  0xdb   :  { %1647 = vmatpush.bf16.msrb.mxu0 %v6215_v3  ;;  %7113 = vst [vmem:[#allocation160_spill] sm:$0xff] %v6232_v39  ;;  %v5008_v20 = vld [vmem:[#allocation9 + $0x3ac] sm:$0xf]  ;;  %v4005_v34 = vld [vmem:[#allocation9 + $0x3b8] sm:$0xf0]  ;;  %1616 = vmatmul.bf16.vlgmr.msra.gmra.mxu1 %v5924_v24  ;;  %v6243_v21 = vor.u32 %v4976_v22, %v3877_v62 }
  0xdc   :  { %1660 = vmatpush.bf16.msrb.mxu1 %v6217_v49  ;;  %7114 = vst [vmem:[#allocation161_spill] sm:$0xff] %v6234_v32  ;;  %v5040_v61 = vld [vmem:[#allocation9 + $0x4ac] sm:$0xf]  ;;  %v4133_v3 = vld [vmem:[#allocation9 + $0x4b8] sm:$0xf0]  ;;  %1629 = vmatmul.bf16.vlgmr.msra.gmra.mxu2 %v5838_v2  ;;  %v6248_v42 = vor.u32 %v5008_v20, %v4005_v34 }
  0xdd   :  { %1673 = vmatpush.bf16.msrb.mxu2 %v6219_v15  ;;  %7115 = vst [vmem:[#allocation162_spill] sm:$0xff] %v6237_v56  ;;  %v5072_v44 = vld [vmem:[#allocation9 + $0x5ac] sm:$0xf]  ;;  %v4261_v6 = vld [vmem:[#allocation9 + $0x5b8] sm:$0xf0]  ;;  %1642 = vmatmul.bf16.vlgmr.msra.gmra.mxu3 %v5857_v50  ;;  %v6250_v38 = vor.u32 %v5040_v61, %v4133_v3 }
  0xde   :  { %1686 = vmatpush.bf16.msrb.mxu3 %v6222_v12  ;;  %7116 = vst [vmem:[#allocation163_spill] sm:$0xff] %v6243_v21  ;;  %v4972_v43 = vld [vmem:[#allocation9 + $0x28c] sm:$0xf]  ;;  %v3861_v26 = vld [vmem:[#allocation9 + $0x298] sm:$0xf0]  ;;  %v6253_v2 = vor.u32 %v5072_v44, %v4261_v6 }
  0xdf   :  { %1648 = vmatpush.bf16.msrb.mxu0 %v6228_v33  ;;  %7117 = vst [vmem:[#allocation164_spill] sm:$0xff] %v6248_v42  ;;  %v5004_v51 = vld [vmem:[#allocation9 + $0x38c] sm:$0xf]  ;;  %v3989_v12 = vld [vmem:[#allocation9 + $0x398] sm:$0xf0]  ;;  %v6261_v3 = vor.u32 %v4972_v43, %v3861_v26 }
  0xe0   :  { %1661 = vmatpush.bf16.msrb.mxu1 %v6232_v39  ;;  %7118 = vst [vmem:[#allocation165_spill] sm:$0xff] %v6250_v38  ;;  %v5036_v22 = vld [vmem:[#allocation9 + $0x48c] sm:$0xf]  ;;  %v4117_v62 = vld [vmem:[#allocation9 + $0x498] sm:$0xf0]  ;;  %v6265_v20 = vor.u32 %v5004_v51, %v3989_v12  ;;  %v1396_v12 = vpop.f32.mrf.mxu0 }
  0xe1   :  { %1674 = vmatpush.bf16.msrb.mxu2 %v6234_v32  ;;  %7119 = vst [vmem:[#allocation166_spill] sm:$0xff] %v6253_v2  ;;  %v6258_v50 = vld [vmem:[%s6812_s3] sm:$0xf]  ;;  %v5068_v39 = vld [vmem:[#allocation9 + $0x58c] sm:$0xf]  ;;  %v6267_v34 = vor.u32 %v5036_v22, %v4117_v62 }
  0xe2   :  { %1687 = vmatpush.bf16.msrb.mxu3 %v6237_v56  ;;  %v4245_v32 = vld [vmem:[#allocation9 + $0x598] sm:$0xf0]  ;;  %7120 = vst [vmem:[#allocation167_spill] sm:$0xff] %v6261_v3  ;;  %v4968_v61 = vld [vmem:[#allocation9 + $0x26c] sm:$0xf]  ;;  %v6966_v56 = vperm.slane %v6258_v50, 0 }
  0xe3   :  { %1649 = vmatpush.bf16.msrb.mxu0 %v6243_v21  ;;  %7121 = vst [vmem:[#allocation168_spill] sm:$0xff] %v6265_v20  ;;  %v3845_v44 = vld [vmem:[#allocation9 + $0x278] sm:$0xf0]  ;;  %v5000_v6 = vld [vmem:[#allocation9 + $0x36c] sm:$0xf]  ;;  %v6271_v33 = vor.u32 %v5068_v39, %v4245_v32 }
  0xe4   :  { %1662 = vmatpush.bf16.msrb.mxu1 %v6248_v42  ;;  %7122 = vst [vmem:[#allocation169_spill] sm:$0xff] %v6267_v34  ;;  %v3973_v21 = vld [vmem:[#allocation9 + $0x378] sm:$0xf0]  ;;  %v5032_v43 = vld [vmem:[#allocation9 + $0x46c] sm:$0xf] }
  0xe5   :  { %1675 = vmatpush.bf16.msrb.mxu2 %v6250_v38  ;;  %7123 = vst [vmem:[#allocation170_spill] sm:$0xff] %v6271_v33  ;;  %v4101_v26 = vld [vmem:[#allocation9 + $0x478] sm:$0xf0]  ;;  %v5064_v15 = vld [vmem:[#allocation9 + $0x56c] sm:$0xf]  ;;  %v6274_v38 = vor.u32 %v4968_v61, %v3845_v44  ;;  %v6278_v51 = vor.u32 %v5000_v6, %v3973_v21  ;;  %v1409_v6 = vpop.f32.mrf.mxu1 }
  0xe6   :  { %1688 = vmatpush.bf16.msrb.mxu3 %v6253_v2  ;;  %v4229_v49 = vld [vmem:[#allocation9 + $0x578] sm:$0xf0]  ;;  %v6280_v22 = vor.u32 %v5032_v43, %v4101_v26  ;;  %v4964_v39 = vld [vmem:[#allocation9 + $0x24c] sm:$0xf]  ;;  %v1397_v2 = vadd.f32 %v1396_v12, %v6966_v56 }
  0xe7   :  { %1650 = vmatpush.bf16.msrb.mxu0 %v6261_v3  ;;  %7124 = vst [vmem:[#allocation171_spill] sm:$0xff] %v6274_v38  ;;  %v3829_v32 = vld [vmem:[#allocation9 + $0x258] sm:$0xf0]  ;;  %v4996_v62 = vld [vmem:[#allocation9 + $0x34c] sm:$0xf]  ;;  %v6285_v3 = vor.u32 %v5064_v15, %v4229_v49 }
  0xe8   :  { %1663 = vmatpush.bf16.msrb.mxu1 %v6265_v20  ;;  %7125 = vst [vmem:[#allocation172_spill] sm:$0xff] %v6278_v51  ;;  %v3957_v61 = vld [vmem:[#allocation9 + $0x358] sm:$0xf0]  ;;  %v5028_v44 = vld [vmem:[#allocation9 + $0x44c] sm:$0xf]  ;;  %v6288_v21 = vor.u32 %v4964_v39, %v3829_v32  ;;  %v1410_v56 = vadd.f32 %v1409_v6, %v1397_v2 }
  0xe9   :  { %1676 = vmatpush.bf16.msrb.mxu2 %v6267_v34  ;;  %7126 = vst [vmem:[#allocation173_spill] sm:$0xff] %v6280_v22  ;;  %v4085_v42 = vld [vmem:[#allocation9 + $0x458] sm:$0xf0]  ;;  %v5060_v20 = vld [vmem:[#allocation9 + $0x54c] sm:$0xf]  ;;  %v6292_v43 = vor.u32 %v4996_v62, %v3957_v61  ;;  %v1422_v34 = vpop.f32.mrf.mxu2  ;;  %v1398_v62 = vpop.f32.mrf.mxu0 }
  0xea   :  { %1689 = vmatpush.bf16.msrb.mxu3 %v6271_v33  ;;  %v4213_v4 = vld [vmem:[#allocation9 + $0x558] sm:$0xf0]  ;;  %7127 = vst [vmem:[#allocation174_spill] sm:$0xff] %v6288_v21  ;;  %v6294_v26 = vor.u32 %v5028_v44, %v4085_v42  ;;  %v4960_v49 = vld [vmem:[#allocation9 + $0x22c] sm:$0xf]  ;;  %v1423_v63 = vadd.f32 %v1422_v34, %v1410_v56 }
  0xeb   :  { %1651 = vmatpush.bf16.msrb.mxu0 %v6274_v38  ;;  %v3813_v15 = vld [vmem:[#allocation9 + $0x238] sm:$0xf0]  ;;  %v4992_v12 = vld [vmem:[#allocation9 + $0x32c] sm:$0xf]  ;;  %v6297_v33 = vor.u32 %v5060_v20, %v4213_v4 }
  0xec   :  { %1664 = vmatpush.bf16.msrb.mxu1 %v6278_v51  ;;  %7128 = vst [vmem:[#allocation175_spill] sm:$0xff] %v6294_v26  ;;  %v3941_v38 = vld [vmem:[#allocation9 + $0x338] sm:$0xf0]  ;;  %v5024_v39 = vld [vmem:[#allocation9 + $0x42c] sm:$0xf]  ;;  %v6300_v42 = vor.u32 %v4960_v49, %v3813_v15 }
  0xed   :  { %1677 = vmatpush.bf16.msrb.mxu2 %v6280_v22  ;;  %v4069_v32 = vld [vmem:[#allocation9 + $0x438] sm:$0xf0]  ;;  %v5056_v55 = vld [vmem:[#allocation9 + $0x52c] sm:$0xf]  ;;  %v1435_v22 = vpop.f32.mrf.mxu3  ;;  %v6304_v2 = vor.u32 %v4992_v12, %v3941_v38  ;;  %v1411_v38 = vpop.f32.mrf.mxu1 }
  0xee   :  { %1690 = vmatpush.bf16.msrb.mxu3 %v6285_v3  ;;  %v4197_v51 = vld [vmem:[#allocation9 + $0x538] sm:$0xf0]  ;;  %v6306_v4 = vor.u32 %v5024_v39, %v4069_v32  ;;  %v4956_v20 = vld [vmem:[#allocation9 + $0x20c] sm:$0xf]  ;;  %v1436_v6 = vadd.f32 %v1435_v22, %v1423_v63  ;;  %v7141_v39 = vld [vmem:[#allocation41_spill] sm:$0xff] }
  0xef   :  { %1652 = vmatpush.bf16.msrb.mxu0 %v6288_v21  ;;  %v3797_v61 = vld [vmem:[#allocation9 + $0x218] sm:$0xf0]  ;;  %v4988_v44 = vld [vmem:[#allocation9 + $0x30c] sm:$0xf]  ;;  %v6309_v56 = vor.u32 %v5056_v55, %v4197_v51 }
  0xf0   :  { %1665 = vmatpush.bf16.msrb.mxu1 %v6292_v43  ;;  %v3925_v34 = vld [vmem:[#allocation9 + $0x318] sm:$0xf0]  ;;  %v5020_v49 = vld [vmem:[#allocation9 + $0x40c] sm:$0xf] }
  0xf1   :  { %1678 = vmatpush.bf16.msrb.mxu2 %v6294_v26  ;;  %v4053_v15 = vld [vmem:[#allocation9 + $0x418] sm:$0xf0]  ;;  %v5052_v62 = vld [vmem:[#allocation9 + $0x50c] sm:$0xf]  ;;  %v6312_v26 = vor.u32 %v4956_v20, %v3797_v61  ;;  %v6316_v12 = vor.u32 %v4988_v44, %v3925_v34  ;;  %v1424_v51 = vpop.f32.mrf.mxu2  ;;  %v7143_v20 = vld [vmem:[#allocation43_spill] sm:$0xff] }
  0xf2   :  { %1691 = vmatpush.bf16.msrb.mxu3 %v6297_v33  ;;  %v4181_v21 = vld [vmem:[#allocation9 + $0x518] sm:$0xf0]  ;;  %v6318_v63 = vor.u32 %v5020_v49, %v4053_v15  ;;  %v7144_v44 = vld [vmem:[#allocation44_spill] sm:$0xff]  ;;  %v7145_v49 = vld [vmem:[#allocation45_spill] sm:$0xff] }
  0xf3   :  { %1653 = vmatpush.bf16.msrb.mxu0 %v6300_v42  ;;  %v6321_v55 = vor.u32 %v5052_v62, %v4181_v21  ;;  %v7142_v32 = vld [vmem:[#allocation42_spill] sm:$0xff]  ;;  %v7147_v51 = vld [vmem:[#allocation47_spill] sm:$0xff] }
  0xf4   :  { %1666 = vmatpush.bf16.msrb.mxu1 %v6304_v2  ;;  %v7146_v38 = vld [vmem:[#allocation46_spill] sm:$0xff] }
  0xf5   :  { %1679 = vmatpush.bf16.msrb.mxu2 %v6306_v4  ;;  %v1437_v22 = vpop.f32.mrf.mxu3 }
  0xf6   :  { %1692 = vmatpush.bf16.msrb.mxu3 %v6309_v56 }
  0xf7   :  { %1654 = vmatpush.bf16.msrb.mxu0 %v6312_v26 }
  0xf8   :  { %1667 = vmatpush.bf16.msrb.mxu1 %v6316_v12 }
  0xf9   :  { %1680 = vmatpush.bf16.msrb.mxu2 %v6318_v63 }
  0xfa   :  { %1693 = vmatpush.bf16.msrb.mxu3 %v6321_v55  ;;  %1655 = vmatmul.bf16.vlgmr.msrb.gmra.mxu0 %v5836_v1  ;;  %v7139_v1 = vld [vmem:[#allocation39_spill] sm:$0xff] }
  0xfb   :  { %1715 = vmatpush.bf16.msra.mxu0 %v5711_v5  ;;  %1668 = vmatmul.bf16.vlgmr.msrb.gmra.mxu1 %v5843_v17  ;;  %v1448_v5 = vpop.f32.mrf.mxu0 }
  0xfc   :  { %1728 = vmatpush.bf16.msra.mxu1 %v5713_v9  ;;  %1681 = vmatmul.bf16.vlgmr.msrb.gmra.mxu2 %v5920_v13  ;;  %v1449_v9 = vadd.f32 %v1448_v5, %v1436_v6  ;;  %v7148_v5 = vld [vmem:[#allocation48_spill] sm:$0xff] }
  0xfd   :  { %1741 = vmatpush.bf16.msra.mxu2 %v5715_v10  ;;  %1694 = vmatmul.bf16.vlgmr.msrb.gmra.mxu3 %v5924_v24  ;;  %v1461_v10 = vpop.f32.mrf.mxu1  ;;  %v7140_v24 = vld [vmem:[#allocation40_spill] sm:$0xff] }
  0xfe   :  { %1754 = vmatpush.bf16.msra.mxu3 %v5718_v14  ;;  %v6343_v14 = vadd.f32 %v1461_v10, %v1449_v9  ;;  %v7149_v9 = vld [vmem:[#allocation49_spill] sm:$0xff]  ;;  %v7150_v10 = vld [vmem:[#allocation50_spill] sm:$0xff] }
  0xff   :  { %1716 = vmatpush.bf16.msra.mxu0 %v5722_v18  ;;  %v420_v18 = vperm.slane %v6258_v50, 1 }
 0x100   :  { %1729 = vmatpush.bf16.msra.mxu1 %v5724_v19  ;;  %v1474_v19 = vpop.f32.mrf.mxu2 }
 0x101   :  { %1742 = vmatpush.bf16.msra.mxu2 %v5727_v23  ;;  %v1475_v23 = vadd.f32 %v1474_v19, %v420_v18  ;;  %v7151_v19 = vld [vmem:[#allocation51_spill] sm:$0xff] }
 0x102   :  { %1755 = vmatpush.bf16.msra.mxu3 %v5729_v27  ;;  %v1487_v27 = vpop.f32.mrf.mxu3 }
 0x103   :  { %1717 = vmatpush.bf16.msra.mxu0 %v5732_v31  ;;  %v1450_v31 = vpop.f32.mrf.mxu0 }
 0x104   :  { %1730 = vmatpush.bf16.msra.mxu1 %v5736_v35 }
 0x105   :  { %1743 = vmatpush.bf16.msra.mxu2 %v5738_v36  ;;  %v1463_v35 = vpop.f32.mrf.mxu1  ;;  %v1488_v36 = vadd.f32 %v1487_v27, %v1475_v23  ;;  %v7152_v27 = vld [vmem:[#allocation52_spill] sm:$0xff] }
 0x106   :  { %1756 = vmatpush.bf16.msra.mxu3 %v5741_v40  ;;  %v7153_v35 = vld [vmem:[#allocation53_spill] sm:$0xff] }
 0x107   :  { %1718 = vmatpush.bf16.msra.mxu0 %v5744_v46 }
 0x108   :  { %1731 = vmatpush.bf16.msra.mxu1 %v5748_v47  ;;  %v1476_v40 = vpop.f32.mrf.mxu2  ;;  %v1705_v47 = vld [vmem:[#allocation4 + $0x40] sm:$0xff] }
 0x109   :  { %1744 = vmatpush.bf16.msra.mxu2 %v5750_v48  ;;  %v1703_v48 = vld [vmem:[#allocation4 + $0x30] sm:$0xff] }
 0x10a   :  { %1757 = vmatpush.bf16.msra.mxu3 %v5753_v52  ;;  %v1489_v46 = vpop.f32.mrf.mxu3  ;;  %v1706_v52 = vld [vmem:[#allocation4 + $0x48] sm:$0xff] }
 0x10b   :  { %1719 = vmatpush.bf16.msra.mxu0 %v5756_v58  ;;  %v1704_v58 = vld [vmem:[#allocation4 + $0x38] sm:$0xff]  ;;  %v7155_v40 = vld [vmem:[#allocation55_spill] sm:$0xff] }
 0x10c   :  { %1732 = vmatpush.bf16.msra.mxu1 %v5760_v59  ;;  %v6365_v59 = vpack.c.bf16 %v1705_v47, %v1705_v47  ;;  %v1707_v46 = vld [vmem:[#allocation4 + $0x50] sm:$0xff] }
 0x10d   :  { %1745 = vmatpush.bf16.msra.mxu2 %v5762_v60  ;;  %v6369_v60 = vpack.c.bf16 %v1703_v48, %v1703_v48  ;;  %v7156_v47 = vld [vmem:[#allocation56_spill] sm:$0xff] }
 0x10e   :  { %1758 = vmatpush.bf16.msra.mxu3 %v5765_v0  ;;  %v6371_v0 = vpack.c.bf16 %v1706_v52, %v1706_v52  ;;  %v1708_v48 = vld [vmem:[#allocation4 + $0x58] sm:$0xff] }
 0x10f   :  { %1720 = vmatpush.bf16.msra.mxu0 %v5768_v7  ;;  %v7129_v7 = vld [vmem:[#allocation29_spill] sm:$0xff] }
 0x110   :  { %1733 = vmatpush.bf16.msra.mxu1 %v5772_v8  ;;  %v6375_v8 = vpack.c.bf16 %v1704_v58, %v1704_v58  ;;  %v7157_v52 = vld [vmem:[#allocation57_spill] sm:$0xff]  ;;  %v6411_v58 = vpack.c.bf16 %v1707_v46, %v1707_v46 }
 0x111   :  { %1746 = vmatpush.bf16.msra.mxu2 %v5774_v11  ;;  %v7130_v11 = vld [vmem:[#allocation30_spill] sm:$0xff] }
 0x112   :  { %1759 = vmatpush.bf16.msra.mxu3 %v5777_v16  ;;  %v7131_v16 = vld [vmem:[#allocation31_spill] sm:$0xff] }
 0x113   :  { %1721 = vmatpush.bf16.msra.mxu0 %v5780_v25  ;;  %v7132_v25 = vld [vmem:[#allocation32_spill] sm:$0xff] }
 0x114   :  { %1734 = vmatpush.bf16.msra.mxu1 %v5784_v29  ;;  %v7133_v29 = vld [vmem:[#allocation33_spill] sm:$0xff] }
 0x115   :  { %1747 = vmatpush.bf16.msra.mxu2 %v5786_v30  ;;  %v7134_v30 = vld [vmem:[#allocation34_spill] sm:$0xff] }
 0x116   :  { %1760 = vmatpush.bf16.msra.mxu3 %v5789_v37  ;;  %v7135_v37 = vld [vmem:[#allocation35_spill] sm:$0xff] }
 0x117   :  { %1722 = vmatpush.bf16.msra.mxu0 %v5792_v45  ;;  %v7136_v45 = vld [vmem:[#allocation36_spill] sm:$0xff] }
 0x118   :  { %1735 = vmatpush.bf16.msra.mxu1 %v5796_v53  ;;  %v7137_v53 = vld [vmem:[#allocation37_spill] sm:$0xff]  ;;  %v1513_v13 = vpop.f32.mrf.mxu1 }
 0x119   :  { %1748 = vmatpush.bf16.msra.mxu2 %v5798_v54  ;;  %v1500_v54 = vpop.f32.mrf.mxu0 }
 0x11a   :  { %1761 = vmatpush.bf16.msra.mxu3 %v5801_v57  ;;  %1723 = vmatmul.bf16.vlgmr.msra.gmra.mxu0 %v6369_v60  ;;  %v7138_v57 = vld [vmem:[#allocation38_spill] sm:$0xff]  ;;  %v1501_v17 = vadd.f32 %v1500_v54, %v1488_v36 }
 0x11b   :  { %1767 = vmatpush.bf16.msrb.mxu0 %v7129_v7  ;;  %1736 = vmatmul.bf16.vlgmr.msra.gmra.mxu1 %v6375_v8  ;;  %v7154_v36 = vld [vmem:[#allocation54_spill] sm:$0xff] }
 0x11c   :  { %1780 = vmatpush.bf16.msrb.mxu1 %v7130_v11  ;;  %1749 = vmatmul.bf16.vlgmr.msra.gmra.mxu2 %v6365_v59  ;;  %v1514_v21 = vadd.f32 %v1513_v13, %v1501_v17  ;;  %v7158_v7 = vld [vmem:[#allocation58_spill] sm:$0xff]  ;;  %v7159_v11 = vld [vmem:[#allocation59_spill] sm:$0xff]  ;;  %v7168_v17 = vld [vmem:[#allocation68_spill] sm:$0xff] }
 0x11d   :  { %1793 = vmatpush.bf16.msrb.mxu2 %v7131_v16  ;;  %1762 = vmatmul.bf16.vlgmr.msra.gmra.mxu3 %v6371_v0  ;;  %v6415_v16 = vpack.c.bf16 %v1708_v48, %v1708_v48  ;;  %v7166_v54 = vld [vmem:[#allocation66_spill] sm:$0xff]  ;;  %v7169_v13 = vld [vmem:[#allocation69_spill] sm:$0xff] }
 0x11e   :  { %1806 = vmatpush.bf16.msrb.mxu3 %v7132_v25  ;;  %v7160_v25 = vld [vmem:[#allocation60_spill] sm:$0xff] }
 0x11f   :  { %1768 = vmatpush.bf16.msrb.mxu0 %v7133_v29  ;;  %v1526_v61 = vpop.f32.mrf.mxu2  ;;  %v7161_v29 = vld [vmem:[#allocation61_spill] sm:$0xff] }
 0x120   :  { %1781 = vmatpush.bf16.msrb.mxu1 %v7134_v30  ;;  %v1527_v6 = vadd.f32 %v1526_v61, %v1514_v21  ;;  %v1539_v34 = vpop.f32.mrf.mxu3  ;;  %v1515_v22 = vpop.f32.mrf.mxu1  ;;  %v7162_v30 = vld [vmem:[#allocation62_spill] sm:$0xff]  ;;  %v7172_v61 = vld [vmem:[#allocation72_spill] sm:$0xff] }
 0x121   :  { %1794 = vmatpush.bf16.msrb.mxu2 %v7135_v37  ;;  %v1502_v62 = vpop.f32.mrf.mxu0  ;;  %v7163_v37 = vld [vmem:[#allocation63_spill] sm:$0xff]  ;;  %v7170_v21 = vld [vmem:[#allocation70_spill] sm:$0xff] }
 0x122   :  { %1807 = vmatpush.bf16.msrb.mxu3 %v7136_v45  ;;  %v6397_v15 = vadd.f32 %v1539_v34, %v1527_v6  ;;  %v7164_v45 = vld [vmem:[#allocation64_spill] sm:$0xff]  ;;  %v7173_v6 = vld [vmem:[#allocation73_spill] sm:$0xff]  ;;  %v7174_v34 = vld [vmem:[#allocation74_spill] sm:$0xff] }
 0x123   :  { %1769 = vmatpush.bf16.msrb.mxu0 %v7137_v53  ;;  %v7165_v53 = vld [vmem:[#allocation65_spill] sm:$0xff] }
 0x124   :  { %1782 = vmatpush.bf16.msrb.mxu1 %v7138_v57  ;;  %v7167_v57 = vld [vmem:[#allocation67_spill] sm:$0xff] }
 0x125   :  { %1795 = vmatpush.bf16.msrb.mxu2 %v7139_v1  ;;  %v421_v1 = vperm.slane %v6258_v50, 2 }
 0x126   :  { %1808 = vmatpush.bf16.msrb.mxu3 %v7140_v24 }
 0x127   :  { %1770 = vmatpush.bf16.msrb.mxu0 %v7141_v39  ;;  %v1528_v23 = vpop.f32.mrf.mxu2  ;;  %v7171_v39 = vld [vmem:[#allocation71_spill] sm:$0xff] }
 0x128   :  { %1783 = vmatpush.bf16.msrb.mxu1 %v7142_v32  ;;  %v1541_v31 = vpop.f32.mrf.mxu3  ;;  %v7179_v23 = vld [vmem:[#allocation79_spill] sm:$0xff] }
 0x129   :  { %1796 = vmatpush.bf16.msrb.mxu2 %v7143_v20  ;;  %v7180_v31 = vld [vmem:[#allocation80_spill] sm:$0xff] }
 0x12a   :  { %1809 = vmatpush.bf16.msrb.mxu3 %v7144_v44 }
 0x12b   :  { %1771 = vmatpush.bf16.msrb.mxu0 %v7145_v49  ;;  %v7175_v49 = vld [vmem:[#allocation75_spill] sm:$0xff] }
 0x12c   :  { %1784 = vmatpush.bf16.msrb.mxu1 %v7146_v38  ;;  %v7176_v38 = vld [vmem:[#allocation76_spill] sm:$0xff] }
 0x12d   :  { %1797 = vmatpush.bf16.msrb.mxu2 %v7147_v51 }
 0x12e   :  { %1810 = vmatpush.bf16.msrb.mxu3 %v7148_v5  ;;  %v7177_v5 = vld [vmem:[#allocation77_spill] sm:$0xff] }
 0x12f   :  { %1772 = vmatpush.bf16.msrb.mxu0 %v7149_v9 }
 0x130   :  { %1785 = vmatpush.bf16.msrb.mxu1 %v7150_v10 }
 0x131   :  { %1798 = vmatpush.bf16.msrb.mxu2 %v7151_v19  ;;  %v7178_v19 = vld [vmem:[#allocation78_spill] sm:$0xff] }
 0x132   :  { %1811 = vmatpush.bf16.msrb.mxu3 %v7152_v27 }
 0x133   :  { %1773 = vmatpush.bf16.msrb.mxu0 %v7153_v35  ;;  %v7181_v35 = vld [vmem:[#allocation81_spill] sm:$0xff] }
 0x134   :  { %1786 = vmatpush.bf16.msrb.mxu1 %v7154_v36  ;;  %v7182_v36 = vld [vmem:[#allocation82_spill] sm:$0xff] }
 0x135   :  { %1799 = vmatpush.bf16.msrb.mxu2 %v7155_v40  ;;  %v7183_v40 = vld [vmem:[#allocation83_spill] sm:$0xff] }
 0x136   :  { %1812 = vmatpush.bf16.msrb.mxu3 %v7156_v47  ;;  %v7184_v47 = vld [vmem:[#allocation84_spill] sm:$0xff] }
 0x137   :  { %1774 = vmatpush.bf16.msrb.mxu0 %v7157_v52  ;;  %v1552_v24 = vpop.f32.mrf.mxu0  ;;  %v7185_v52 = vld [vmem:[#allocation85_spill] sm:$0xff] }
 0x138   :  { %1787 = vmatpush.bf16.msrb.mxu1 %v7158_v7  ;;  %v1553_v32 = vadd.f32 %v1552_v24, %v421_v1  ;;  %v1565_v20 = vpop.f32.mrf.mxu1  ;;  %v7186_v7 = vld [vmem:[#allocation86_spill] sm:$0xff] }
 0x139   :  { %1800 = vmatpush.bf16.msrb.mxu2 %v7159_v11  ;;  %v7187_v11 = vld [vmem:[#allocation87_spill] sm:$0xff]  ;;  %v7198_v24 = vld [vmem:[#allocation98_spill] sm:$0xff] }
 0x13a   :  { %1813 = vmatpush.bf16.msrb.mxu3 %v7160_v25  ;;  %1775 = vmatmul.bf16.vlgmr.msrb.gmra.mxu0 %v6411_v58  ;;  %v1566_v44 = vadd.f32 %v1565_v20, %v1553_v32  ;;  %v7188_v25 = vld [vmem:[#allocation88_spill] sm:$0xff]  ;;  %v7201_v20 = vld [vmem:[#allocation101_spill] sm:$0xff] }
 0x13b   :  { %1819 = vmatpush.bf16.msra.mxu0 %v7161_v29  ;;  %1788 = vmatmul.bf16.vlgmr.msrb.gmra.mxu1 %v6415_v16  ;;  %v7189_v29 = vld [vmem:[#allocation89_spill] sm:$0xff] }
 0x13c   :  { %1832 = vmatpush.bf16.msra.mxu1 %v7162_v30  ;;  %1801 = vmatmul.bf16.vlgmr.msrb.gmra.mxu2 %v6369_v60  ;;  %v7190_v30 = vld [vmem:[#allocation90_spill] sm:$0xff] }
 0x13d   :  { %1845 = vmatpush.bf16.msra.mxu2 %v7163_v37  ;;  %1814 = vmatmul.bf16.vlgmr.msrb.gmra.mxu3 %v6375_v8  ;;  %v7191_v37 = vld [vmem:[#allocation91_spill] sm:$0xff] }
 0x13e   :  { %1858 = vmatpush.bf16.msra.mxu3 %v7164_v45  ;;  %v7192_v45 = vld [vmem:[#allocation92_spill] sm:$0xff] }
 0x13f   :  { %1820 = vmatpush.bf16.msra.mxu0 %v7165_v53  ;;  %v1578_v62 = vpop.f32.mrf.mxu2  ;;  %v1554_v10 = vpop.f32.mrf.mxu0  ;;  %v7193_v53 = vld [vmem:[#allocation93_spill] sm:$0xff] }
 0x140   :  { %1833 = vmatpush.bf16.msra.mxu1 %v7166_v54  ;;  %v1579_v51 = vadd.f32 %v1578_v62, %v1566_v44  ;;  %v1591_v22 = vpop.f32.mrf.mxu3  ;;  %v1567_v27 = vpop.f32.mrf.mxu1  ;;  %v7194_v54 = vld [vmem:[#allocation94_spill] sm:$0xff]  ;;  %v7208_v10 = vld [vmem:[#allocation108_spill] sm:$0xff] }
 0x141   :  { %1846 = vmatpush.bf16.msra.mxu2 %v7167_v57  ;;  %v7195_v57 = vld [vmem:[#allocation95_spill] sm:$0xff] }
 0x142   :  { %1859 = vmatpush.bf16.msra.mxu3 %v7168_v17  ;;  %v1592_v9 = vadd.f32 %v1591_v22, %v1579_v51  ;;  %v7196_v17 = vld [vmem:[#allocation96_spill] sm:$0xff]  ;;  %v7205_v51 = vld [vmem:[#allocation105_spill] sm:$0xff]  ;;  %v7206_v22 = vld [vmem:[#allocation106_spill] sm:$0xff] }
 0x143   :  { %1821 = vmatpush.bf16.msra.mxu0 %v7169_v13  ;;  %v7197_v13 = vld [vmem:[#allocation97_spill] sm:$0xff] }
 0x144   :  { %1834 = vmatpush.bf16.msra.mxu1 %v7170_v21  ;;  %v7199_v21 = vld [vmem:[#allocation99_spill] sm:$0xff] }
 0x145   :  { %1847 = vmatpush.bf16.msra.mxu2 %v7171_v39  ;;  %v7200_v39 = vld [vmem:[#allocation100_spill] sm:$0xff] }
 0x146   :  { %1860 = vmatpush.bf16.msra.mxu3 %v7172_v61 }
 0x147   :  { %1822 = vmatpush.bf16.msra.mxu0 %v7173_v6  ;;  %v1580_v46 = vpop.f32.mrf.mxu2  ;;  %v7202_v6 = vld [vmem:[#allocation102_spill] sm:$0xff] }
 0x148   :  { %1835 = vmatpush.bf16.msra.mxu1 %v7174_v34  ;;  %v1593_v48 = vpop.f32.mrf.mxu3  ;;  %v7203_v34 = vld [vmem:[#allocation103_spill] sm:$0xff] }
 0x149   :  { %1848 = vmatpush.bf16.msra.mxu2 %v7175_v49  ;;  %v7204_v49 = vld [vmem:[#allocation104_spill] sm:$0xff]  ;;  %v7213_v48 = vld [vmem:[#allocation113_spill] sm:$0xff] }
 0x14a   :  { %1861 = vmatpush.bf16.msra.mxu3 %v7176_v38  ;;  %v422_v38 = vperm.slane %v6258_v50, 3 }
 0x14b   :  { %1823 = vmatpush.bf16.msra.mxu0 %v7177_v5  ;;  %v7207_v5 = vld [vmem:[#allocation107_spill] sm:$0xff] }
 0x14c   :  { %1836 = vmatpush.bf16.msra.mxu1 %v7178_v19 }
 0x14d   :  { %1849 = vmatpush.bf16.msra.mxu2 %v7179_v23 }
 0x14e   :  { %1862 = vmatpush.bf16.msra.mxu3 %v7180_v31  ;;  %v7209_v31 = vld [vmem:[#allocation109_spill] sm:$0xff] }
 0x14f   :  { %1824 = vmatpush.bf16.msra.mxu0 %v7181_v35 }
 0x150   :  { %1837 = vmatpush.bf16.msra.mxu1 %v7182_v36  ;;  %v7210_v36 = vld [vmem:[#allocation110_spill] sm:$0xff] }
 0x151   :  { %1850 = vmatpush.bf16.msra.mxu2 %v7183_v40  ;;  %v7211_v40 = vld [vmem:[#allocation111_spill] sm:$0xff] }
 0x152   :  { %1863 = vmatpush.bf16.msra.mxu3 %v7184_v47  ;;  %v7212_v47 = vld [vmem:[#allocation112_spill] sm:$0xff] }
 0x153   :  { %1825 = vmatpush.bf16.msra.mxu0 %v7185_v52  ;;  %v7214_v52 = vld [vmem:[#allocation114_spill] sm:$0xff] }
 0x154   :  { %1838 = vmatpush.bf16.msra.mxu1 %v7186_v7  ;;  %v7215_v7 = vld [vmem:[#allocation115_spill] sm:$0xff] }
 0x155   :  { %1851 = vmatpush.bf16.msra.mxu2 %v7187_v11  ;;  %v7216_v11 = vld [vmem:[#allocation116_spill] sm:$0xff] }
 0x156   :  { %1864 = vmatpush.bf16.msra.mxu3 %v7188_v25 }
 0x157   :  { %1826 = vmatpush.bf16.msra.mxu0 %v7189_v29  ;;  %v1604_v32 = vpop.f32.mrf.mxu0 }
 0x158   :  { %1839 = vmatpush.bf16.msra.mxu1 %v7190_v30  ;;  %v1605_v61 = vadd.f32 %v1604_v32, %v1592_v9  ;;  %v1617_v44 = vpop.f32.mrf.mxu1  ;;  %v7217_v30 = vld [vmem:[#allocation117_spill] sm:$0xff]  ;;  %v7228_v32 = vld [vmem:[#allocation128_spill] sm:$0xff] }
 0x159   :  { %1852 = vmatpush.bf16.msra.mxu2 %v7191_v37  ;;  %v7218_v37 = vld [vmem:[#allocation118_spill] sm:$0xff] }
 0x15a   :  { %1865 = vmatpush.bf16.msra.mxu3 %v7192_v45  ;;  %1827 = vmatmul.bf16.vlgmr.msra.gmra.mxu0 %v6365_v59  ;;  %v6473_v62 = vadd.f32 %v1617_v44, %v1605_v61  ;;  %v7219_v45 = vld [vmem:[#allocation119_spill] sm:$0xff]  ;;  %v7230_v61 = vld [vmem:[#allocation130_spill] sm:$0xff] }
 0x15b   :  { %1871 = vmatpush.bf16.msrb.mxu0 %v7193_v53  ;;  %1840 = vmatmul.bf16.vlgmr.msra.gmra.mxu1 %v6371_v0  ;;  %v7220_v53 = vld [vmem:[#allocation120_spill] sm:$0xff]  ;;  %v7231_v44 = vld [vmem:[#allocation131_spill] sm:$0xff] }
 0x15c   :  { %1884 = vmatpush.bf16.msrb.mxu1 %v7194_v54  ;;  %1853 = vmatmul.bf16.vlgmr.msra.gmra.mxu2 %v6411_v58  ;;  %v7221_v54 = vld [vmem:[#allocation121_spill] sm:$0xff] }
 0x15d   :  { %1897 = vmatpush.bf16.msrb.mxu2 %v7195_v57  ;;  %1866 = vmatmul.bf16.vlgmr.msra.gmra.mxu3 %v6415_v16  ;;  %v7222_v57 = vld [vmem:[#allocation122_spill] sm:$0xff] }
 0x15e   :  { %1910 = vmatpush.bf16.msrb.mxu3 %v7196_v17  ;;  %v7223_v17 = vld [vmem:[#allocation123_spill] sm:$0xff] }
 0x15f   :  { %1872 = vmatpush.bf16.msrb.mxu0 %v7197_v13  ;;  %v1630_v9 = vpop.f32.mrf.mxu2  ;;  %v1606_v27 = vpop.f32.mrf.mxu0  ;;  %v7224_v13 = vld [vmem:[#allocation124_spill] sm:$0xff] }
 0x160   :  { %1885 = vmatpush.bf16.msrb.mxu1 %v7198_v24  ;;  %v1631_v19 = vadd.f32 %v1630_v9, %v422_v38  ;;  %v1643_v23 = vpop.f32.mrf.mxu3  ;;  %v1619_v35 = vpop.f32.mrf.mxu1  ;;  %v7225_v24 = vld [vmem:[#allocation125_spill] sm:$0xff]  ;;  %v7236_v9 = vld [vmem:[#allocation136_spill] sm:$0xff]  ;;  %v7238_v27 = vld [vmem:[#allocation138_spill] sm:$0xff] }
 0x161   :  { %1898 = vmatpush.bf16.msrb.mxu2 %v7199_v21  ;;  %v7226_v21 = vld [vmem:[#allocation126_spill] sm:$0xff] }
 0x162   :  { %1911 = vmatpush.bf16.msrb.mxu3 %v7200_v39  ;;  %v1644_v46 = vadd.f32 %v1643_v23, %v1631_v19  ;;  %v7227_v39 = vld [vmem:[#allocation127_spill] sm:$0xff]  ;;  %v7237_v23 = vld [vmem:[#allocation137_spill] sm:$0xff] }
 0x163   :  { %1873 = vmatpush.bf16.msrb.mxu0 %v7201_v20  ;;  %v7229_v20 = vld [vmem:[#allocation129_spill] sm:$0xff] }
 0x164   :  { %1886 = vmatpush.bf16.msrb.mxu1 %v7202_v6  ;;  %v7232_v6 = vld [vmem:[#allocation132_spill] sm:$0xff] }
 0x165   :  { %1899 = vmatpush.bf16.msrb.mxu2 %v7203_v34  ;;  %v7233_v34 = vld [vmem:[#allocation133_spill] sm:$0xff] }
 0x166   :  { %1912 = vmatpush.bf16.msrb.mxu3 %v7204_v49 }
 0x167   :  { %1874 = vmatpush.bf16.msrb.mxu0 %v7205_v51  ;;  %v1632_v25 = vpop.f32.mrf.mxu2  ;;  %v7234_v51 = vld [vmem:[#allocation134_spill] sm:$0xff] }
 0x168   :  { %1887 = vmatpush.bf16.msrb.mxu1 %v7206_v22  ;;  %v1645_v29 = vpop.f32.mrf.mxu3  ;;  %v7235_v22 = vld [vmem:[#allocation135_spill] sm:$0xff] }
 0x169   :  { %1900 = vmatpush.bf16.msrb.mxu2 %v7207_v5  ;;  %v7244_v29 = vld [vmem:[#allocation144_spill] sm:$0xff] }
 0x16a   :  { %1913 = vmatpush.bf16.msrb.mxu3 %v7208_v10 }
 0x16b   :  { %1875 = vmatpush.bf16.msrb.mxu0 %v7209_v31  ;;  %v7239_v31 = vld [vmem:[#allocation139_spill] sm:$0xff] }
 0x16c   :  { %1888 = vmatpush.bf16.msrb.mxu1 %v7210_v36  ;;  %v7240_v36 = vld [vmem:[#allocation140_spill] sm:$0xff] }
 0x16d   :  { %1901 = vmatpush.bf16.msrb.mxu2 %v7211_v40 }
 0x16e   :  { %1914 = vmatpush.bf16.msrb.mxu3 %v7212_v47 }
 0x16f   :  { %1876 = vmatpush.bf16.msrb.mxu0 %v7213_v48  ;;  %v7241_v48 = vld [vmem:[#allocation141_spill] sm:$0xff] }
 0x170   :  { %1889 = vmatpush.bf16.msrb.mxu1 %v7214_v52 }
 0x171   :  { %1902 = vmatpush.bf16.msrb.mxu2 %v7215_v7  ;;  %v7242_v7 = vld [vmem:[#allocation142_spill] sm:$0xff] }
 0x172   :  { %1915 = vmatpush.bf16.msrb.mxu3 %v7216_v11  ;;  %v7243_v11 = vld [vmem:[#allocation143_spill] sm:$0xff] }
 0x173   :  { %1877 = vmatpush.bf16.msrb.mxu0 %v7217_v30  ;;  %v7245_v30 = vld [vmem:[#allocation145_spill] sm:$0xff] }
 0x174   :  { %1890 = vmatpush.bf16.msrb.mxu1 %v7218_v37  ;;  %v7246_v37 = vld [vmem:[#allocation146_spill] sm:$0xff] }
 0x175   :  { %1903 = vmatpush.bf16.msrb.mxu2 %v7219_v45  ;;  %v7247_v45 = vld [vmem:[#allocation147_spill] sm:$0xff] }
 0x176   :  { %1916 = vmatpush.bf16.msrb.mxu3 %v7220_v53 }
 0x177   :  { %1878 = vmatpush.bf16.msrb.mxu0 %v7221_v54  ;;  %v1656_v49 = vpop.f32.mrf.mxu0  ;;  %v7248_v54 = vld [vmem:[#allocation148_spill] sm:$0xff] }
 0x178   :  { %1891 = vmatpush.bf16.msrb.mxu1 %v7222_v57  ;;  %v1657_v5 = vadd.f32 %v1656_v49, %v1644_v46  ;;  %v1669_v10 = vpop.f32.mrf.mxu1  ;;  %v7262_v49 = vld [vmem:[#allocation162_spill] sm:$0xff] }
 0x179   :  { %1904 = vmatpush.bf16.msrb.mxu2 %v7223_v17  ;;  %v7249_v17 = vld [vmem:[#allocation149_spill] sm:$0xff] }
 0x17a   :  { %1917 = vmatpush.bf16.msrb.mxu3 %v7224_v13  ;;  %1879 = vmatmul.bf16.vlgmr.msrb.gmra.mxu0 %v6369_v60  ;;  %v1670_v19 = vadd.f32 %v1669_v10, %v1657_v5  ;;  %v7250_v13 = vld [vmem:[#allocation150_spill] sm:$0xff]  ;;  %v7264_v5 = vld [vmem:[#allocation164_spill] sm:$0xff]  ;;  %v7265_v10 = vld [vmem:[#allocation165_spill] sm:$0xff] }
 0x17b   :  { %1923 = vmatpush.bf16.msra.mxu0 %v7225_v24  ;;  %1892 = vmatmul.bf16.vlgmr.msrb.gmra.mxu1 %v6375_v8  ;;  %v7251_v24 = vld [vmem:[#allocation151_spill] sm:$0xff] }
 0x17c   :  { %1936 = vmatpush.bf16.msra.mxu1 %v7226_v21  ;;  %1905 = vmatmul.bf16.vlgmr.msrb.gmra.mxu2 %v6365_v59  ;;  %v7252_v21 = vld [vmem:[#allocation152_spill] sm:$0xff] }
 0x17d   :  { %1949 = vmatpush.bf16.msra.mxu2 %v7227_v39  ;;  %1918 = vmatmul.bf16.vlgmr.msrb.gmra.mxu3 %v6371_v0  ;;  %v7253_v39 = vld [vmem:[#allocation153_spill] sm:$0xff] }
 0x17e   :  { %1962 = vmatpush.bf16.msra.mxu3 %v7228_v32  ;;  %v7254_v32 = vld [vmem:[#allocation154_spill] sm:$0xff] }
 0x17f   :  { %1924 = vmatpush.bf16.msra.mxu0 %v7229_v20  ;;  %v1682_v35 = vpop.f32.mrf.mxu2  ;;  %v1658_v46 = vpop.f32.mrf.mxu0  ;;  %v7255_v20 = vld [vmem:[#allocation155_spill] sm:$0xff] }
 0x180   :  { %1937 = vmatpush.bf16.msra.mxu1 %v7230_v61  ;;  %v1683_v40 = vadd.f32 %v1682_v35, %v1670_v19  ;;  %v1695_v47 = vpop.f32.mrf.mxu3  ;;  %v1671_v25 = vpop.f32.mrf.mxu1  ;;  %v7256_v61 = vld [vmem:[#allocation156_spill] sm:$0xff]  ;;  %v7270_v35 = vld [vmem:[#allocation169_spill] sm:$0xff]  ;;  %v7272_v46 = vld [vmem:[#allocation171_spill] sm:$0xff] }
 0x181   :  { %1950 = vmatpush.bf16.msra.mxu2 %v7231_v44  ;;  %v7257_v44 = vld [vmem:[#allocation157_spill] sm:$0xff]  ;;  %v7273_v25 = vld [vmem:[#allocation172_spill] sm:$0xff] }
 0x182   :  { %1963 = vmatpush.bf16.msra.mxu3 %v7232_v6  ;;  %v6519_v52 = vadd.f32 %v1695_v47, %v1683_v40  ;;  %v7258_v6 = vld [vmem:[#allocation158_spill] sm:$0xff] }
 0x183   :  { %1925 = vmatpush.bf16.msra.mxu0 %v7233_v34  ;;  %v7261_v34 = vld [vmem:[#allocation161_spill] sm:$0xff]  ;;  %v7271_v40 = vld [vmem:[#allocation170_spill] sm:$0xff] }
 0x184   :  { %1938 = vmatpush.bf16.msra.mxu1 %v7234_v51  ;;  %v7263_v51 = vld [vmem:[#allocation163_spill] sm:$0xff] }
 0x185   :  { %1951 = vmatpush.bf16.msra.mxu2 %v7235_v22 }
 0x186   :  { %1964 = vmatpush.bf16.msra.mxu3 %v7236_v9  ;;  %v7266_v9 = vperm.slane %v6258_v50, 0  ;;  %v5251_v50 = vld [vmem:[#allocation12] ss:$0 sm:$0xff] }
 0x187   :  { %1926 = vmatpush.bf16.msra.mxu0 %v7237_v23  ;;  %v1684_v53 = vpop.f32.mrf.mxu2  ;;  %v7267_v23 = vld [vmem:[#allocation166_spill] sm:$0xff] }
 0x188   :  { %1939 = vmatpush.bf16.msra.mxu1 %v7238_v27  ;;  %v1697_v57 = vpop.f32.mrf.mxu3  ;;  %v7268_v27 = vld [vmem:[#allocation167_spill] sm:$0xff] }
 0x189   :  { %1952 = vmatpush.bf16.msra.mxu2 %v7239_v31  ;;  %v7269_v31 = vld [vmem:[#allocation168_spill] sm:$0xff]  ;;  %v6572_v57 = vld [vmem:[#allocation10 + $0x38] sm:$0xff] }
 0x18a   :  { %1965 = vmatpush.bf16.msra.mxu3 %v7240_v36 }
 0x18b   :  { %1927 = vmatpush.bf16.msra.mxu0 %v7241_v48 }
 0x18c   :  { %1940 = vmatpush.bf16.msra.mxu1 %v7242_v7 }
 0x18d   :  { %1953 = vmatpush.bf16.msra.mxu2 %v7243_v11 }
 0x18e   :  { %1966 = vmatpush.bf16.msra.mxu3 %v7244_v29  ;;  %v7274_v29 = vld [vmem:[#allocation173_spill] sm:$0xff] }
 0x18f   :  { %1928 = vmatpush.bf16.msra.mxu0 %v7245_v30 }
 0x190   :  { %1941 = vmatpush.bf16.msra.mxu1 %v7246_v37  ;;  %v7275_v37 = vld [vmem:[#allocation174_spill] sm:$0xff] }
 0x191   :  { %1954 = vmatpush.bf16.msra.mxu2 %v7247_v45  ;;  %v7276_v45 = vld [vmem:[#allocation175_spill] sm:$0xff] }
 0x192   :  { %1967 = vmatpush.bf16.msra.mxu3 %v7248_v54 }
 0x193   :  { %1929 = vmatpush.bf16.msra.mxu0 %v7249_v17  ;;  %v6576_v17 = vld [vmem:[#allocation10 + $0xb8] sm:$0xff] }
 0x194   :  { %1942 = vmatpush.bf16.msra.mxu1 %v7250_v13  ;;  %v6626_v13 = vld [vmem:[#allocation10 + $0xe0] sm:$0xff] }
 0x195   :  { %1955 = vmatpush.bf16.msra.mxu2 %v6198_v41  ;;  %v7260_v41 = vld [vmem:[#allocation160_spill] sm:$0xff] }
 0x196   :  { %1968 = vmatpush.bf16.msra.mxu3 %v6201_v28  ;;  %v7259_v28 = vld [vmem:[#allocation159_spill] sm:$0xff] }
 0x197   :  { %1930 = vmatpush.bf16.msra.mxu0 %v7251_v24  ;;  %v1724_v22 = vpop.f32.mrf.mxu0  ;;  %v6629_v24 = vld [vmem:[#allocation10 + $0x18] sm:$0xff] }
 0x198   :  { %1943 = vmatpush.bf16.msra.mxu1 %v7252_v21  ;;  %v1737_v19 = vpop.f32.mrf.mxu1  ;;  %v6633_v21 = vld [vmem:[#allocation10 + $0x58] sm:$0xff] }
 0x199   :  { %1956 = vmatpush.bf16.msra.mxu2 %v7253_v39  ;;  %v6635_v39 = vld [vmem:[#allocation10 + $0x98] sm:$0xff] }
 0x19a   :  { %1969 = vmatpush.bf16.msra.mxu3 %v7254_v32  ;;  %1931 = vmatmul.bf16.vlgmr.msra.gmra.mxu0 %v6411_v58  ;;  %v6638_v32 = vld [vmem:[#allocation10 + $0xd8] sm:$0xff] }
 0x19b   :  { %1975 = vmatpush.bf16.msrb.mxu0 %v7255_v20  ;;  %1944 = vmatmul.bf16.vlgmr.msra.gmra.mxu1 %v6415_v16 }
 0x19c   :  { %1988 = vmatpush.bf16.msrb.mxu1 %v7256_v61  ;;  %1957 = vmatmul.bf16.vlgmr.msra.gmra.mxu2 %v6369_v60  ;;  %v1725_v60 = vadd.f32 %v1724_v22, %v7266_v9  ;;  %v6657_v22 = vld [vmem:[#allocation10 + $0x48] sm:$0xff] }
 0x19d   :  { %2001 = vmatpush.bf16.msrb.mxu2 %v7257_v44  ;;  %1970 = vmatmul.bf16.vlgmr.msra.gmra.mxu3 %v6375_v8 }
 0x19e   :  { %2014 = vmatpush.bf16.msrb.mxu3 %v7258_v6  ;;  %v1738_v8 = vadd.f32 %v1737_v19, %v1725_v60  ;;  %v6641_v6 = vld [vmem:[#allocation10 + $0x10] sm:$0xff]  ;;  %v6665_v19 = vld [vmem:[#allocation10] sm:$0xff] }
 0x19f   :  { %1976 = vmatpush.bf16.msrb.mxu0 %v7259_v28  ;;  %v1750_v36 = vpop.f32.mrf.mxu2  ;;  %v1726_v11 = vpop.f32.mrf.mxu0 }
 0x1a0   :  { %1989 = vmatpush.bf16.msrb.mxu1 %v7260_v41  ;;  %v1751_v47 = vadd.f32 %v1750_v36, %v1738_v8  ;;  %v1763_v48 = vpop.f32.mrf.mxu3  ;;  %v1739_v30 = vpop.f32.mrf.mxu1  ;;  %v6645_v41 = vld [vmem:[#allocation10 + $0x50] sm:$0xff]  ;;  %v6672_v8 = vld [vmem:[#allocation10 + $0x40] sm:$0xff] }
 0x1a1   :  { %2002 = vmatpush.bf16.msrb.mxu2 %v7261_v34  ;;  %v6647_v34 = vld [vmem:[#allocation10 + $0x90] sm:$0xff]  ;;  %v6683_v36 = vld [vmem:[#allocation10 + $0xc0] sm:$0xff] }
 0x1a2   :  { %2015 = vmatpush.bf16.msrb.mxu3 %v7262_v49  ;;  %v6559_v7 = vadd.f32 %v1763_v48, %v1751_v47  ;;  %v6650_v49 = vld [vmem:[#allocation10 + $0xd0] sm:$0xff] }
 0x1a3   :  { %1977 = vmatpush.bf16.msrb.mxu0 %v7263_v51  ;;  %v6653_v51 = vld [vmem:[#allocation10 + $0x8] sm:$0xff] }
 0x1a4   :  { %1990 = vmatpush.bf16.msrb.mxu1 %v7264_v5  ;;  %v6659_v5 = vld [vmem:[#allocation10 + $0x88] sm:$0xff] }
 0x1a5   :  { %2003 = vmatpush.bf16.msrb.mxu2 %v7265_v10  ;;  %v6662_v10 = vld [vmem:[#allocation10 + $0xc8] sm:$0xff] }
 0x1a6   :  { %2016 = vmatpush.bf16.msrb.mxu3 %v7267_v23  ;;  %v6668_v23 = vmax.f32 %v6343_v14, 0.0  ;;  %v6686_v14 = vmax.f32 %v6519_v52, 0.0 }
 0x1a7   :  { %1978 = vmatpush.bf16.msrb.mxu0 %v7268_v27  ;;  %v1752_v53 = vpop.f32.mrf.mxu2  ;;  %v6674_v27 = vld [vmem:[#allocation10 + $0x80] sm:$0xff] }
 0x1a8   :  { %1991 = vmatpush.bf16.msrb.mxu1 %v7269_v31  ;;  %v1765_v54 = vpop.f32.mrf.mxu3  ;;  %v6677_v31 = vmax.f32 %v6397_v15, 0.0  ;;  %v2034_v52 = vpack.c.bf16 %v6686_v14, %v6686_v14 }
 0x1a9   :  { %2004 = vmatpush.bf16.msrb.mxu2 %v7270_v35  ;;  %v6680_v35 = vmax.f32 %v6473_v62, 0.0 }
 0x1aa   :  { %2017 = vmatpush.bf16.msrb.mxu3 %v7271_v40  ;;  %v2031_v40 = vpack.c.bf16 %v6668_v23, %v6668_v23  ;;  %v2032_v15 = vpack.c.bf16 %v6677_v31, %v6677_v31 }
 0x1ab   :  { %1979 = vmatpush.bf16.msrb.mxu0 %v7272_v46  ;;  %v2033_v62 = vpack.c.bf16 %v6680_v35, %v6680_v35 }
 0x1ac   :  { %1992 = vmatpush.bf16.msrb.mxu1 %v7273_v25 }
 0x1ad   :  { %2005 = vmatpush.bf16.msrb.mxu2 %v7274_v29 }
 0x1ae   :  { %2018 = vmatpush.bf16.msrb.mxu3 %v6285_v3  ;;  %v6574_v3 = vld [vmem:[#allocation10 + $0x78] sm:$0xff] }
 0x1af   :  { %1980 = vmatpush.bf16.msrb.mxu0 %v7275_v37 }
 0x1b0   :  { %1993 = vmatpush.bf16.msrb.mxu1 %v6292_v43  ;;  %v6579_v43 = vld [vmem:[#allocation10 + $0xf8] sm:$0xff] }
 0x1b1   :  { %2006 = vmatpush.bf16.msrb.mxu2 %v7276_v45 }
 0x1b2   :  { %2019 = vmatpush.bf16.msrb.mxu3 %v6297_v33  ;;  %v6585_v33 = vld [vmem:[#allocation10 + $0x30] sm:$0xff] }
 0x1b3   :  { %1981 = vmatpush.bf16.msrb.mxu0 %v6300_v42  ;;  %v6589_v42 = vld [vmem:[#allocation10 + $0x70] sm:$0xff] }
 0x1b4   :  { %1994 = vmatpush.bf16.msrb.mxu1 %v6304_v2  ;;  %v6591_v2 = vld [vmem:[#allocation10 + $0xb0] sm:$0xff] }
 0x1b5   :  { %2007 = vmatpush.bf16.msrb.mxu2 %v6306_v4  ;;  %v6601_v4 = vld [vmem:[#allocation10 + $0x28] sm:$0xff] }
 0x1b6   :  { %2020 = vmatpush.bf16.msrb.mxu3 %v6309_v56  ;;  %v6605_v56 = vld [vmem:[#allocation10 + $0x68] sm:$0xff] }
 0x1b7   :  { %1982 = vmatpush.bf16.msrb.mxu0 %v6312_v26  ;;  %v6595_v26 = vld [vmem:[#allocation10 + $0xf0] sm:$0xff] }
 0x1b8   :  { %1995 = vmatpush.bf16.msrb.mxu1 %v6316_v12  ;;  %v6607_v12 = vld [vmem:[#allocation10 + $0xa8] sm:$0xff] }
 0x1b9   :  { %2008 = vmatpush.bf16.msrb.mxu2 %v6318_v63  ;;  %v6610_v63 = vld [vmem:[#allocation10 + $0xe8] sm:$0xff] }
 0x1ba   :  { %2021 = vmatpush.bf16.msrb.mxu3 %v6321_v55  ;;  %1983 = vmatmul.bf16.vlgmr.msrb.gmra.mxu0 %v6365_v59  ;;  %v6612_v55 = vpop.f32.mrf.mxu0  ;;  %v6615_v59 = vld [vmem:[#allocation10 + $0x20] sm:$0xff] }
 0x1bb   :  { %2295 = vmatpush.bf16.msra.mxu0 %v6572_v57  ;;  %1996 = vmatmul.bf16.vlgmr.msrb.gmra.mxu1 %v6371_v0  ;;  %v6617_v0 = vpop.f32.mrf.mxu1  ;;  %v1777_v53 = vadd.f32 %v6612_v55, %v6559_v7 }
 0x1bc   :  { %2308 = vmatpush.bf16.msra.mxu1 %v6574_v3  ;;  %2009 = vmatmul.bf16.vlgmr.msrb.gmra.mxu2 %v6411_v58  ;;  %v6621_v58 = vld [vmem:[#allocation10 + $0x60] sm:$0xff] }
 0x1bd   :  { %2321 = vmatpush.bf16.msra.mxu2 %v6576_v17  ;;  %2022 = vmatmul.bf16.vlgmr.msrb.gmra.mxu3 %v6415_v16  ;;  %v6623_v16 = vld [vmem:[#allocation10 + $0xa0] sm:$0xff] }
 0x1be   :  { %2334 = vmatpush.bf16.msra.mxu3 %v6579_v43 }
 0x1bf   :  { %2296 = vmatpush.bf16.msra.mxu0 %v6585_v33  ;;  %v1802_v20 = vpop.f32.mrf.mxu2 }
 0x1c0   :  { %2309 = vmatpush.bf16.msra.mxu1 %v6589_v42  ;;  %v1815_v61 = vpop.f32.mrf.mxu3  ;;  %v1803_v47 = vadd.f32 %v1802_v20, %v420_v18 }
 0x1c1   :  { %2322 = vmatpush.bf16.msra.mxu2 %v6591_v2 }
 0x1c2   :  { %2335 = vmatpush.bf16.msra.mxu3 %v6595_v26  ;;  %v1778_v44 = vpop.f32.mrf.mxu0  ;;  %v1816_v48 = vadd.f32 %v1815_v61, %v1803_v47 }
 0x1c3   :  { %2297 = vmatpush.bf16.msra.mxu0 %v6601_v4  ;;  %v1791_v28 = vpop.f32.mrf.mxu1 }
 0x1c4   :  { %2310 = vmatpush.bf16.msra.mxu1 %v6605_v56 }
 0x1c5   :  { %2323 = vmatpush.bf16.msra.mxu2 %v6607_v12 }
 0x1c6   :  { %2336 = vmatpush.bf16.msra.mxu3 %v6610_v63 }
 0x1c7   :  { %2298 = vmatpush.bf16.msra.mxu0 %v6615_v59  ;;  %v1804_v9 = vpop.f32.mrf.mxu2 }
 0x1c8   :  { %2311 = vmatpush.bf16.msra.mxu1 %v6621_v58  ;;  %v1817_v60 = vpop.f32.mrf.mxu3 }
 0x1c9   :  { %2324 = vmatpush.bf16.msra.mxu2 %v6623_v16 }
 0x1ca   :  { %2337 = vmatpush.bf16.msra.mxu3 %v6626_v13 }
 0x1cb   :  { %2299 = vmatpush.bf16.msra.mxu0 %v6629_v24 }
 0x1cc   :  { %2312 = vmatpush.bf16.msra.mxu1 %v6633_v21 }
 0x1cd   :  { %2325 = vmatpush.bf16.msra.mxu2 %v6635_v39 }
 0x1ce   :  { %2338 = vmatpush.bf16.msra.mxu3 %v6638_v32 }
 0x1cf   :  { %2300 = vmatpush.bf16.msra.mxu0 %v6641_v6 }
 0x1d0   :  { %2313 = vmatpush.bf16.msra.mxu1 %v6645_v41 }
 0x1d1   :  { %2326 = vmatpush.bf16.msra.mxu2 %v6647_v34 }
 0x1d2   :  { %2339 = vmatpush.bf16.msra.mxu3 %v6650_v49 }
 0x1d3   :  { %2301 = vmatpush.bf16.msra.mxu0 %v6653_v51 }
 0x1d4   :  { %2314 = vmatpush.bf16.msra.mxu1 %v6657_v22 }
 0x1d5   :  { %2327 = vmatpush.bf16.msra.mxu2 %v6659_v5 }
 0x1d6   :  { %2340 = vmatpush.bf16.msra.mxu3 %v6662_v10 }
 0x1d7   :  { %2302 = vmatpush.bf16.msra.mxu0 %v6665_v19  ;;  %v1828_v46 = vpop.f32.mrf.mxu0 }
 0x1d8   :  { %2315 = vmatpush.bf16.msra.mxu1 %v6672_v8  ;;  %v1829_v18 = vadd.f32 %v1828_v46, %v1816_v48  ;;  %v1841_v11 = vpop.f32.mrf.mxu1 }
 0x1d9   :  { %2328 = vmatpush.bf16.msra.mxu2 %v6674_v27 }
 0x1da   :  { %2341 = vmatpush.bf16.msra.mxu3 %v6683_v36  ;;  %2303 = vmatmul.bf16.vlgmr.msra.gmra.mxu0 %v2031_v40  ;;  %v1842_v25 = vadd.f32 %v1841_v11, %v1829_v18 }
 0x1db   :  { %2364 = vmatpush.bf16.msrb.mxu0 %v6572_v57  ;;  %2316 = vmatmul.bf16.vlgmr.msra.gmra.mxu1 %v2032_v15 }
 0x1dc   :  { %2377 = vmatpush.bf16.msrb.mxu1 %v6574_v3  ;;  %2329 = vmatmul.bf16.vlgmr.msra.gmra.mxu2 %v2033_v62  ;;  %v1790_v3 = vadd.f32 %v6617_v0, %v1777_v53 }
 0x1dd   :  { %2342 = vmatmul.bf16.vlgmr.msra.gmra.mxu3 %v2034_v52  ;;  %2390 = vmatpush.bf16.msrb.mxu2 %v6576_v17 }
 0x1de   :  { %2403 = vmatpush.bf16.msrb.mxu3 %v6579_v43  ;;  %v6732_v7 = vmax.f32 %v1790_v3, 0.0 }
 0x1df   :  { %2365 = vmatpush.bf16.msrb.mxu0 %v6585_v33  ;;  %v1854_v29 = vpop.f32.mrf.mxu2  ;;  %v1830_v45 = vpop.f32.mrf.mxu0 }
 0x1e0   :  { %2378 = vmatpush.bf16.msrb.mxu1 %v6589_v42  ;;  %v1867_v30 = vpop.f32.mrf.mxu3  ;;  %v1855_v37 = vadd.f32 %v1854_v29, %v1842_v25  ;;  %v1843_v54 = vpop.f32.mrf.mxu1 }
 0x1e1   :  { %2391 = vmatpush.bf16.msrb.mxu2 %v6591_v2  ;;  %v2360_v2 = vpack.c.bf16 %v6732_v7, %v6732_v7  ;;  %v5252_v54 = vld [vmem:[#allocation13] ss:$0 sm:$0xff] }
 0x1e2   :  { %2404 = vmatpush.bf16.msrb.mxu3 %v6595_v26  ;;  %v1868_v57 = vadd.f32 %v1867_v30, %v1855_v37 }
 0x1e3   :  { %2366 = vmatpush.bf16.msrb.mxu0 %v6601_v4 }
 0x1e4   :  { %2379 = vmatpush.bf16.msrb.mxu1 %v6605_v56  ;;  %v6728_v33 = vmax.f32 %v1868_v57, 0.0 }
 0x1e5   :  { %2392 = vmatpush.bf16.msrb.mxu2 %v6607_v12 }
 0x1e6   :  { %2405 = vmatpush.bf16.msrb.mxu3 %v6610_v63  ;;  %v2361_v42 = vpack.c.bf16 %v6728_v33, %v6728_v33 }
 0x1e7   :  { %2367 = vmatpush.bf16.msrb.mxu0 %v6615_v59  ;;  %v1856_v17 = vpop.f32.mrf.mxu2 }
 0x1e8   :  { %2380 = vmatpush.bf16.msrb.mxu1 %v6621_v58  ;;  %v1869_v43 = vpop.f32.mrf.mxu3 }
 0x1e9   :  { %2393 = vmatpush.bf16.msrb.mxu2 %v6623_v16 }
 0x1ea   :  { %2406 = vmatpush.bf16.msrb.mxu3 %v6626_v13 }
 0x1eb   :  { %2368 = vmatpush.bf16.msrb.mxu0 %v6629_v24 }
 0x1ec   :  { %2381 = vmatpush.bf16.msrb.mxu1 %v6633_v21 }
 0x1ed   :  { %2394 = vmatpush.bf16.msrb.mxu2 %v6635_v39 }
 0x1ee   :  { %2407 = vmatpush.bf16.msrb.mxu3 %v6638_v32 }
 0x1ef   :  { %2369 = vmatpush.bf16.msrb.mxu0 %v6641_v6 }
 0x1f0   :  { %2382 = vmatpush.bf16.msrb.mxu1 %v6645_v41 }
 0x1f1   :  { %2395 = vmatpush.bf16.msrb.mxu2 %v6647_v34 }
 0x1f2   :  { %2408 = vmatpush.bf16.msrb.mxu3 %v6650_v49 }
 0x1f3   :  { %2370 = vmatpush.bf16.msrb.mxu0 %v6653_v51 }
 0x1f4   :  { %2383 = vmatpush.bf16.msrb.mxu1 %v6657_v22 }
 0x1f5   :  { %2396 = vmatpush.bf16.msrb.mxu2 %v6659_v5 }
 0x1f6   :  { %2409 = vmatpush.bf16.msrb.mxu3 %v6662_v10 }
 0x1f7   :  { %2371 = vmatpush.bf16.msrb.mxu0 %v6665_v19  ;;  %v1880_v26 = vpop.f32.mrf.mxu0 }
 0x1f8   :  { %2384 = vmatpush.bf16.msrb.mxu1 %v6672_v8  ;;  %v1893_v4 = vpop.f32.mrf.mxu1  ;;  %v1881_v59 = vadd.f32 %v1880_v26, %v421_v1 }
 0x1f9   :  { %2397 = vmatpush.bf16.msrb.mxu2 %v6674_v27 }
 0x1fa   :  { %2372 = vmatmul.bf16.vlgmr.msrb.gmra.mxu0 %v2360_v2  ;;  %2410 = vmatpush.bf16.msrb.mxu3 %v6683_v36  ;;  %v1894_v16 = vadd.f32 %v1893_v4, %v1881_v59 }
 0x1fb   :  { %2385 = vmatmul.bf16.vlgmr.msrb.gmra.mxu1 %v2361_v42 }
 0x1ff   :  { %v1906_v56 = vpop.f32.mrf.mxu2  ;;  %v1882_v12 = vpop.f32.mrf.mxu0 }
 0x200   :  { %v1919_v63 = vpop.f32.mrf.mxu3  ;;  %v1895_v55 = vpop.f32.mrf.mxu1  ;;  %v1907_v13 = vadd.f32 %v1906_v56, %v1894_v16 }
 0x202   :  { %v1920_v24 = vadd.f32 %v1919_v63, %v1907_v13 }
 0x207   :  { %v1908_v0 = vpop.f32.mrf.mxu2 }
 0x208   :  { %v1921_v58 = vpop.f32.mrf.mxu3 }
 0x217   :  { %v1932_v21 = vpop.f32.mrf.mxu0 }
 0x218   :  { %v1933_v39 = vadd.f32 %v1932_v21, %v1920_v24  ;;  %v1945_v32 = vpop.f32.mrf.mxu1  ;;  %v5563_v21 = vmov 0  }
 0x219   :  { %5249 = vset.pattern.permute.xlu1 %v5563_v21  ;;  %5250 = vset.pattern.permute.xlu0 %v5563_v21  ;;  %v5172_v21 = vld [vmem:[#allocation15 + $0x1c4] sm:$0xf0] }
 0x21a   :  { %v1946_v20 = vadd.f32 %v1945_v32, %v1933_v39  ;;  %v5253_v32 = vld [vmem:[#allocation2] ss:$0 sm:$0xff] }
 0x21c   :  { %v6747_v61 = vmax.f32 %v1946_v20, 0.0 }
 0x21e   :  { %v2362_v44 = vpack.c.bf16 %v6747_v61, %v6747_v61 }
 0x21f   :  { %v1958_v6 = vpop.f32.mrf.mxu2  ;;  %v1934_v41 = vpop.f32.mrf.mxu0 }
 0x220   :  { %v1971_v28 = vpop.f32.mrf.mxu3  ;;  %2398 = vmatmul.bf16.vlgmr.msrb.gmra.mxu2 %v2362_v44  ;;  %v1947_v34 = vpop.f32.mrf.mxu1  ;;  %v1959_v51 = vadd.f32 %v1958_v6, %v422_v38  ;;  %v4483_v41 = vld [vmem:[#allocation15 + $0x70] sm:$0xf] }
 0x221   :  { %v5130_v34 = vld [vmem:[#allocation15 + $0x74] sm:$0xf0] }
 0x222   :  { %v1972_v22 = vadd.f32 %v1971_v28, %v1959_v51 }
 0x227   :  { %v1960_v1 = vpop.f32.mrf.mxu2 }
 0x228   :  { %v1973_v49 = vpop.f32.mrf.mxu3  ;;  %v4547_v1 = vld [vmem:[#allocation15 + $0xf0] sm:$0xf] }
 0x237   :  { %v1984_v5 = vpop.f32.mrf.mxu0 }
 0x238   :  { %v1997_v10 = vpop.f32.mrf.mxu1  ;;  %v1985_v9 = vadd.f32 %v1984_v5, %v1972_v22  ;;  %v4484_v22 = vor.u32 %v5130_v34, %v4483_v41  ;;  %v5146_v5 = vld [vmem:[#allocation15 + $0xf4] sm:$0xf0] }
 0x23a   :  { %v1998_v60 = vadd.f32 %v1997_v10, %v1985_v9  ;;  %v4611_v10 = vld [vmem:[#allocation15 + $0x170] sm:$0xf]  ;;  %v5162_v9 = vld [vmem:[#allocation15 + $0x174] sm:$0xf0]  ;;  %2848 = vmatpush.bf16.msra.mxu0 %v4484_v22 }
 0x23b   :  { %v4643_v22 = vld [vmem:[#allocation15 + $0x1b0] sm:$0xf] }
 0x23f   :  { %v2010_v19 = vpop.f32.mrf.mxu2  ;;  %v1986_v36 = vpop.f32.mrf.mxu0 }
 0x240   :  { %v2011_v8 = vadd.f32 %v2010_v19, %v1998_v60  ;;  %v2023_v27 = vpop.f32.mrf.mxu3  ;;  %v1999_v40 = vpop.f32.mrf.mxu1  ;;  %v4548_v60 = vor.u32 %v5146_v5, %v4547_v1  ;;  %v4612_v19 = vor.u32 %v5162_v9, %v4611_v10  ;;  %v4475_v36 = vld [vmem:[#allocation15 + $0x60] sm:$0xf]  ;;  %v5138_v1 = vld [vmem:[#allocation15 + $0xb4] sm:$0xf0] }
 0x241   :  { %v5170_v5 = vld [vmem:[#allocation15 + $0x1b4] sm:$0xf0] }
 0x242   :  { %v2024_v15 = vadd.f32 %v2023_v27, %v2011_v8  ;;  %v4675_v8 = vld [vmem:[#allocation15 + $0x1f0] sm:$0xf]  ;;  %v5178_v27 = vld [vmem:[#allocation15 + $0x1f4] sm:$0xf0]  ;;  %2861 = vmatpush.bf16.msra.mxu1 %v4548_v60  ;;  %2874 = vmatpush.bf16.msra.mxu2 %v4612_v19  ;;  %v4443_v19 = vld [vmem:[#allocation15 + $0x20] sm:$0xf] }
 0x244   :  { %v6753_v62 = vmax.f32 %v2024_v15, 0.0 }
 0x246   :  { %v2363_v52 = vpack.c.bf16 %v6753_v62, %v6753_v62 }
 0x247   :  { %v2012_v47 = vpop.f32.mrf.mxu2 }
 0x248   :  { %v2025_v48 = vpop.f32.mrf.mxu3  ;;  %2411 = vmatmul.bf16.vlgmr.msrb.gmra.mxu3 %v2363_v52  ;;  %v4676_v52 = vor.u32 %v5178_v27, %v4675_v8  ;;  %v5128_v47 = vld [vmem:[#allocation15 + $0x64] sm:$0xf0]  ;;  %v4644_v27 = vor.u32 %v5170_v5, %v4643_v22 }
 0x249   :  { %v4476_v48 = vor.u32 %v5128_v47, %v4475_v36  ;;  %v5120_v8 = vld [vmem:[#allocation15 + $0x24] sm:$0xf0]  ;;  %v4507_v36 = vld [vmem:[#allocation15 + $0xa0] sm:$0xf] }
 0x24a   :  { %2887 = vmatpush.bf16.msra.mxu3 %v4676_v52  ;;  %v5152_v52 = vld [vmem:[#allocation15 + $0x124] sm:$0xf0]  ;;  %v4635_v47 = vld [vmem:[#allocation15 + $0x1a0] sm:$0xf] }
 0x24b   :  { %2849 = vmatpush.bf16.msra.mxu0 %v4476_v48  ;;  %v5168_v48 = vld [vmem:[#allocation15 + $0x1a4] sm:$0xf0] }
 0x257   :  { %v2304_v38 = vpop.f32.mrf.mxu0 }
 0x258   :  { %v2317_v46 = vpop.f32.mrf.mxu1  ;;  %v2305_v18 = vadd.f32 %v5251_v50, %v2304_v38  ;;  %v5144_v38 = vld [vmem:[#allocation15 + $0xe4] sm:$0xf0] }
 0x25a   :  { %v2318_v11 = vadd.f32 %v2317_v46, %v2305_v18  ;;  %v4603_v46 = vld [vmem:[#allocation15 + $0x160] sm:$0xf] }
 0x25f   :  { %v2330_v25 = vpop.f32.mrf.mxu2  ;;  %v2306_v37 = vpop.f32.mrf.mxu0 }
 0x260   :  { %v2331_v29 = vadd.f32 %v2330_v25, %v2318_v11  ;;  %v2343_v30 = vpop.f32.mrf.mxu3  ;;  %v2319_v45 = vpop.f32.mrf.mxu1  ;;  %v5160_v11 = vld [vmem:[#allocation15 + $0x164] sm:$0xf0]  ;;  %v4667_v25 = vld [vmem:[#allocation15 + $0x1e0] sm:$0xf] }
 0x261   :  { %v4467_v45 = vld [vmem:[#allocation15 + $0x50] sm:$0xf] }
 0x262   :  { %v2344_v53 = vadd.f32 %v2343_v30, %v2331_v29  ;;  %v5176_v29 = vld [vmem:[#allocation15 + $0x1e4] sm:$0xf0]  ;;  %v4604_v30 = vor.u32 %v5160_v11, %v4603_v46  ;;  %v4435_v46 = vld [vmem:[#allocation15 + $0x10] sm:$0xf] }
 0x263   :  { %v4668_v37 = vor.u32 %v5176_v29, %v4667_v25  ;;  %v4636_v29 = vor.u32 %v5168_v48, %v4635_v47  ;;  %v5125_v47 = vld [vmem:[#allocation15 + $0x54] sm:$0xf] }
 0x264   :  { %v2347_v57 = vmax.f32 %v2344_v53, 0.0  ;;  %v5126_v53 = vld [vmem:[#allocation15 + $0x54] sm:$0xf0]  ;;  %2875 = vmatpush.bf16.msra.mxu2 %v4604_v30  ;;  %v4499_v30 = vld [vmem:[#allocation15 + $0x90] sm:$0xf] }
 0x265   :  { %2888 = vmatpush.bf16.msra.mxu3 %v4668_v37  ;;  %v5134_v37 = vld [vmem:[#allocation15 + $0x94] sm:$0xf0] }
 0x266   :  { %v2352_v3 = vmul.f32 %v5252_v54, %v2347_v57  ;;  %v4468_v57 = vor.u32 %v5126_v53, %v4467_v45  ;;  %v4563_v45 = vld [vmem:[#allocation15 + $0x110] sm:$0xf] }
 0x267   :  { %v2332_v17 = vpop.f32.mrf.mxu2 }
 0x268   :  { %v2345_v43 = vpop.f32.mrf.mxu3  ;;  %2353 = vadd.xlane.f32.xlu0 %v2352_v3  ;;  %v5142_v3 = vld [vmem:[#allocation15 + $0xd4] sm:$0xf0]  ;;  %v4595_v17 = vld [vmem:[#allocation15 + $0x150] sm:$0xf]  ;;  %2850 = vmatpush.bf16.msra.mxu0 %v4468_v57 }
 0x269   :  { %v5158_v43 = vld [vmem:[#allocation15 + $0x154] sm:$0xf0]  ;;  %v4627_v57 = vld [vmem:[#allocation15 + $0x190] sm:$0xf] }
 0x277   :  { %v2373_v42 = vpop.f32.mrf.mxu0 }
 0x278   :  { %v2374_v2 = vadd.f32 %v5251_v50, %v2373_v42  ;;  %v2386_v26 = vpop.f32.mrf.mxu1  ;;  %v4539_v50 = vld [vmem:[#allocation15 + $0xe0] sm:$0xf] }
 0x279   :  { %v4540_v18 = vor.u32 %v5144_v38, %v4539_v50  ;;  %v4444_v50 = vor.u32 %v5120_v8, %v4443_v19  ;;  %v4541_v8 = vld [vmem:[#allocation15 + $0xe8] sm:$0xf0] }
 0x27a   :  { %v2387_v4 = vadd.f32 %v2386_v26, %v2374_v2  ;;  %v4596_v2 = vor.u32 %v5158_v43, %v4595_v17  ;;  %v4659_v26 = vld [vmem:[#allocation15 + $0x1d0] sm:$0xf]  ;;  %v4427_v43 = vld [vmem:[#allocation15] sm:$0xf] }
 0x27b   :  { %2862 = vmatpush.bf16.msra.mxu1 %v4540_v18  ;;  %v5118_v18 = vld [vmem:[#allocation15 + $0x14] sm:$0xf0] }
 0x27c   :  { %2876 = vmatpush.bf16.msra.mxu2 %v4596_v2  ;;  %v4436_v17 = vor.u32 %v5118_v18, %v4435_v46  ;;  %v5116_v2 = vld [vmem:[#allocation15 + $0x4] sm:$0xf0]  ;;  %v4533_v46 = vld [vmem:[#allocation15 + $0xd8] sm:$0xf0] }
 0x27f   :  { %v2375_v56 = vpop.f32.mrf.mxu0 }
 0x280   :  { %v2388_v12 = vpop.f32.mrf.mxu1  ;;  %v4459_v56 = vld [vmem:[#allocation15 + $0x40] sm:$0xf] }
 0x2a3   :  { %v2399_v63 = vpop.f32.mrf.mxu2 }
 0x2a4   :  { %v2400_v59 = vadd.f32 %v2399_v63, %v2387_v4  ;;  %v5174_v4 = vld [vmem:[#allocation15 + $0x1d4] sm:$0xf0]  ;;  %v5124_v63 = vld [vmem:[#allocation15 + $0x44] sm:$0xf0] }
 0x2a5   :  { %v4660_v12 = vor.u32 %v5174_v4, %v4659_v26  ;;  %v4491_v26 = vld [vmem:[#allocation15 + $0x80] sm:$0xf]  ;;  %v5132_v4 = vld [vmem:[#allocation15 + $0x84] sm:$0xf0] }
 0x2a7   :  { %2889 = vmatpush.bf16.msra.mxu3 %v4660_v12 }
 0x2ab   :  { %v2401_v55 = vpop.f32.mrf.mxu2 }
 0x2ac   :  { %v4523_v55 = vld [vmem:[#allocation15 + $0xc0] sm:$0xf] }
 0x2cb   :  { %v2412_v0 = vpop.f32.mrf.mxu3 }
 0x2cc   :  { %v2413_v58 = vadd.f32 %v2412_v0, %v2400_v59  ;;  %v5140_v59 = vld [vmem:[#allocation15 + $0xc4] sm:$0xf0]  ;;  %v4587_v0 = vld [vmem:[#allocation15 + $0x140] sm:$0xf] }
 0x2ce   :  { %v2416_v16 = vmax.f32 %v2413_v58, 0.0  ;;  %v5156_v58 = vld [vmem:[#allocation15 + $0x144] sm:$0xf0] }
 0x2d0   :  { %v2417_v13 = vmul.f32 %v5252_v54, %v2416_v16  ;;  %v4531_v54 = vld [vmem:[#allocation15 + $0xd0] sm:$0xf]  ;;  %v4651_v16 = vld [vmem:[#allocation15 + $0x1c0] sm:$0xf] }
 0x2d1   :  { %v4532_v42 = vor.u32 %v5142_v3, %v4531_v54  ;;  %v4652_v34 = vor.u32 %v5172_v21, %v4651_v16  ;;  %v5150_v54 = vld [vmem:[#allocation15 + $0x114] sm:$0xf0]  ;;  %v4485_v16 = vld [vmem:[#allocation15 + $0x78] sm:$0xf0] }
 0x2d2   :  { %2418 = vadd.xlane.f32.xlu0 %v2417_v13  ;;  %v5166_v3 = vld [vmem:[#allocation15 + $0x194] sm:$0xf0]  ;;  %v4549_v21 = vld [vmem:[#allocation15 + $0xf8] sm:$0xf0] }
 0x2d3   :  { %v2414_v24 = vpop.f32.mrf.mxu3  ;;  %2863 = vmatpush.bf16.msra.mxu1 %v4532_v42  ;;  %2890 = vmatpush.bf16.msra.mxu3 %v4652_v34  ;;  %v4500_v42 = vor.u32 %v5134_v37, %v4499_v30  ;;  %v4628_v12 = vor.u32 %v5166_v3, %v4627_v57  ;;  %v5173_v30 = vld [vmem:[#allocation15 + $0x1d4] sm:$0xf]  ;;  %v4461_v57 = vld [vmem:[#allocation15 + $0x48] sm:$0xf0]  ;;  %v5139_v3 = vld [vmem:[#allocation15 + $0xc4] sm:$0xf] }
 0x2d4   :  { %v4460_v24 = vor.u32 %v5124_v63, %v4459_v56  ;;  %v4564_v56 = vor.u32 %v5150_v54, %v4563_v45  ;;  %v4555_v63 = vld [vmem:[#allocation15 + $0x100] sm:$0xf]  ;;  %v4661_v45 = vld [vmem:[#allocation15 + $0x1d8] sm:$0xf0]  ;;  %v5123_v54 = vld [vmem:[#allocation15 + $0x44] sm:$0xf] }
 0x2d6   :  { %2851 = vmatpush.bf16.msra.mxu0 %v4460_v24  ;;  %v5145_v24 = vld [vmem:[#allocation15 + $0xf4] sm:$0xf] }
 0x2d7   :  { %2891 = vmatpush.bf16.msra.mxu3 %v4644_v27  ;;  %v5159_v27 = vld [vmem:[#allocation15 + $0x164] sm:$0xf] }
 0x2db   :  { %v2354_v39 = vpop.xlane.xlu0 %2353  ;;  %2892 = vmatpush.bf16.msra.mxu3 %v4636_v29  ;;  %v4597_v29 = vld [vmem:[#allocation15 + $0x158] sm:$0xf0] }
 0x2dc   :  { %v2359_v44 = vadd.f32 %v5253_v32, %v2354_v39 }
 0x2df   :  { %2893 = vmatpush.bf16.msra.mxu3 %v4628_v12  ;;  %v4653_v12 = vld [vmem:[#allocation15 + $0x1c8] sm:$0xf0] }
 0x345   :  { %v2419_v20 = vpop.xlane.xlu0 %2418 }
 0x346   :  { %v2420_v6 = vadd.f32 %v5253_v32, %v2419_v20  ;;  %v4524_v32 = vor.u32 %v5140_v59, %v4523_v55  ;;  %v4588_v20 = vor.u32 %v5156_v58, %v4587_v0  ;;  %v5148_v55 = vld [vmem:[#allocation15 + $0x104] sm:$0xf0]  ;;  %v4619_v59 = vld [vmem:[#allocation15 + $0x180] sm:$0xf]  ;;  %v5129_v58 = vld [vmem:[#allocation15 + $0x74] sm:$0xf] }
 0x347   :  { %v5164_v0 = vld [vmem:[#allocation15 + $0x184] sm:$0xf0] }
 0x348   :  { %v2421_v28 = vmax.f32 %v2359_v44, %v2420_v6  ;;  %2864 = vmatpush.bf16.msra.mxu1 %v4524_v32  ;;  %2877 = vmatpush.bf16.msra.mxu2 %v4588_v20  ;;  %v5161_v32 = vld [vmem:[#allocation15 + $0x174] sm:$0xf]  ;;  %v4492_v20 = vor.u32 %v5132_v4, %v4491_v26  ;;  %v4620_v34 = vor.u32 %v5164_v0, %v4619_v59  ;;  %v4453_v59 = vld [vmem:[#allocation15 + $0x38] sm:$0xf0] }
 0x349   :  { %v5137_v0 = vld [vmem:[#allocation15 + $0xb4] sm:$0xf] }
 0x34a   :  { %v2422_v49 = vsub.f32 %v2359_v44, %v2421_v28  ;;  %v2425_v51 = vsub.f32 %v2420_v6, %v2421_v28  ;;  %v4451_v44 = vld [vmem:[#allocation15 + $0x30] sm:$0xf]  ;;  %v5122_v6 = vld [vmem:[#allocation15 + $0x34] sm:$0xf0]  ;;  %2894 = vmatpush.bf16.msra.mxu3 %v4620_v34  ;;  %v5135_v34 = vld [vmem:[#allocation15 + $0xa4] sm:$0xf] }
 0x34b   :  { %v4515_v28 = vld [vmem:[#allocation15 + $0xb0] sm:$0xf]  ;;  %v4452_v10 = vor.u32 %v5122_v6, %v4451_v44  ;;  %v4613_v44 = vld [vmem:[#allocation15 + $0x178] sm:$0xf0]  ;;  %v5177_v6 = vld [vmem:[#allocation15 + $0x1f4] sm:$0xf] }
 0x34c   :  { %v2423_v40 = vmul.f32 1.442695, %v2422_v49  ;;  %v2426_v15 = vmul.f32 1.442695, %v2425_v51  ;;  %v4579_v49 = vld [vmem:[#allocation15 + $0x130] sm:$0xf]  ;;  %v4516_v9 = vor.u32 %v5138_v1, %v4515_v28  ;;  %v4616_v22 = vor.u32 %v5161_v32, %v4613_v44 }
 0x34d   :  { %v5154_v51 = vld [vmem:[#allocation15 + $0x134] sm:$0xf0]  ;;  %2852 = vmatpush.bf16.msra.mxu0 %v4452_v10  ;;  %v4677_v28 = vld [vmem:[#allocation15 + $0x1f8] sm:$0xf0]  ;;  %v5127_v10 = vld [vmem:[#allocation15 + $0x64] sm:$0xf] }
 0x34e   :  { %5257 = vpow2.f32 %v2423_v40  ;;  %v4580_v60 = vor.u32 %v5154_v51, %v4579_v49  ;;  %v5136_v40 = vld [vmem:[#allocation15 + $0xa4] sm:$0xf0]  ;;  %2865 = vmatpush.bf16.msra.mxu1 %v4516_v9  ;;  %v4488_v49 = vor.u32 %v5129_v58, %v4485_v16  ;;  %v4552_v51 = vor.u32 %v5145_v24, %v4549_v21  ;;  %v4477_v9 = vld [vmem:[#allocation15 + $0x68] sm:$0xf0]  ;;  %v4517_v16 = vld [vmem:[#allocation15 + $0xb8] sm:$0xf0] }
 0x34f   :  { %5259 = vpow2.f32 %v2426_v15  ;;  %v4571_v15 = vld [vmem:[#allocation15 + $0x120] sm:$0xf]  ;;  %v4508_v38 = vor.u32 %v5136_v40, %v4507_v36  ;;  %v4680_v5 = vor.u32 %v5177_v6, %v4677_v28  ;;  %v4480_v19 = vor.u32 %v5127_v10, %v4477_v9  ;;  %v4581_v24 = vld [vmem:[#allocation15 + $0x138] sm:$0xf0]  ;;  %v5119_v6 = vld [vmem:[#allocation15 + $0x24] sm:$0xf] }
 0x350   :  { %2878 = vmatpush.bf16.msra.mxu2 %v4580_v60  ;;  %v4572_v25 = vor.u32 %v5152_v52, %v4571_v15  ;;  %v5143_v60 = vld [vmem:[#allocation15 + $0xe4] sm:$0xf]  ;;  %v4669_v52 = vld [vmem:[#allocation15 + $0x1e8] sm:$0xf0]  ;;  %v4520_v21 = vor.u32 %v5137_v0, %v4517_v16  ;;  %v4645_v44 = vld [vmem:[#allocation15 + $0x1b8] sm:$0xf0] }
 0x351   :  { %2853 = vmatpush.bf16.msra.mxu0 %v4444_v50  ;;  %2939 = vmatpush.bf16.msrb.mxu3 %v4680_v5  ;;  %v4544_v36 = vor.u32 %v5143_v60, %v4541_v8  ;;  %v5175_v15 = vld [vmem:[#allocation15 + $0x1e4] sm:$0xf]  ;;  %v4469_v50 = vld [vmem:[#allocation15 + $0x58] sm:$0xf0]  ;;  %v4573_v5 = vld [vmem:[#allocation15 + $0x128] sm:$0xf0] }
 0x352   :  { %2866 = vmatpush.bf16.msra.mxu1 %v4508_v38  ;;  %v4672_v48 = vor.u32 %v5175_v15, %v4669_v52  ;;  %v5141_v38 = vld [vmem:[#allocation15 + $0xd4] sm:$0xf]  ;;  %v4472_v18 = vor.u32 %v5125_v47, %v4469_v50  ;;  %v5167_v10 = vld [vmem:[#allocation15 + $0x1a4] sm:$0xf]  ;;  %v4637_v60 = vld [vmem:[#allocation15 + $0x1a8] sm:$0xf0] }
 0x353   :  { %v4437_v8 = vld [vmem:[#allocation15 + $0x18] sm:$0xf0]  ;;  %v5165_v47 = vld [vmem:[#allocation15 + $0x194] sm:$0xf] }
 0x354   :  { %v5258_v13 = vpop.eup %5257  ;;  %2879 = vmatpush.bf16.msra.mxu2 %v4572_v25  ;;  %v5157_v25 = vld [vmem:[#allocation15 + $0x154] sm:$0xf]  ;;  %v4565_v52 = vld [vmem:[#allocation15 + $0x118] sm:$0xf0] }
 0x355   :  { %v6757_v39 = vpop.eup %5259  ;;  %2854 = vmatpush.bf16.msra.mxu0 %v4436_v17  ;;  %2940 = vmatpush.bf16.msrb.mxu3 %v4672_v48  ;;  %v4600_v37 = vor.u32 %v5157_v25, %v4597_v29  ;;  %v4464_v17 = vor.u32 %v5123_v54, %v4461_v57  ;;  %v4629_v48 = vld [vmem:[#allocation15 + $0x198] sm:$0xf0]  ;;  %v4493_v29 = vld [vmem:[#allocation15 + $0x88] sm:$0xf0]  ;;  %v5181_v16 = vld [vmem:[#allocation16 + $0x14] sm:$0xf] }
 0x356   :  { %v2428_v41 = vadd.f32 %v6757_v39, %v5258_v13  ;;  %2867 = vmatpush.bf16.msra.mxu1 %v4500_v42  ;;  %v5155_v42 = vld [vmem:[#allocation15 + $0x144] sm:$0xf]  ;;  %v4632_v25 = vor.u32 %v5165_v47, %v4629_v48  ;;  %v5210_v48 = vld [vmem:[#allocation18 + $0xd4] sm:$0xf0] }
 0x358   :  { %5261 = vrcp.f32 %v2428_v41  ;;  %2880 = vmatpush.bf16.msra.mxu2 %v4564_v56  ;;  %v4556_v41 = vor.u32 %v5148_v55, %v4555_v63  ;;  %v5171_v56 = vld [vmem:[#allocation15 + $0x1c4] sm:$0xf]  ;;  %v5121_v55 = vld [vmem:[#allocation15 + $0x34] sm:$0xf] }
 0x359   :  { %v4656_v63 = vor.u32 %v5171_v56, %v4653_v12  ;;  %v4456_v58 = vor.u32 %v5121_v55, %v4453_v59  ;;  %v4691_v12 = vld [vmem:[#allocation16 + $0x10] sm:$0xf] }
 0x35a   :  { %2868 = vmatpush.bf16.msra.mxu1 %v4492_v20  ;;  %v5169_v20 = vld [vmem:[#allocation15 + $0x1b4] sm:$0xf] }
 0x35b   :  { %v4648_v28 = vor.u32 %v5169_v20, %v4645_v44 }
 0x35c   :  { %2881 = vmatpush.bf16.msra.mxu2 %v4556_v41  ;;  %v4445_v41 = vld [vmem:[#allocation15 + $0x28] sm:$0xf0] }
 0x35e   :  { %v5262_v11 = vpop.eup %5261  ;;  %2913 = vmatpush.bf16.msrb.mxu1 %v4552_v51 }
 0x35f   :  { %v2430_v53 = vmul.f32 %v5262_v11, %v5258_v13  ;;  %v4428_v13 = vor.u32 %v5116_v2, %v4427_v43  ;;  %v2440_v1 = vmul.f32 %v5262_v11, %v6757_v39  ;;  %v4605_v39 = vld [vmem:[#allocation15 + $0x168] sm:$0xf0]  ;;  %v4536_v11 = vor.u32 %v5141_v38, %v4533_v46  ;;  %v5115_v46 = vld [vmem:[#allocation15 + $0x4] sm:$0xf] }
 0x360   :  { %2926 = vmatpush.bf16.msrb.mxu2 %v4616_v22  ;;  %v4608_v40 = vor.u32 %v5159_v27, %v4605_v39  ;;  %v4525_v43 = vld [vmem:[#allocation15 + $0xc8] sm:$0xf0]  ;;  %v5151_v22 = vld [vmem:[#allocation15 + $0x124] sm:$0xf]  ;;  %v4640_v27 = vor.u32 %v5167_v10, %v4637_v60  ;;  %v5133_v39 = vld [vmem:[#allocation15 + $0x94] sm:$0xf] }
 0x361   :  { %2433 = vperm.xlu1 %5249, %v2430_v53   ;;  %2855 = vmatpush.bf16.msra.mxu0 %v4428_v13  ;;  %v4664_v53 = vor.u32 %v5173_v30, %v4661_v45  ;;  %v4589_v2 = vld [vmem:[#allocation15 + $0x148] sm:$0xf0]  ;;  %v4528_v26 = vor.u32 %v5139_v3, %v4525_v43  ;;  %v5153_v13 = vld [vmem:[#allocation15 + $0x134] sm:$0xf]  ;;  %v4576_v9 = vor.u32 %v5151_v22, %v4573_v5  ;;  %v5147_v30 = vld [vmem:[#allocation15 + $0x104] sm:$0xf] }
 0x362   :  { %2914 = vmatpush.bf16.msrb.mxu1 %v4544_v36  ;;  %v4592_v4 = vor.u32 %v5155_v42, %v4589_v2  ;;  %v4584_v32 = vor.u32 %v5153_v13, %v4581_v24  ;;  %v4501_v36 = vld [vmem:[#allocation15 + $0x98] sm:$0xf0]  ;;  %v5163_v45 = vld [vmem:[#allocation15 + $0x184] sm:$0xf]  ;;  %v5196_v22 = vld [vmem:[#allocation18 + $0x64] sm:$0xf0] }
 0x363   :  { %2941 = vmatpush.bf16.msrb.mxu3 %v4664_v53  ;;  %v4504_v50 = vor.u32 %v5133_v39, %v4501_v36  ;;  %v4621_v53 = vld [vmem:[#allocation15 + $0x188] sm:$0xf0]  ;;  %v4693_v13 = vld [vmem:[#allocation16 + $0x18] sm:$0xf0]  ;;  %v4813_v60 = vld [vmem:[#allocation18 + $0xe0] sm:$0xf] }
 0x364   :  { %2927 = vmatpush.bf16.msrb.mxu2 %v4608_v40  ;;  %v5149_v40 = vld [vmem:[#allocation15 + $0x114] sm:$0xf] }
 0x365   :  { %2900 = vmatpush.bf16.msrb.mxu0 %v4488_v49  ;;  %v4448_v49 = vor.u32 %v5119_v6, %v4445_v41  ;;  %v4568_v38 = vor.u32 %v5149_v40, %v4565_v52  ;;  %v4685_v41 = vld [vmem:[#allocation16 + $0x8] sm:$0xf0]  ;;  %v2954_v39 = vld [vmem:[#allocation7] sm:$0xff]  ;;  %v4741_v40 = vld [vmem:[#allocation18 + $0x50] sm:$0xf] }
 0x366   :  { %2915 = vmatpush.bf16.msrb.mxu1 %v4536_v11  ;;  %v5131_v11 = vld [vmem:[#allocation15 + $0x84] sm:$0xf]  ;;  %v2955_v36 = vpack.c.bf16 %v2954_v39, %v2954_v39  ;;  %v4805_v52 = vld [vmem:[#allocation18 + $0xd0] sm:$0xf] }
 0x367   :  { %2942 = vmatpush.bf16.msrb.mxu3 %v4656_v63  ;;  %v4496_v57 = vor.u32 %v5131_v11, %v4493_v29  ;;  %v5197_v29 = vld [vmem:[#allocation18 + $0x74] sm:$0xf] }
 0x368   :  { %2928 = vmatpush.bf16.msrb.mxu2 %v4600_v37  ;;  %v4557_v37 = vld [vmem:[#allocation15 + $0x108] sm:$0xf0] }
 0x369   :  { %2443 = vperm.xlu1 %5249, %v2440_v1   ;;  %2901 = vmatpush.bf16.msrb.mxu0 %v4480_v19  ;;  %v4509_v1 = vld [vmem:[#allocation15 + $0xa8] sm:$0xf0]  ;;  %v5117_v19 = vld [vmem:[#allocation15 + $0x14] sm:$0xf]  ;;  %v4560_v3 = vor.u32 %v5147_v30, %v4557_v37  ;;  %v4759_v30 = vld [vmem:[#allocation18 + $0x78] sm:$0xf0] }
 0x36a   :  { %2916 = vmatpush.bf16.msrb.mxu1 %v4528_v26  ;;  %v4512_v51 = vor.u32 %v5135_v34, %v4509_v1  ;;  %v4440_v15 = vor.u32 %v5117_v19, %v4437_v8  ;;  %v4821_v34 = vld [vmem:[#allocation18 + $0xf0] sm:$0xf]  ;;  %v5212_v19 = vld [vmem:[#allocation18 + $0xe4] sm:$0xf0] }
 0x36b   :  { %2943 = vmatpush.bf16.msrb.mxu3 %v4648_v28  ;;  %v5180_v28 = vld [vmem:[#allocation16 + $0x4] sm:$0xf0] }
 0x36c   :  { %2929 = vmatpush.bf16.msrb.mxu2 %v4592_v4 }
 0x36d   :  { %2902 = vmatpush.bf16.msrb.mxu0 %v4472_v18  ;;  %v4429_v18 = vld [vmem:[#allocation15 + $0x8] sm:$0xf0] }
 0x36e   :  { %2917 = vmatpush.bf16.msrb.mxu1 %v4520_v21  ;;  %v4432_v54 = vor.u32 %v5115_v46, %v4429_v18  ;;  %v5192_v46 = vld [vmem:[#allocation18 + $0x44] sm:$0xf0]  ;;  %v4797_v18 = vld [vmem:[#allocation18 + $0xc0] sm:$0xf] }
 0x36f   :  { %2944 = vmatpush.bf16.msrb.mxu3 %v4640_v27  ;;  %v4814_v27 = vor.u32 %v5212_v19, %v4813_v60  ;;  %v5200_v60 = vld [vmem:[#allocation18 + $0x84] sm:$0xf0]  ;;  %v5189_v19 = vld [vmem:[#allocation18 + $0x34] sm:$0xf] }
 0x370   :  { %2930 = vmatpush.bf16.msrb.mxu2 %v4584_v32  ;;  %v4696_v32 = vor.u32 %v5181_v16, %v4693_v13  ;;  %v4781_v16 = vld [vmem:[#allocation18 + $0xa0] sm:$0xf] }
 0x371   :  { %2903 = vmatpush.bf16.msrb.mxu0 %v4464_v17  ;;  %v4624_v17 = vor.u32 %v5163_v45, %v4621_v53  ;;  %v4762_v45 = vor.u32 %v5197_v29, %v4759_v30  ;;  %v5213_v53 = vld [vmem:[#allocation18 + $0xf4] sm:$0xf] }
 0x372   :  { %2918 = vmatpush.bf16.msrb.mxu1 %v4512_v51  ;;  %v4749_v51 = vld [vmem:[#allocation18 + $0x60] sm:$0xf]  ;;  %v5185_v30 = vld [vmem:[#allocation18 + $0x14] sm:$0xf] }
 0x373   :  { %2945 = vmatpush.bf16.msrb.mxu3 %v4632_v25  ;;  %v4750_v8 = vor.u32 %v5196_v22, %v4749_v51  ;;  %v5208_v25 = vld [vmem:[#allocation18 + $0xc4] sm:$0xf0]  ;;  %v4701_v22 = vld [vmem:[#allocation18] sm:$0xf] }
 0x374   :  { %2931 = vmatpush.bf16.msrb.mxu2 %v4576_v9  ;;  %v4798_v37 = vor.u32 %v5208_v25, %v4797_v18  ;;  %v4783_v18 = vld [vmem:[#allocation18 + $0xa8] sm:$0xf0]  ;;  %v5229_v25 = vld [vmem:[#allocation19 + $0x70] sm:$0xff] }
 0x375   :  { %2904 = vmatpush.bf16.msrb.mxu0 %v4456_v58  ;;  %v5182_v58 = vld [vmem:[#allocation16 + $0x14] sm:$0xf0] }
 0x376   :  { %2919 = vmatpush.bf16.msrb.mxu1 %v4504_v50  ;;  %v4806_v50 = vor.u32 %v5210_v48, %v4805_v52  ;;  %v5187_v48 = vld [vmem:[#allocation18 + $0x24] sm:$0xf] }
 0x377   :  { %2946 = vmatpush.bf16.msrb.mxu3 %v4624_v17  ;;  %v5190_v17 = vld [vmem:[#allocation18 + $0x34] sm:$0xf0] }
 0x378   :  { %2932 = vmatpush.bf16.msrb.mxu2 %v4568_v38  ;;  %v4733_v38 = vld [vmem:[#allocation18 + $0x40] sm:$0xf] }
 0x379   :  { %2905 = vmatpush.bf16.msrb.mxu0 %v4448_v49  ;;  %v5214_v49 = vld [vmem:[#allocation18 + $0xf4] sm:$0xf0]  ;;  %v4734_v11 = vor.u32 %v5192_v46, %v4733_v38  ;;  %v5203_v38 = vld [vmem:[#allocation18 + $0xa4] sm:$0xf] }
 0x37a   :  { %2920 = vmatpush.bf16.msrb.mxu1 %v4496_v57  ;;  %v4822_v9 = vor.u32 %v5214_v49, %v4821_v34  ;;  %v4799_v49 = vld [vmem:[#allocation18 + $0xc8] sm:$0xf0]  ;;  %v4786_v29 = vor.u32 %v5203_v38, %v4783_v18 }
 0x37c   :  { %2933 = vmatpush.bf16.msrb.mxu2 %v4560_v3  ;;  %v4725_v3 = vld [vmem:[#allocation18 + $0x30] sm:$0xf] }
 0x37d   :  { %2906 = vmatpush.bf16.msrb.mxu0 %v4440_v15  ;;  %v5194_v15 = vld [vmem:[#allocation18 + $0x54] sm:$0xf0] }
 0x37e   :  { %v4742_v47 = vor.u32 %v5194_v15, %v4741_v40  ;;  %v4791_v40 = vld [vmem:[#allocation18 + $0xb8] sm:$0xf0] }
 0x37f   :  { %v5222_v15 = vld [vmem:[#allocation19 + $0x38] sm:$0xff] }
 0x381   :  { %2907 = vmatpush.bf16.msrb.mxu0 %v4432_v54  ;;  %v4823_v54 = vld [vmem:[#allocation18 + $0xf8] sm:$0xf0] }
 0x382   :  { %v4826_v57 = vor.u32 %v5213_v53, %v4823_v54  ;;  %v4775_v54 = vld [vmem:[#allocation18 + $0x98] sm:$0xf0] }
 0x3d3   :  { %v2434_v43 = vpop.permute.xlu1 %2433 }
 0x3d4   :  { %v2436_v42 = vmul.f32 %v2434_v43, %v6668_v23  ;;  %v2437_v2 = vmul.f32 %v2434_v43, %v6677_v31  ;;  %v2438_v26 = vmul.f32 %v2434_v43, %v6680_v35  ;;  %v2439_v4 = vmul.f32 %v2434_v43, %v6686_v14  ;;  %v4789_v43 = vld [vmem:[#allocation18 + $0xb0] sm:$0xf] }
 0x3d5   :  { %v4692_v35 = vor.u32 %v5182_v58, %v4691_v12  ;;  %v5188_v58 = vld [vmem:[#allocation18 + $0x24] sm:$0xf0] }
 0x3db   :  { %v2444_v56 = vpop.permute.xlu1 %2443 }
 0x3dc   :  { %v2446_v63 = vmul.f32 %v2444_v56, %v6732_v7  ;;  %v2447_v55 = vmul.f32 %v2444_v56, %v6728_v33  ;;  %v2448_v59 = vmul.f32 %v2444_v56, %v6747_v61  ;;  %v2449_v0 = vmul.f32 %v2444_v56, %v6753_v62  ;;  %v4683_v7 = vld [vmem:[#allocation16] sm:$0xf]  ;;  %v5179_v33 = vld [vmem:[#allocation16 + $0x4] sm:$0xf]  ;;  %v4757_v61 = vld [vmem:[#allocation18 + $0x70] sm:$0xf] }
 0x3dd   :  { %v5198_v62 = vld [vmem:[#allocation18 + $0x74] sm:$0xf0]  ;;  %v4684_v5 = vor.u32 %v5180_v28, %v4683_v7  ;;  %v4688_v10 = vor.u32 %v5179_v33, %v4685_v41  ;;  %v4773_v7 = vld [vmem:[#allocation18 + $0x90] sm:$0xf]  ;;  %v5191_v41 = vld [vmem:[#allocation18 + $0x44] sm:$0xf] }
 0x3de   :  { %v2450_v23 = vadd.f32 %v2446_v63, %v2436_v42  ;;  %v2451_v24 = vadd.f32 %v2447_v55, %v2437_v2  ;;  %v2452_v31 = vadd.f32 %v2448_v59, %v2438_v26  ;;  %v2453_v21 = vadd.f32 %v2449_v0, %v2439_v4  ;;  %v5206_v2 = vld [vmem:[#allocation18 + $0xb4] sm:$0xf0]  ;;  %v5195_v26 = vld [vmem:[#allocation18 + $0x64] sm:$0xf]  ;;  %v4751_v4 = vld [vmem:[#allocation18 + $0x68] sm:$0xf0] }
 0x3df   :  { %v4758_v1 = vor.u32 %v5198_v62, %v4757_v61  ;;  %v4726_v42 = vor.u32 %v5190_v17, %v4725_v3  ;;  %v4790_v56 = vor.u32 %v5206_v2, %v4789_v43  ;;  %v4754_v12 = vor.u32 %v5195_v26, %v4751_v4  ;;  %v5211_v63 = vld [vmem:[#allocation18 + $0xe4] sm:$0xf]  ;;  %v4815_v55 = vld [vmem:[#allocation18 + $0xe8] sm:$0xf0]  ;;  %v4717_v0 = vld [vmem:[#allocation18 + $0x20] sm:$0xf] }
 0x3e0   :  { %v2454_v14 = vpack.c.bf16 %v2450_v23, %v2450_v23  ;;  %v2455_v20 = vpack.c.bf16 %v2451_v24, %v2451_v24  ;;  %v2456_v44 = vpack.c.bf16 %v2452_v31, %v2452_v31  ;;  %v2457_v6 = vpack.c.bf16 %v2453_v21, %v2453_v21  ;;  %v5204_v23 = vld [vmem:[#allocation18 + $0xa4] sm:$0xf0]  ;;  %v5193_v24 = vld [vmem:[#allocation18 + $0x54] sm:$0xf]  ;;  %v4743_v31 = vld [vmem:[#allocation18 + $0x58] sm:$0xf0] }
 0x3e1   :  { %v4818_v59 = vor.u32 %v5211_v63, %v4815_v55  ;;  %v4718_v13 = vor.u32 %v5188_v58, %v4717_v0  ;;  %v4782_v21 = vor.u32 %v5204_v23, %v4781_v16  ;;  %v5202_v33 = vld [vmem:[#allocation18 + $0x94] sm:$0xf0]  ;;  %v4735_v61 = vld [vmem:[#allocation18 + $0x48] sm:$0xf0]  ;;  %v5183_v2 = vld [vmem:[#allocation18 + $0x4] sm:$0xf] }
 0x3e2   :  { %2856 = vmatmul.bf16.vlgmr.msra.gmra.mxu0 %v2454_v14  ;;  %2869 = vmatmul.bf16.vlgmr.msra.gmra.mxu1 %v2455_v20  ;;  %v4774_v62 = vor.u32 %v5202_v33, %v4773_v7  ;;  %v4738_v34 = vor.u32 %v5191_v41, %v4735_v61  ;;  %v4703_v26 = vld [vmem:[#allocation18 + $0x8] sm:$0xf0]  ;;  %v5199_v4 = vld [vmem:[#allocation18 + $0x84] sm:$0xf]  ;;  %v5218_v16 = vld [vmem:[#allocation19 + $0x18] sm:$0xff] }
 0x3e3   :  { %2882 = vmatmul.bf16.vlgmr.msra.gmra.mxu2 %v2456_v44  ;;  %2895 = vmatmul.bf16.vlgmr.msra.gmra.mxu3 %v2457_v6  ;;  %v5219_v63 = vld [vmem:[#allocation19 + $0x20] sm:$0xff] }
 0x3e4   :  { %2996 = vmatpush.bf16.msra.mxu0 %v4692_v35  ;;  %3009 = vmatpush.bf16.msra.mxu1 %v4696_v32  ;;  %v4746_v35 = vor.u32 %v5193_v24, %v4743_v31  ;;  %v5209_v32 = vld [vmem:[#allocation18 + $0xd4] sm:$0xf]  ;;  %v5227_v55 = vld [vmem:[#allocation19 + $0x60] sm:$0xff] }
 0x3e5   :  { %3218 = vmatpush.bf16.msra.mxu2 %v4758_v1  ;;  %3231 = vmatpush.bf16.msra.mxu3 %v4822_v9  ;;  %v5207_v1 = vld [vmem:[#allocation18 + $0xc4] sm:$0xf]  ;;  %v5217_v31 = vld [vmem:[#allocation19 + $0x10] sm:$0xff] }
 0x3e6   :  { %v4802_v51 = vor.u32 %v5207_v1, %v4799_v49  ;;  %v5215_v7 = vld [vmem:[#allocation19] sm:$0xff]  ;;  %v2522_v1 = vld [vmem:[%s6818_s9] sm:$0x3] }
 0x3e8   :  { %2997 = vmatpush.bf16.msra.mxu0 %v4684_v5  ;;  %3010 = vmatpush.bf16.msra.mxu1 %v4688_v10  ;;  %v5184_v5 = vld [vmem:[#allocation18 + $0x4] sm:$0xf0]  ;;  %v4765_v10 = vld [vmem:[#allocation18 + $0x80] sm:$0xf] }
 0x3e9   :  { %3219 = vmatpush.bf16.msra.mxu2 %v4750_v8  ;;  %3232 = vmatpush.bf16.msra.mxu3 %v4814_v27  ;;  %v4702_v9 = vor.u32 %v5184_v5, %v4701_v22  ;;  %v4727_v8 = vld [vmem:[#allocation18 + $0x38] sm:$0xf0]  ;;  %v4766_v27 = vor.u32 %v5200_v60, %v4765_v10  ;;  %v2524_v22 = vperm.slane %v2522_v1, 0  ;;  %v2525_v5 = vperm.slane %v2522_v1, 1 }
 0x3ea   :  { %v4730_v39 = vor.u32 %v5189_v19, %v4727_v8 }
 0x3ed   :  { %3220 = vmatpush.bf16.msra.mxu2 %v4742_v47  ;;  %3233 = vmatpush.bf16.msra.mxu3 %v4806_v50  ;;  %v5230_v47 = vld [vmem:[#allocation19 + $0x78] sm:$0xff]  ;;  %v4719_v50 = vld [vmem:[#allocation18 + $0x28] sm:$0xf0] }
 0x3ee   :  { %v4722_v46 = vor.u32 %v5187_v48, %v4719_v50 }
 0x3f1   :  { %3221 = vmatpush.bf16.msra.mxu2 %v4734_v11  ;;  %3234 = vmatpush.bf16.msra.mxu3 %v4798_v37  ;;  %v5221_v11 = vld [vmem:[#allocation19 + $0x30] sm:$0xff]  ;;  %v4711_v37 = vld [vmem:[#allocation18 + $0x18] sm:$0xf0] }
 0x3f2   :  { %2908 = vmatmul.bf16.vlgmr.msrb.gmra.mxu0 %v2454_v14  ;;  %2921 = vmatmul.bf16.vlgmr.msrb.gmra.mxu1 %v2455_v20  ;;  %v4807_v14 = vld [vmem:[#allocation18 + $0xd8] sm:$0xf0]  ;;  %v4714_v53 = vor.u32 %v5185_v30, %v4711_v37 }
 0x3f3   :  { %2934 = vmatmul.bf16.vlgmr.msrb.gmra.mxu2 %v2456_v44  ;;  %2947 = vmatmul.bf16.vlgmr.msrb.gmra.mxu3 %v2457_v6  ;;  %v4810_v20 = vor.u32 %v5209_v32, %v4807_v14  ;;  %v4709_v44 = vld [vmem:[#allocation18 + $0x10] sm:$0xf]  ;;  %v5186_v6 = vld [vmem:[#allocation18 + $0x14] sm:$0xf0] }
 0x3f4   :  { %3244 = vmatpush.bf16.msrb.mxu0 %v4762_v45  ;;  %3257 = vmatpush.bf16.msrb.mxu1 %v4826_v57  ;;  %v4710_v28 = vor.u32 %v5186_v6, %v4709_v44  ;;  %v5201_v45 = vld [vmem:[#allocation18 + $0x94] sm:$0xf]  ;;  %v5220_v57 = vld [vmem:[#allocation19 + $0x28] sm:$0xff] }
 0x3f5   :  { %3222 = vmatpush.bf16.msra.mxu2 %v4726_v42  ;;  %3235 = vmatpush.bf16.msra.mxu3 %v4790_v56  ;;  %v4778_v43 = vor.u32 %v5201_v45, %v4775_v54  ;;  %v5228_v42 = vld [vmem:[#allocation19 + $0x68] sm:$0xff]  ;;  %v4706_v56 = vor.u32 %v5183_v2, %v4703_v26  ;;  %v3052_v54 = vld [vmem:[%s6822_s13] sm:$0x3] }
 0x3f8   :  { %3245 = vmatpush.bf16.msrb.mxu0 %v4754_v12  ;;  %3258 = vmatpush.bf16.msrb.mxu1 %v4818_v59  ;;  %v4767_v12 = vld [vmem:[#allocation18 + $0x88] sm:$0xf0] }
 0x3f9   :  { %3223 = vmatpush.bf16.msra.mxu2 %v4718_v13  ;;  %3236 = vmatpush.bf16.msra.mxu3 %v4782_v21  ;;  %v4770_v59 = vor.u32 %v5199_v4, %v4767_v12  ;;  %v5226_v13 = vld [vmem:[#allocation19 + $0x58] sm:$0xff]  ;;  %v5225_v21 = vld [vmem:[#allocation19 + $0x50] sm:$0xff] }
 0x3fc   :  { %3246 = vmatpush.bf16.msrb.mxu0 %v4746_v35  ;;  %3259 = vmatpush.bf16.msrb.mxu1 %v4810_v20  ;;  %v5216_v35 = vld [vmem:[#allocation19 + $0x8] sm:$0xff] }
 0x3fd   :  { %3224 = vmatpush.bf16.msra.mxu2 %v4710_v28  ;;  %3237 = vmatpush.bf16.msra.mxu3 %v4774_v62  ;;  %v5224_v20 = vld [vmem:[#allocation19 + $0x48] sm:$0xff]  ;;  %v5223_v28 = vld [vmem:[#allocation19 + $0x40] sm:$0xff] }
 0x400   :  { %3247 = vmatpush.bf16.msrb.mxu0 %v4738_v34  ;;  %3260 = vmatpush.bf16.msrb.mxu1 %v4802_v51  ;;  %v2960_v34 = vld [vmem:[%s6820_s11] sm:$0x3] }
 0x401   :  { %3225 = vmatpush.bf16.msra.mxu2 %v4702_v9  ;;  %3238 = vmatpush.bf16.msra.mxu3 %v4766_v27  ;;  %v2962_v49 = vperm.slane %v2960_v34, 0  ;;  %v2963_v51 = vperm.slane %v2960_v34, 1 }
 0x402   :  { %4697 = vmatmul.msk.bf16.vlgmr.msra.gmra.mxu0 %vm2986_vm0, %v2955_v36  ;;  %4698 = vmatmul.msk.bf16.vlgmr.msra.gmra.mxu1 %vm2986_vm0, %v2955_v36  ;;  %v5205_v36 = vld [vmem:[#allocation18 + $0xb4] sm:$0xf] }
 0x403   :  { %v4794_v52 = vor.u32 %v5205_v36, %v4791_v40 }
 0x404   :  { %3248 = vmatpush.bf16.msrb.mxu0 %v4730_v39 }
 0x405   :  { %3261 = vmatpush.bf16.msrb.mxu1 %v4794_v52  ;;  %3406 = vmatpush.bf16.msrb.mxu2 %v5222_v15 }
 0x406   :  { %3419 = vmatpush.bf16.msrb.mxu3 %v5230_v47 }
 0x408   :  { %3249 = vmatpush.bf16.msrb.mxu0 %v4722_v46 }
 0x409   :  { %3262 = vmatpush.bf16.msrb.mxu1 %v4786_v29  ;;  %3407 = vmatpush.bf16.msrb.mxu2 %v5221_v11 }
 0x40a   :  { %3420 = vmatpush.bf16.msrb.mxu3 %v5229_v25 }
 0x40c   :  { %3250 = vmatpush.bf16.msrb.mxu0 %v4714_v53 }
 0x40d   :  { %3263 = vmatpush.bf16.msrb.mxu1 %v4778_v43  ;;  %3408 = vmatpush.bf16.msrb.mxu2 %v5220_v57 }
 0x40e   :  { %3421 = vmatpush.bf16.msrb.mxu3 %v5228_v42 }
 0x410   :  { %3251 = vmatpush.bf16.msrb.mxu0 %v4706_v56 }
 0x411   :  { %3264 = vmatpush.bf16.msrb.mxu1 %v4770_v59  ;;  %3409 = vmatpush.bf16.msrb.mxu2 %v5219_v63 }
 0x412   :  { %3422 = vmatpush.bf16.msrb.mxu3 %v5227_v55 }
 0x414   :  { %3447 = vmatpush.bf16.msra.mxu0 %v5222_v15 }
 0x415   :  { %3460 = vmatpush.bf16.msra.mxu1 %v5230_v47  ;;  %3410 = vmatpush.bf16.msrb.mxu2 %v5218_v16 }
 0x416   :  { %3423 = vmatpush.bf16.msrb.mxu3 %v5226_v13 }
 0x418   :  { %3448 = vmatpush.bf16.msra.mxu0 %v5221_v11 }
 0x419   :  { %3461 = vmatpush.bf16.msra.mxu1 %v5229_v25  ;;  %3411 = vmatpush.bf16.msrb.mxu2 %v5217_v31 }
 0x41a   :  { %3424 = vmatpush.bf16.msrb.mxu3 %v5225_v21 }
 0x41c   :  { %3449 = vmatpush.bf16.msra.mxu0 %v5220_v57  ;;  %v3055_v57 = vperm.slane %v3052_v54, 1 }
 0x41d   :  { %3462 = vmatpush.bf16.msra.mxu1 %v5228_v42  ;;  %3412 = vmatpush.bf16.msrb.mxu2 %v5216_v35  ;;  %v3054_v42 = vperm.slane %v3052_v54, 0 }
 0x41e   :  { %3425 = vmatpush.bf16.msrb.mxu3 %v5224_v20 }
 0x420   :  { %3450 = vmatpush.bf16.msra.mxu0 %v5219_v63 }
 0x421   :  { %3463 = vmatpush.bf16.msra.mxu1 %v5227_v55  ;;  %3413 = vmatpush.bf16.msrb.mxu2 %v5215_v7 }
 0x422   :  { %3426 = vmatpush.bf16.msrb.mxu3 %v5223_v28 }
 0x424   :  { %3451 = vmatpush.bf16.msra.mxu0 %v5218_v16 }
 0x425   :  { %3464 = vmatpush.bf16.msra.mxu1 %v5226_v13 }
 0x428   :  { %3452 = vmatpush.bf16.msra.mxu0 %v5217_v31 }
 0x429   :  { %3465 = vmatpush.bf16.msra.mxu1 %v5225_v21 }
 0x42c   :  { %3453 = vmatpush.bf16.msra.mxu0 %v5216_v35 }
 0x42d   :  { %3466 = vmatpush.bf16.msra.mxu1 %v5224_v20 }
 0x430   :  { %3454 = vmatpush.bf16.msra.mxu0 %v5215_v7 }
 0x431   :  { %3467 = vmatpush.bf16.msra.mxu1 %v5223_v28 }
 0x45f   :  { %v6769_v3 = vpop.f32.mrf.mxu0  ;;  %v6771_v17 = vpop.f32.mrf.mxu1 }
 0x460   :  { %v2858_v39 = vadd.f32 %v6769_v3, %v2524_v22  ;;  %v5256_v22 = vld [vmem:[#allocation3] ss:$0 sm:$0xff] }
 0x462   :  { %v2871_v48 = vadd.f32 %v6771_v17, %v2858_v39 }
 0x466   :  { %v6773_v0 = vpop.f32.mrf.mxu2  ;;  %v6775_v58 = vpop.f32.mrf.mxu3 }
 0x467   :  { %v2859_v23 = vpop.f32.mrf.mxu0  ;;  %v2872_v24 = vpop.f32.mrf.mxu1  ;;  %v2884_v18 = vadd.f32 %v6773_v0, %v2871_v48 }
 0x468   :  { %v5254_v24 = vld [vmem:[%s6824_s15] ss:$0 sm:$0xff]  ;;  %s5564_s15 = smov [#allocation21]  }
 0x469   :  { %v2897_v25 = vadd.f32 %v6775_v58, %v2884_v18 }
 0x46b   :  { %v6787_v30 = vmax.f32 %v2897_v25, 0.0 }
 0x46d   :  { %v3272_v45 = vpack.c.bf16 %v6787_v30, %v6787_v30 }
 0x46e   :  { %v2885_v32 = vpop.f32.mrf.mxu2  ;;  %v2898_v14 = vpop.f32.mrf.mxu3 }
 0x46f   :  { %v2909_v44 = vpop.f32.mrf.mxu0  ;;  %v2922_v6 = vpop.f32.mrf.mxu1  ;;  %v5255_v14 = vld [vmem:[%s6825_s16] ss:$0 sm:$0xff]  ;;  %s3512_s16 = sshll.u32 %s5564_s15, 4  ;;  %s3513_s16 = int_to_ptr.vmem [resolvable:$true] %s3512_s16 }
 0x470   :  { %v2910_v36 = vadd.f32 %v2909_v44, %v2525_v5 }
 0x472   :  { %v2923_v50 = vadd.f32 %v2922_v6, %v2910_v36 }
 0x476   :  { %v2935_v33 = vpop.f32.mrf.mxu2  ;;  %v2948_v41 = vpop.f32.mrf.mxu3 }
 0x477   :  { %v2911_v61 = vpop.f32.mrf.mxu0  ;;  %v2924_v62 = vpop.f32.mrf.mxu1  ;;  %v2936_v11 = vadd.f32 %v2935_v33, %v2923_v50 }
 0x479   :  { %v2949_v29 = vadd.f32 %v2948_v41, %v2936_v11 }
 0x47b   :  { %v6789_v37 = vmax.f32 %v2949_v29, 0.0 }
 0x47d   :  { %v3273_v53 = vpack.c.bf16 %v6789_v37, %v6789_v37 }
 0x47e   :  { %v2937_v10 = vpop.f32.mrf.mxu2  ;;  %v2950_v9 = vpop.f32.mrf.mxu3 }
 0x47f   :  { %v2999_v60 = vpop.f32.mrf.mxu0  ;;  %v3012_v19 = vpop.f32.mrf.mxu1 }
 0x480   :  { %v3000_v8 = vadd.f32 %v2999_v60, %v2962_v49  ;;  %v3013_v27 = vadd.f32 %v3012_v19, %v2963_v51 }
 0x482   :  { %v3016_v40 = vmax.f32 %v3000_v8, 0.0  ;;  %v3017_v15 = vmax.f32 %v3013_v27, 0.0 }
 0x484   :  { %v3018_v52 = vpack.c.bf16 %v3016_v40, %v3016_v40  ;;  %v3019_v47 = vpack.c.bf16 %v3017_v15, %v3017_v15 }
 0x486   :  { %3226 = vmatmul.bf16.vlgmr.msra.gmra.mxu2 %v3018_v52  ;;  %3239 = vmatmul.bf16.vlgmr.msra.gmra.mxu3 %v3019_v47 }
 0x487   :  { %3252 = vmatmul.bf16.vlgmr.msrb.gmra.mxu0 %v3018_v52  ;;  %3265 = vmatmul.bf16.vlgmr.msrb.gmra.mxu1 %v3019_v47  ;;  %v3001_v38 = vpop.f32.mrf.mxu0  ;;  %v3014_v46 = vpop.f32.mrf.mxu1 }
 0x496   :  { %3414 = vmatmul.bf16.vlgmr.msrb.gmra.mxu2 %v3272_v45  ;;  %3427 = vmatmul.bf16.vlgmr.msrb.gmra.mxu3 %v3273_v53 }
 0x504   :  { %v3253_v3 = vpop.f32.mrf.mxu0  ;;  %v3266_v17 = vpop.f32.mrf.mxu1 }
 0x505   :  { %v3254_v43 = vadd.f32 %v3253_v3, %v3055_v57 }
 0x507   :  { %v3267_v2 = vadd.f32 %v3266_v17, %v3254_v43 }
 0x509   :  { %v3271_v26 = vmax.f32 %v3267_v2, 0.0  ;;  %v3227_v4 = vpop.f32.mrf.mxu2  ;;  %v3240_v56 = vpop.f32.mrf.mxu3 }
 0x50a   :  { %v3228_v12 = vadd.f32 %v3227_v4, %v3054_v42 }
 0x50b   :  { %v3446_v63 = vpack.c.bf16 %v3271_v26, %v3271_v26 }
 0x50c   :  { %v3241_v55 = vadd.f32 %v3240_v56, %v3228_v12  ;;  %v3255_v59 = vpop.f32.mrf.mxu0  ;;  %v3268_v0 = vpop.f32.mrf.mxu1 }
 0x50d   :  { %3468 = vmatmul.bf16.vlgmr.msra.gmra.mxu1 %v3446_v63 }
 0x50e   :  { %v3270_v58 = vmax.f32 %v3241_v55, 0.0 }
 0x510   :  { %v3445_v16 = vpack.c.bf16 %v3270_v58, %v3270_v58 }
 0x511   :  { %v3229_v13 = vpop.f32.mrf.mxu2  ;;  %v3242_v23 = vpop.f32.mrf.mxu3 }
 0x512   :  { %3455 = vmatmul.bf16.vlgmr.msra.gmra.mxu0 %v3445_v16 }
 0x519   :  { %v3415_v31 = vpop.f32.mrf.mxu2  ;;  %v3428_v21 = vpop.f32.mrf.mxu3 }
 0x51a   :  { %v3416_v35 = vadd.f32 %v5254_v24, %v3415_v31 }
 0x51c   :  { %v3429_v32 = vadd.f32 %v3428_v21, %v3416_v35 }
 0x51e   :  { %v3432_v20 = vmax.f32 %v3429_v32, 0.0 }
 0x520   :  { %v3437_v44 = vmul.f32 %v5255_v14, %v3432_v20 }
 0x521   :  { %v3417_v6 = vpop.f32.mrf.mxu2  ;;  %v3430_v7 = vpop.f32.mrf.mxu3 }
 0x522   :  { %3438 = vadd.xlane.f32.xlu2 %v3437_v44 }
 0x58a   :  { %v3469_v28 = vpop.f32.mrf.mxu1 }
 0x58f   :  { %v3456_v33 = vpop.f32.mrf.mxu0 }
 0x590   :  { %v3457_v41 = vadd.f32 %v5254_v24, %v3456_v33 }
 0x592   :  { %v3470_v61 = vadd.f32 %v3469_v28, %v3457_v41  ;;  %v3471_v62 = vpop.f32.mrf.mxu1 }
 0x594   :  { %v3473_v34 = vmax.f32 %v3470_v61, 0.0 }
 0x595   :  { %v3439_v51 = vpop.xlane.xlu2 %3438 }
 0x596   :  { %v3474_v1 = vmul.f32 %v5255_v14, %v3473_v34  ;;  %v3444_v10 = vadd.f32 %v5256_v22, %v3439_v51 }
 0x597   :  { %v3458_v49 = vpop.f32.mrf.mxu0 }
 0x598   :  { %3475 = vadd.xlane.f32.xlu2 %v3474_v1 }
 0x60b   :  { %v3476_v5 = vpop.xlane.xlu2 %3475 }
 0x60c   :  { %v3477_v9 = vadd.f32 %v5256_v22, %v3476_v5 }
 0x60e   :  { %v3478_v60 = vmax.f32 %v3444_v10, %v3477_v9 }
 0x610   :  { %v3479_v19 = vsub.f32 %v3444_v10, %v3478_v60  ;;  %v3482_v8 = vsub.f32 %v3477_v9, %v3478_v60 }
 0x612   :  { %v3480_v27 = vmul.f32 1.442695, %v3479_v19  ;;  %v3483_v39 = vmul.f32 1.442695, %v3482_v8 }
 0x614   :  { %5263 = vpow2.f32 %v3480_v27 }
 0x615   :  { %5265 = vpow2.f32 %v3483_v39 }
 0x61a   :  { %v5264_v36 = vpop.eup %5263 }
 0x61b   :  { %v5266_v40 = vpop.eup %5265 }
 0x61c   :  { %v3485_v15 = vadd.f32 %v5266_v40, %v5264_v36 }
 0x61e   :  { %5267 = vrcp.f32 %v3485_v15 }
 0x624   :  { %v5268_v52 = vpop.eup %5267 }
 0x625   :  { %v3495_v47 = vmul.f32 %v5268_v52, %v5266_v40  ;;  %v3487_v48 = vmul.f32 %v5268_v52, %v5264_v36 }
 0x627   :  { %3498 = vperm.xlu1 %5249, %v3495_v47   ;;  %3490 = vperm.xlu0 %5250, %v3487_v48  }
 0x699   :  { %v3499_v50 = vpop.permute.xlu1 %3498  ;;  %v3491_v38 = vpop.permute.xlu0 %3490 }
 0x69a   :  { %v3501_v46 = vmul.f32 %v3499_v50, %v3270_v58  ;;  %v3502_v18 = vmul.f32 %v3499_v50, %v3271_v26  ;;  %v3493_v11 = vmul.f32 %v3491_v38, %v6787_v30  ;;  %v3494_v25 = vmul.f32 %v3491_v38, %v6789_v37 }
 0x69c   :  { %v3503_v29 = vadd.f32 %v3501_v46, %v3493_v11  ;;  %v3504_v45 = vadd.f32 %v3502_v18, %v3494_v25 }
 0x69e   :  { %3505 = vst [vmem:[#allocation21] sm:$0xff] %v3503_v29 }
 0x69f   :  { %3506 = vst [vmem:[#allocation21 + $0x8] sm:$0xff] %v3504_v45 }
 0x6a0   :  { %3517 = dma.vmem_to_hbm [thread:$0]  %s3513_s16, 256, %s3515_s27, [#allocation6]  }
 0x6a1   :  { %5545 = dma.done.wait [#allocation6], 256  }
 0x6a2   :  { %5546 = vsyncadd [#allocation6], 4294967040 }
 0x6a3   :  { %3522 = vsyncpa [#allocation5], 1 }
 0x6a4   :  { %3523 = vsyncpa [#allocation8], 1 }
 0x6a5   :  { %3524 = vsyncpa [#allocation11], 1 }
 0x6a6   :  { %3525 = vsyncpa [#allocation14], 1 }
 0x6a7   :  { %3526 = vsyncpa [#allocation17], 1 }
 0x6a8   :  { %3527 = vsyncpa [#allocation20], 1 }
 0x6a9   :  { %3528 = vsyncpa [#allocation6], 1 }

</bundles_post_ra>
